<compile_context>
chip_gen: v6e
topology: v6e:2x2x1
jax: 0.10.0
libtpu: 0.0.40
codegen_flags: <defaults>
</compile_context>

<pallas_src>
import jax
import jax.numpy as jnp
from jax import lax
from jax.experimental import pallas as pl
from jax.experimental.pallas import tpu as pltpu

# ----------------------------- model hyper-params -----------------------------
VOCAB = 64
VOCAB_PAD = 128          # pad vocab lanes to a full vreg width
HIDDEN = 32
NUM_HEADS = 4
HEAD_DIM = HIDDEN // NUM_HEADS
FFN = 64
MAX_POS = 32
LN_EPS = 1e-5
ATTN_SCALE = 1.0 / (HEAD_DIM ** 0.5)

# ----------------------- weight-slab row offsets (rows, lanes 0-based) --------
W_ENC_QKV, W_ENC_WO, W_ENC_W1, W_ENC_W2 = 0, 32, 64, 96        # (32,96)(32,32)(32,64)(64,32)
W_DSA_QKV, W_DSA_WO = 160, 192                                  # (32,96)(32,32)
W_DCA_Q, W_DCA_KV, W_DCA_WO = 224, 256, 288                     # (32,32)(32,64)(32,32)
W_DEC_W1, W_DEC_W2 = 320, 352                                   # (32,64)(64,32)
W_DENSE, W_WEMB = 416, 448                                      # (32,32)(128,32)
W_ROWS = W_WEMB + VOCAB_PAD                                     # 576

# ----------------------- vector-slab row indices ------------------------------
(V_EMB_LN_G, V_EMB_LN_B,
 V_ENC_QKV_B, V_ENC_BO, V_ENC_LN1_G, V_ENC_LN1_B, V_ENC_B1, V_ENC_B2,
 V_ENC_LN2_G, V_ENC_LN2_B,
 V_DSA_QKV_B, V_DSA_BO, V_DEC_LN1_G, V_DEC_LN1_B,
 V_DCA_Q_B, V_DCA_KV_B, V_DCA_BO, V_DEC_LN2_G, V_DEC_LN2_B,
 V_DEC_B1, V_DEC_B2, V_DEC_LN3_G, V_DEC_LN3_B,
 V_DENSE_B, V_VOCAB_ADD) = range(25)
V_ROWS = 32


# ----------------------------- in-kernel helpers ------------------------------
def _mm(a, b):
    """a (M, K) @ b (K, N) on the MXU with f32 accumulation."""
    return lax.dot_general(a, b, (((1,), (0,)), ((), ())),
                           preferred_element_type=jnp.float32)


def _mm_t(a, b):
    """a (M, K) contracted with b (N, K) -> (M, N); avoids materializing b.T."""
    return lax.dot_general(a, b, (((1,), (1,)), ((), ())),
                           preferred_element_type=jnp.float32)


def _softmax_rows(s):
    s = s - jnp.max(s, axis=-1, keepdims=True)
    p = jnp.exp(s)
    return p * pl.reciprocal(jnp.sum(p, axis=-1, keepdims=True), approx=True)


def _erf(x):
    """Abramowitz-Stegun 7.1.26 polynomial erf (|err| < 1.5e-7); exp/mul/add only."""
    sgn = jnp.where(x >= 0.0, 1.0, -1.0)
    a = jnp.abs(x)
    t = 1.0 / (1.0 + 0.3275911 * a)
    poly = t * (0.254829592 + t * (-0.284496736 + t * (1.421413741
                + t * (-1.453152027 + t * 1.061405429))))
    return sgn * (1.0 - poly * jnp.exp(-a * a))


def _gelu(x):
    """Exact (erf-based) GELU, matching PyTorch / HF CodeBERT."""
    return 0.5 * x * (1.0 + _erf(x * 0.7071067811865476))


def _mha(q, k, v, wo, add_mask):
    """Multi-head attention on pre-projected q (Rq,H), k/v (Rk,H).

    Softmax scale is pre-folded into the Q weights.  Per-head contexts are
    lane-concatenated so the output projection is ONE (Rq,H)@(H,H) matmul."""
    ctxs = []
    for h in range(NUM_HEADS):
        lo, hi = h * HEAD_DIM, (h + 1) * HEAD_DIM
        s = _mm_t(q[:, lo:hi], k[:, lo:hi]) + add_mask
        ctxs.append(_mm(_softmax_rows(s), v[:, lo:hi]))
    return _mm(jnp.concatenate(ctxs, axis=-1), wo)


# --------------------------------- the kernel ----------------------------------
def _build_kernel(B, S, T):
    NS, NT = B * S, B * T
    R = max(NS, NT)
    H, H3 = HIDDEN, 3 * HIDDEN
    # activation-slab lane offsets
    A_SRC, A_TGT = 0, H
    A_ENCM = 2 * H
    A_DECM = A_ENCM + NS
    A_XM = A_DECM + NT
    A_OH = 128
    assert A_XM + NS <= 128 and R % 8 == 0

    def kernel(act_ref, w_ref, v_ref, out_ref):
        act = act_ref[...]                               # (R, 128 + VOCAB_PAD)

        def vec(row, n):                                 # (1, n) bias / LN row
            return v_ref[row:row + 1, 0:n]

        def ln(x, g_row, b_row):
            g, b = vec(g_row, H), vec(b_row, H)
            mean = jnp.mean(x, axis=-1, keepdims=True)
            var = jnp.mean((x - mean) ** 2, axis=-1, keepdims=True)
            return (x - mean) * lax.rsqrt(var + LN_EPS) * g + b

        # ---- embedding LayerNorm (word + position gathers done in XLA prep) ----
        src = ln(act[0:NS, A_SRC:A_SRC + H], V_EMB_LN_G, V_EMB_LN_B)      # (NS,H)
        tgt = ln(act[0:NT, A_TGT:A_TGT + H], V_EMB_LN_G, V_EMB_LN_B)      # (NT,H)
        enc_mask = act[0:NS, A_ENCM:A_ENCM + NS]          # block-diag + src padding
        dec_mask = act[0:NT, A_DECM:A_DECM + NT]          # block-diag causal
        xm_mask = act[0:NT, A_XM:A_XM + NS]               # block-diag + mem key padding
        tgt_onehot = act[0:NT, A_OH:A_OH + VOCAB_PAD]     # active * onehot(shifted label)

        # ------------------ encoder layer (post-LN, exact-erf GELU) ------------------
        qkv = _mm(src, w_ref[W_ENC_QKV:W_ENC_QKV + H, 0:H3]) + vec(V_ENC_QKV_B, H3)
        a = _mha(qkv[:, 0:H], qkv[:, H:2 * H], qkv[:, 2 * H:H3],
                 w_ref[W_ENC_WO:W_ENC_WO + H, 0:H], enc_mask) + vec(V_ENC_BO, H)
        x = ln(src + a, V_ENC_LN1_G, V_ENC_LN1_B)
        f = _mm(_gelu(_mm(x, w_ref[W_ENC_W1:W_ENC_W1 + H, 0:FFN]) + vec(V_ENC_B1, FFN)),
                w_ref[W_ENC_W2:W_ENC_W2 + FFN, 0:H]) + vec(V_ENC_B2, H)
        memory = ln(x + f, V_ENC_LN2_G, V_ENC_LN2_B)                       # (NS,H)

        # ------------------ decoder layer (post-LN, relu FFN) ------------------
        qkv = _mm(tgt, w_ref[W_DSA_QKV:W_DSA_QKV + H, 0:H3]) + vec(V_DSA_QKV_B, H3)
        sa = _mha(qkv[:, 0:H], qkv[:, H:2 * H], qkv[:, 2 * H:H3],
                  w_ref[W_DSA_WO:W_DSA_WO + H, 0:H], dec_mask) + vec(V_DSA_BO, H)
        y = ln(tgt + sa, V_DEC_LN1_G, V_DEC_LN1_B)

        q = _mm(y, w_ref[W_DCA_Q:W_DCA_Q + H, 0:H]) + vec(V_DCA_Q_B, H)
        kv = _mm(memory, w_ref[W_DCA_KV:W_DCA_KV + H, 0:2 * H]) + vec(V_DCA_KV_B, 2 * H)
        ca = _mha(q, kv[:, 0:H], kv[:, H:2 * H],
                  w_ref[W_DCA_WO:W_DCA_WO + H, 0:H], xm_mask) + vec(V_DCA_BO, H)
        y = ln(y + ca, V_DEC_LN2_G, V_DEC_LN2_B)

        f = _mm(jnp.maximum(_mm(y, w_ref[W_DEC_W1:W_DEC_W1 + H, 0:FFN])
                            + vec(V_DEC_B1, FFN), 0.0),
                w_ref[W_DEC_W2:W_DEC_W2 + FFN, 0:H]) + vec(V_DEC_B2, H)
        y = ln(y + f, V_DEC_LN3_G, V_DEC_LN3_B)                            # (NT,H)

        # ------ dense + tanh, tied LM head (vocab padded to 128 lanes), fused CE ------
        hidden = jnp.tanh(_mm(y, w_ref[W_DENSE:W_DENSE + H, 0:H]) + vec(V_DENSE_B, H))
        logits = (_mm_t(hidden, w_ref[W_WEMB:W_WEMB + VOCAB_PAD, 0:H])
                  + vec(V_VOCAB_ADD, VOCAB_PAD))                           # (NT,128)
        mx = jnp.max(logits, axis=-1, keepdims=True)
        lse = mx + jnp.log(jnp.sum(jnp.exp(logits - mx), axis=-1, keepdims=True))
        w_row = jnp.sum(tgt_onehot, axis=-1, keepdims=True)       # active weight per row
        picked = jnp.sum(logits * tgt_onehot, axis=-1, keepdims=True)  # w * logit[label]
        loss_sum = jnp.sum(lse * w_row - picked)
        loss_cnt = jnp.sum(w_row)

        # single lane-dense output row: lane0 = sum, lane1 = count
        lane = lax.broadcasted_iota(jnp.int32, (1, 128), 1)
        out_ref[...] = jnp.where(lane == 0, loss_sum,
                                 jnp.where(lane == 1, loss_cnt, 0.0))

    return kernel


# ----------------------- host-side packing (done ONCE, outside jit) ------------
def _pad_lanes(mat, lanes=128):
    mat = jnp.asarray(mat, jnp.float32)
    if mat.ndim == 1:
        mat = mat.reshape(1, -1)
    return jnp.pad(mat, ((0, 0), (0, lanes - mat.shape[1])))


def pack_params(params):
    """Pack all weights into two lane-dense slabs (softmax scale folded into Q)."""
    f32, H = jnp.float32, HIDDEN
    enc, dec = params["enc_layer"], params["dec_layer"]

    def scale_q(w):   # fused (H,3H): scale Q columns
        return jnp.concatenate([w[:, :H] * ATTN_SCALE, w[:, H:]], axis=1)

    def scale_qb(b):
        return jnp.concatenate([b[:H] * ATTN_SCALE, b[H:]])

    word_emb_pad = jnp.zeros((VOCAB_PAD, H), f32).at[:VOCAB].set(
        params["word_emb"].astype(f32))

    mats = [
        scale_q(enc["attn"]["qkv_w"]), enc["attn"]["wo"], enc["w1"], enc["w2"],
        scale_q(dec["self_attn"]["qkv_w"]), dec["self_attn"]["wo"],
        dec["cross_attn"]["qkv_w"][:, :H] * ATTN_SCALE,      # cross-attn Wq (scaled)
        dec["cross_attn"]["qkv_w"][:, H:],                   # cross-attn Wkv
        dec["cross_attn"]["wo"],
        dec["w1"], dec["w2"],
        params["dense_w"],
        word_emb_pad,
    ]
    w_slab = jnp.concatenate([_pad_lanes(m) for m in mats], axis=0)
    assert w_slab.shape == (W_ROWS, 128)

    vocab_add = jnp.where(jnp.arange(VOCAB_PAD) < VOCAB, 0.0, -1e30).astype(f32)
    vecs = [
        params["emb_ln_g"], params["emb_ln_b"],
        scale_qb(enc["attn"]["qkv_b"]), enc["attn"]["bo"],
        enc["ln1_g"], enc["ln1_b"], enc["b1"], enc["b2"], enc["ln2_g"], enc["ln2_b"],
        scale_qb(dec["self_attn"]["qkv_b"]), dec["self_attn"]["bo"],
        dec["ln1_g"], dec["ln1_b"],
        dec["cross_attn"]["qkv_b"][:H] * ATTN_SCALE, dec["cross_attn"]["qkv_b"][H:],
        dec["cross_attn"]["bo"], dec["ln2_g"], dec["ln2_b"],
        dec["b1"], dec["b2"], dec["ln3_g"], dec["ln3_b"],
        params["dense_b"], vocab_add,
    ]
    v_slab = jnp.concatenate([_pad_lanes(v) for v in vecs], axis=0)
    v_slab = jnp.pad(v_slab, ((0, V_ROWS - v_slab.shape[0]), (0, 0)))
    return {"w_slab": w_slab, "v_slab": v_slab,
            "word_emb": params["word_emb"].astype(f32),
            "pos_emb": params["pos_emb"].astype(f32)}


# --------------------------------- forward wrapper ------------------------------
def seq2seq_forward(packed, source_ids, source_mask, target_ids, target_mask):
    """Training forward: returns (loss, loss * n_active, n_active)."""
    f32 = jnp.float32
    B, S = source_ids.shape
    T = target_ids.shape[1]
    NS, NT = B * S, B * T
    R = max(NS, NT)
    assert R % 8 == 0 and 2 * HIDDEN + 2 * NS + NT <= 128

    # --- tiny XLA prep: embedding gathers, block-diag masks, shifted one-hot ---
    word_emb, pos_emb = packed["word_emb"], packed["pos_emb"]
    src_emb = (word_emb[source_ids] + pos_emb[:S][None]).reshape(NS, HIDDEN).astype(f32)
    tgt_emb = (word_emb[target_ids] + pos_emb[:T][None]).reshape(NT, HIDDEN).astype(f32)

    srcm = source_mask.astype(f32)
    sb = jnp.repeat(jnp.arange(B), S)            # batch id of each flattened src row
    tb = jnp.repeat(jnp.arange(B), T)            # batch id of each flattened tgt row
    tpos = jnp.tile(jnp.arange(T), B)            # in-sequence position of each tgt row
    enc_key_add = ((srcm - 1.0) * 10000.0).reshape(-1)
    enc_mask = jnp.where(sb[:, None] == sb[None, :], enc_key_add[None, :], -10000.0)
    dec_mask = jnp.where((tb[:, None] == tb[None, :]) & (tpos[None, :] <= tpos[:, None]),
                         0.0, -10000.0)
    # TODO(synk): -1e9 stands in for the -inf memory_key_padding_mask (OK if every
    #             source sequence has >= 1 real token).
    xm_mask = jnp.where((tb[:, None] == sb[None, :]) & (srcm.reshape(-1)[None, :] > 0.0),
                        0.0, -1e9)

    # position t predicts token t+1; last position gets weight 0 (CE ignore handled here)
    shift_labels = jnp.concatenate(
        [target_ids[:, 1:], jnp.zeros((B, 1), target_ids.dtype)], axis=1)
    active = jnp.concatenate(
        [(target_mask[:, 1:] != 0).astype(f32), jnp.zeros((B, 1), f32)], axis=1)
    onehot = (jax.nn.one_hot(shift_labels.reshape(-1), VOCAB_PAD, dtype=f32)
              * active.reshape(-1, 1))

    def rpad(x):
        return jnp.pad(x.astype(f32), ((0, R - x.shape[0]), (0, 0)))

    pad_lanes = 128 - (2 * HIDDEN + 2 * NS + NT)
    act = jnp.concatenate(
        [rpad(src_emb), rpad(tgt_emb), rpad(enc_mask), rpad(dec_mask), rpad(xm_mask),
         jnp.zeros((R, pad_lanes), f32), rpad(onehot)], axis=1)   # (R, 128 + VOCAB_PAD)

    out = pl.pallas_call(
        _build_kernel(B, S, T),
        # whole batch in ONE grid step (batch folded into sublanes).  On v7x one could
        # split this axis into 2 "parallel" chunks to feed both TensorCores.
        grid=(1,),
        out_shape=jax.ShapeDtypeStruct((1, 128), f32),
        in_specs=[
            pl.BlockSpec((R, 128 + VOCAB_PAD), lambda i: (0, 0)),   # packed activations
            pl.BlockSpec((W_ROWS, 128), lambda i: (0, 0)),          # matrix slab
            pl.BlockSpec((V_ROWS, 128), lambda i: (0, 0)),          # bias / LN slab
        ],
        out_specs=pl.BlockSpec((1, 128), lambda i: (0, 0)),
        compiler_params=pltpu.CompilerParams(dimension_semantics=("arbitrary",)),
    )(act, packed["w_slab"], packed["v_slab"])

    loss_sum, loss_cnt = out[0, 0], out[0, 1]
    loss = loss_sum / jnp.maximum(loss_cnt, 1.0)   # guard: no active target positions
    return loss, loss * loss_cnt, loss_cnt.astype(jnp.int32)


# ------------------------------ parameter init ---------------------------------
def _attn_params(key, H):
    k1, k2 = jax.random.split(key)
    return {
        "qkv_w": 0.02 * jax.random.normal(k1, (H, 3 * H), jnp.float32),  # fused Wq|Wk|Wv
        "qkv_b": jnp.zeros((3 * H,), jnp.float32),
        "wo": 0.02 * jax.random.normal(k2, (H, H), jnp.float32),
        "bo": jnp.zeros((H,), jnp.float32),
    }


def init_params(key):
    keys = jax.random.split(key, 10)
    H, F = HIDDEN, FFN
    return {
        "word_emb": 0.02 * jax.random.normal(keys[0], (VOCAB, H), jnp.float32),
        "pos_emb": 0.02 * jax.random.normal(keys[1], (MAX_POS, H), jnp.float32),
        "emb_ln_g": jnp.ones((H,), jnp.float32),
        "emb_ln_b": jnp.zeros((H,), jnp.float32),
        "enc_layer": {
            "attn": _attn_params(keys[2], H),
            "ln1_g": jnp.ones((H,), jnp.float32), "ln1_b": jnp.zeros((H,), jnp.float32),
            "w1": 0.02 * jax.random.normal(keys[3], (H, F), jnp.float32),
            "b1": jnp.zeros((F,), jnp.float32),
            "w2": 0.02 * jax.random.normal(keys[4], (F, H), jnp.float32),
            "b2": jnp.zeros((H,), jnp.float32),
            "ln2_g": jnp.ones((H,), jnp.float32), "ln2_b": jnp.zeros((H,), jnp.float32),
        },
        "dec_layer": {
            "self_attn": _attn_params(keys[5], H),
            "cross_attn": _attn_params(keys[6], H),
            "ln1_g": jnp.ones((H,), jnp.float32), "ln1_b": jnp.zeros((H,), jnp.float32),
            "ln2_g": jnp.ones((H,), jnp.float32), "ln2_b": jnp.zeros((H,), jnp.float32),
            "w1": 0.02 * jax.random.normal(keys[7], (H, F), jnp.float32),
            "b1": jnp.zeros((F,), jnp.float32),
            "w2": 0.02 * jax.random.normal(keys[8], (F, H), jnp.float32),
            "b2": jnp.zeros((H,), jnp.float32),
            "ln3_g": jnp.ones((H,), jnp.float32), "ln3_b": jnp.zeros((H,), jnp.float32),
        },
        "dense_w": 0.02 * jax.random.normal(keys[9], (H, H), jnp.float32),
        "dense_b": jnp.zeros((H,), jnp.float32),
    }


# ------------------------------------ main --------------------------------------
if __name__ == "__main__":
    B, S, T = 2, 8, 8
    root = jax.random.PRNGKey(0)
    k_params, k_src, k_tgt = jax.random.split(root, 3)

    params = init_params(k_params)
    packed = pack_params(params)        # one-time host-side weight packing

    source_ids = jax.random.randint(k_src, (B, S), 0, VOCAB, dtype=jnp.int32)
    target_ids = jax.random.randint(k_tgt, (B, T), 0, VOCAB, dtype=jnp.int32)
    # masks: 1 for real tokens, trailing zeros for padding
    source_mask = jnp.array([[1, 1, 1, 1, 1, 1, 1, 0],
                             [1, 1, 1, 1, 1, 0, 0, 0]], dtype=jnp.int32)
    target_mask = jnp.array([[1, 1, 1, 1, 1, 1, 0, 0],
                             [1, 1, 1, 1, 0, 0, 0, 0]], dtype=jnp.int32)

    fwd = jax.jit(seq2seq_forward)
    loss, scaled_loss, active_count = fwd(packed, source_ids, source_mask,
                                          target_ids, target_mask)
    jax.block_until_ready((loss, scaled_loss, active_count))
    assert jnp.isfinite(loss) and jnp.isfinite(scaled_loss)
    print("KERNEL_OK")
</pallas_src>

<mosaic_0001>
module attributes {stable_mosaic.version = 11 : i64} {
  func.func @kernel(%arg0: i32, %arg1: memref<16x256xf32, #tpu.memory_space<vmem>>, %arg2: memref<576x128xf32, #tpu.memory_space<vmem>>, %arg3: memref<32x128xf32, #tpu.memory_space<vmem>>, %arg4: memref<1x128xf32, #tpu.memory_space<vmem>>) attributes {dimension_semantics = [#tpu.dimension_semantics<arbitrary>], iteration_bounds = array<i64: 1>, scalar_prefetch = 0 : i64, scratch_operands = 0 : i64, tpu.core_type = #tpu.core_type<tc>, window_params = [{pipeline_mode = #tpu.pipeline_mode<synchronous>, transform_indices = @transform_0, window_bounds = array<i64: 16, 256>}, {pipeline_mode = #tpu.pipeline_mode<synchronous>, transform_indices = @transform_1, window_bounds = array<i64: 576, 128>}, {pipeline_mode = #tpu.pipeline_mode<synchronous>, transform_indices = @transform_2, window_bounds = array<i64: 32, 128>}, {pipeline_mode = #tpu.pipeline_mode<synchronous>, transform_indices = @transform_3, window_bounds = array<i64: 1, 128>}]} {
    %c0 = arith.constant 0 : index
    %c0_0 = arith.constant 0 : index
    %0 = vector.load %arg1[%c0, %c0_0] : memref<16x256xf32, #tpu.memory_space<vmem>>, vector<16x256xf32>
    %1 = vector.extract_strided_slice %0 {offsets = [0, 0], sizes = [16, 32], strides = [1, 1]} : vector<16x256xf32> to vector<16x32xf32>
    %c0_1 = arith.constant 0 : index
    %c0_2 = arith.constant 0 : index
    %2 = vector.load %arg3[%c0_1, %c0_2] : memref<32x128xf32, #tpu.memory_space<vmem>>, vector<1x32xf32>
    %c1 = arith.constant 1 : index
    %c0_3 = arith.constant 0 : index
    %3 = vector.load %arg3[%c1, %c0_3] : memref<32x128xf32, #tpu.memory_space<vmem>>, vector<1x32xf32>
    %cst = arith.constant dense<0.000000e+00> : vector<16xf32>
    %4 = vector.multi_reduction <add>, %1, %cst [1] : vector<16x32xf32> to vector<16xf32>
    %5 = vector.shape_cast %4 : vector<16xf32> to vector<16x1xf32>
    %cst_4 = arith.constant 3.200000e+01 : f32
    %6 = vector.broadcast %cst_4 : f32 to vector<16x1xf32>
    %7 = arith.divf %5, %6 : vector<16x1xf32>
    %8 = vector.broadcast %7 : vector<16x1xf32> to vector<16x32xf32>
    %9 = arith.subf %1, %8 : vector<16x32xf32>
    %10 = arith.mulf %9, %9 : vector<16x32xf32>
    %cst_5 = arith.constant dense<0.000000e+00> : vector<16xf32>
    %11 = vector.multi_reduction <add>, %10, %cst_5 [1] : vector<16x32xf32> to vector<16xf32>
    %12 = vector.shape_cast %11 : vector<16xf32> to vector<16x1xf32>
    %cst_6 = arith.constant 3.200000e+01 : f32
    %13 = vector.broadcast %cst_6 : f32 to vector<16x1xf32>
    %14 = arith.divf %12, %13 : vector<16x1xf32>
    %15 = vector.broadcast %7 : vector<16x1xf32> to vector<16x32xf32>
    %16 = arith.subf %1, %15 : vector<16x32xf32>
    %cst_7 = arith.constant 9.99999974E-6 : f32
    %17 = vector.broadcast %cst_7 : f32 to vector<16x1xf32>
    %18 = arith.addf %14, %17 : vector<16x1xf32>
    %19 = math.rsqrt %18 : vector<16x1xf32>
    %20 = vector.broadcast %19 : vector<16x1xf32> to vector<16x32xf32>
    %21 = arith.mulf %16, %20 : vector<16x32xf32>
    %22 = vector.broadcast %2 : vector<1x32xf32> to vector<16x32xf32>
    %23 = arith.mulf %21, %22 : vector<16x32xf32>
    %24 = vector.broadcast %3 : vector<1x32xf32> to vector<16x32xf32>
    %25 = arith.addf %23, %24 : vector<16x32xf32>
    %26 = vector.extract_strided_slice %0 {offsets = [0, 32], sizes = [16, 32], strides = [1, 1]} : vector<16x256xf32> to vector<16x32xf32>
    %c0_8 = arith.constant 0 : index
    %c0_9 = arith.constant 0 : index
    %27 = vector.load %arg3[%c0_8, %c0_9] : memref<32x128xf32, #tpu.memory_space<vmem>>, vector<1x32xf32>
    %c1_10 = arith.constant 1 : index
    %c0_11 = arith.constant 0 : index
    %28 = vector.load %arg3[%c1_10, %c0_11] : memref<32x128xf32, #tpu.memory_space<vmem>>, vector<1x32xf32>
    %cst_12 = arith.constant dense<0.000000e+00> : vector<16xf32>
    %29 = vector.multi_reduction <add>, %26, %cst_12 [1] : vector<16x32xf32> to vector<16xf32>
    %30 = vector.shape_cast %29 : vector<16xf32> to vector<16x1xf32>
    %cst_13 = arith.constant 3.200000e+01 : f32
    %31 = vector.broadcast %cst_13 : f32 to vector<16x1xf32>
    %32 = arith.divf %30, %31 : vector<16x1xf32>
    %33 = vector.broadcast %32 : vector<16x1xf32> to vector<16x32xf32>
    %34 = arith.subf %26, %33 : vector<16x32xf32>
    %35 = arith.mulf %34, %34 : vector<16x32xf32>
    %cst_14 = arith.constant dense<0.000000e+00> : vector<16xf32>
    %36 = vector.multi_reduction <add>, %35, %cst_14 [1] : vector<16x32xf32> to vector<16xf32>
    %37 = vector.shape_cast %36 : vector<16xf32> to vector<16x1xf32>
    %cst_15 = arith.constant 3.200000e+01 : f32
    %38 = vector.broadcast %cst_15 : f32 to vector<16x1xf32>
    %39 = arith.divf %37, %38 : vector<16x1xf32>
    %40 = vector.broadcast %32 : vector<16x1xf32> to vector<16x32xf32>
    %41 = arith.subf %26, %40 : vector<16x32xf32>
    %cst_16 = arith.constant 9.99999974E-6 : f32
    %42 = vector.broadcast %cst_16 : f32 to vector<16x1xf32>
    %43 = arith.addf %39, %42 : vector<16x1xf32>
    %44 = math.rsqrt %43 : vector<16x1xf32>
    %45 = vector.broadcast %44 : vector<16x1xf32> to vector<16x32xf32>
    %46 = arith.mulf %41, %45 : vector<16x32xf32>
    %47 = vector.broadcast %27 : vector<1x32xf32> to vector<16x32xf32>
    %48 = arith.mulf %46, %47 : vector<16x32xf32>
    %49 = vector.broadcast %28 : vector<1x32xf32> to vector<16x32xf32>
    %50 = arith.addf %48, %49 : vector<16x32xf32>
    %51 = vector.extract_strided_slice %0 {offsets = [0, 64], sizes = [16, 16], strides = [1, 1]} : vector<16x256xf32> to vector<16x16xf32>
    %52 = vector.extract_strided_slice %0 {offsets = [0, 80], sizes = [16, 16], strides = [1, 1]} : vector<16x256xf32> to vector<16x16xf32>
    %53 = vector.extract_strided_slice %0 {offsets = [0, 96], sizes = [16, 16], strides = [1, 1]} : vector<16x256xf32> to vector<16x16xf32>
    %54 = vector.extract_strided_slice %0 {offsets = [0, 128], sizes = [16, 128], strides = [1, 1]} : vector<16x256xf32> to vector<16x128xf32>
    %c0_17 = arith.constant 0 : index
    %c0_18 = arith.constant 0 : index
    %55 = vector.load %arg2[%c0_17, %c0_18] : memref<576x128xf32, #tpu.memory_space<vmem>>, vector<32x96xf32>
    %cst_19 = arith.constant dense<0.000000e+00> : vector<16x96xf32>
    %56 = tpu.matmul %25, %55, %cst_19 {dimension_numbers = #tpu.dot_dimension_numbers<[1], [0], [0], [1], [0, 0, 1, 1], [], []>} : vector<16x32xf32>, vector<32x96xf32>, vector<16x96xf32> -> vector<16x96xf32>
    %c2 = arith.constant 2 : index
    %c0_20 = arith.constant 0 : index
    %57 = vector.load %arg3[%c2, %c0_20] : memref<32x128xf32, #tpu.memory_space<vmem>>, vector<1x96xf32>
    %58 = vector.broadcast %57 : vector<1x96xf32> to vector<16x96xf32>
    %59 = arith.addf %56, %58 : vector<16x96xf32>
    %60 = vector.extract_strided_slice %59 {offsets = [0, 0], sizes = [16, 32], strides = [1, 1]} : vector<16x96xf32> to vector<16x32xf32>
    %61 = vector.extract_strided_slice %59 {offsets = [0, 32], sizes = [16, 32], strides = [1, 1]} : vector<16x96xf32> to vector<16x32xf32>
    %62 = vector.extract_strided_slice %59 {offsets = [0, 64], sizes = [16, 32], strides = [1, 1]} : vector<16x96xf32> to vector<16x32xf32>
    %c32 = arith.constant 32 : index
    %c0_21 = arith.constant 0 : index
    %63 = vector.load %arg2[%c32, %c0_21] : memref<576x128xf32, #tpu.memory_space<vmem>>, vector<32x32xf32>
    %64 = vector.extract_strided_slice %60 {offsets = [0, 0], sizes = [16, 8], strides = [1, 1]} : vector<16x32xf32> to vector<16x8xf32>
    %65 = vector.extract_strided_slice %61 {offsets = [0, 0], sizes = [16, 8], strides = [1, 1]} : vector<16x32xf32> to vector<16x8xf32>
    %cst_22 = arith.constant dense<0.000000e+00> : vector<16x16xf32>
    %66 = tpu.matmul %64, %65, %cst_22 {dimension_numbers = #tpu.dot_dimension_numbers<[1], [1], [0], [0], [0, 0, 1, 0], [], []>} : vector<16x8xf32>, vector<16x8xf32>, vector<16x16xf32> -> vector<16x16xf32>
    %67 = arith.addf %66, %51 : vector<16x16xf32>
    %cst_23 = arith.constant dense<0xFF800000> : vector<16xf32>
    %68 = vector.multi_reduction <maximumf>, %67, %cst_23 [1] : vector<16x16xf32> to vector<16xf32>
    %69 = vector.shape_cast %68 : vector<16xf32> to vector<16x1xf32>
    %70 = vector.broadcast %69 : vector<16x1xf32> to vector<16x16xf32>
    %71 = arith.subf %67, %70 : vector<16x16xf32>
    %72 = math.exp %71 : vector<16x16xf32>
    %cst_24 = arith.constant dense<0.000000e+00> : vector<16xf32>
    %73 = vector.multi_reduction <add>, %72, %cst_24 [1] : vector<16x16xf32> to vector<16xf32>
    %74 = vector.shape_cast %73 : vector<16xf32> to vector<16x1xf32>
    %75 = tpu.reciprocal %74 {approx = true} : vector<16x1xf32> -> vector<16x1xf32>
    %76 = vector.broadcast %75 : vector<16x1xf32> to vector<16x16xf32>
    %77 = arith.mulf %72, %76 : vector<16x16xf32>
    %78 = vector.extract_strided_slice %62 {offsets = [0, 0], sizes = [16, 8], strides = [1, 1]} : vector<16x32xf32> to vector<16x8xf32>
    %cst_25 = arith.constant dense<0.000000e+00> : vector<16x8xf32>
    %79 = tpu.matmul %77, %78, %cst_25 {dimension_numbers = #tpu.dot_dimension_numbers<[1], [0], [0], [1], [0, 0, 1, 1], [], []>} : vector<16x16xf32>, vector<16x8xf32>, vector<16x8xf32> -> vector<16x8xf32>
    %80 = vector.extract_strided_slice %60 {offsets = [0, 8], sizes = [16, 8], strides = [1, 1]} : vector<16x32xf32> to vector<16x8xf32>
    %81 = vector.extract_strided_slice %61 {offsets = [0, 8], sizes = [16, 8], strides = [1, 1]} : vector<16x32xf32> to vector<16x8xf32>
    %cst_26 = arith.constant dense<0.000000e+00> : vector<16x16xf32>
    %82 = tpu.matmul %80, %81, %cst_26 {dimension_numbers = #tpu.dot_dimension_numbers<[1], [1], [0], [0], [0, 0, 1, 0], [], []>} : vector<16x8xf32>, vector<16x8xf32>, vector<16x16xf32> -> vector<16x16xf32>
    %83 = arith.addf %82, %51 : vector<16x16xf32>
    %cst_27 = arith.constant dense<0xFF800000> : vector<16xf32>
    %84 = vector.multi_reduction <maximumf>, %83, %cst_27 [1] : vector<16x16xf32> to vector<16xf32>
    %85 = vector.shape_cast %84 : vector<16xf32> to vector<16x1xf32>
    %86 = vector.broadcast %85 : vector<16x1xf32> to vector<16x16xf32>
    %87 = arith.subf %83, %86 : vector<16x16xf32>
    %88 = math.exp %87 : vector<16x16xf32>
    %cst_28 = arith.constant dense<0.000000e+00> : vector<16xf32>
    %89 = vector.multi_reduction <add>, %88, %cst_28 [1] : vector<16x16xf32> to vector<16xf32>
    %90 = vector.shape_cast %89 : vector<16xf32> to vector<16x1xf32>
    %91 = tpu.reciprocal %90 {approx = true} : vector<16x1xf32> -> vector<16x1xf32>
    %92 = vector.broadcast %91 : vector<16x1xf32> to vector<16x16xf32>
    %93 = arith.mulf %88, %92 : vector<16x16xf32>
    %94 = vector.extract_strided_slice %62 {offsets = [0, 8], sizes = [16, 8], strides = [1, 1]} : vector<16x32xf32> to vector<16x8xf32>
    %cst_29 = arith.constant dense<0.000000e+00> : vector<16x8xf32>
    %95 = tpu.matmul %93, %94, %cst_29 {dimension_numbers = #tpu.dot_dimension_numbers<[1], [0], [0], [1], [0, 0, 1, 1], [], []>} : vector<16x16xf32>, vector<16x8xf32>, vector<16x8xf32> -> vector<16x8xf32>
    %96 = vector.extract_strided_slice %60 {offsets = [0, 16], sizes = [16, 8], strides = [1, 1]} : vector<16x32xf32> to vector<16x8xf32>
    %97 = vector.extract_strided_slice %61 {offsets = [0, 16], sizes = [16, 8], strides = [1, 1]} : vector<16x32xf32> to vector<16x8xf32>
    %cst_30 = arith.constant dense<0.000000e+00> : vector<16x16xf32>
    %98 = tpu.matmul %96, %97, %cst_30 {dimension_numbers = #tpu.dot_dimension_numbers<[1], [1], [0], [0], [0, 0, 1, 0], [], []>} : vector<16x8xf32>, vector<16x8xf32>, vector<16x16xf32> -> vector<16x16xf32>
    %99 = arith.addf %98, %51 : vector<16x16xf32>
    %cst_31 = arith.constant dense<0xFF800000> : vector<16xf32>
    %100 = vector.multi_reduction <maximumf>, %99, %cst_31 [1] : vector<16x16xf32> to vector<16xf32>
    %101 = vector.shape_cast %100 : vector<16xf32> to vector<16x1xf32>
    %102 = vector.broadcast %101 : vector<16x1xf32> to vector<16x16xf32>
    %103 = arith.subf %99, %102 : vector<16x16xf32>
    %104 = math.exp %103 : vector<16x16xf32>
    %cst_32 = arith.constant dense<0.000000e+00> : vector<16xf32>
    %105 = vector.multi_reduction <add>, %104, %cst_32 [1] : vector<16x16xf32> to vector<16xf32>
    %106 = vector.shape_cast %105 : vector<16xf32> to vector<16x1xf32>
    %107 = tpu.reciprocal %106 {approx = true} : vector<16x1xf32> -> vector<16x1xf32>
    %108 = vector.broadcast %107 : vector<16x1xf32> to vector<16x16xf32>
    %109 = arith.mulf %104, %108 : vector<16x16xf32>
    %110 = vector.extract_strided_slice %62 {offsets = [0, 16], sizes = [16, 8], strides = [1, 1]} : vector<16x32xf32> to vector<16x8xf32>
    %cst_33 = arith.constant dense<0.000000e+00> : vector<16x8xf32>
    %111 = tpu.matmul %109, %110, %cst_33 {dimension_numbers = #tpu.dot_dimension_numbers<[1], [0], [0], [1], [0, 0, 1, 1], [], []>} : vector<16x16xf32>, vector<16x8xf32>, vector<16x8xf32> -> vector<16x8xf32>
    %112 = vector.extract_strided_slice %60 {offsets = [0, 24], sizes = [16, 8], strides = [1, 1]} : vector<16x32xf32> to vector<16x8xf32>
    %113 = vector.extract_strided_slice %61 {offsets = [0, 24], sizes = [16, 8], strides = [1, 1]} : vector<16x32xf32> to vector<16x8xf32>
    %cst_34 = arith.constant dense<0.000000e+00> : vector<16x16xf32>
    %114 = tpu.matmul %112, %113, %cst_34 {dimension_numbers = #tpu.dot_dimension_numbers<[1], [1], [0], [0], [0, 0, 1, 0], [], []>} : vector<16x8xf32>, vector<16x8xf32>, vector<16x16xf32> -> vector<16x16xf32>
    %115 = arith.addf %114, %51 : vector<16x16xf32>
    %cst_35 = arith.constant dense<0xFF800000> : vector<16xf32>
    %116 = vector.multi_reduction <maximumf>, %115, %cst_35 [1] : vector<16x16xf32> to vector<16xf32>
    %117 = vector.shape_cast %116 : vector<16xf32> to vector<16x1xf32>
    %118 = vector.broadcast %117 : vector<16x1xf32> to vector<16x16xf32>
    %119 = arith.subf %115, %118 : vector<16x16xf32>
    %120 = math.exp %119 : vector<16x16xf32>
    %cst_36 = arith.constant dense<0.000000e+00> : vector<16xf32>
    %121 = vector.multi_reduction <add>, %120, %cst_36 [1] : vector<16x16xf32> to vector<16xf32>
    %122 = vector.shape_cast %121 : vector<16xf32> to vector<16x1xf32>
    %123 = tpu.reciprocal %122 {approx = true} : vector<16x1xf32> -> vector<16x1xf32>
    %124 = vector.broadcast %123 : vector<16x1xf32> to vector<16x16xf32>
    %125 = arith.mulf %120, %124 : vector<16x16xf32>
    %126 = vector.extract_strided_slice %62 {offsets = [0, 24], sizes = [16, 8], strides = [1, 1]} : vector<16x32xf32> to vector<16x8xf32>
    %cst_37 = arith.constant dense<0.000000e+00> : vector<16x8xf32>
    %127 = tpu.matmul %125, %126, %cst_37 {dimension_numbers = #tpu.dot_dimension_numbers<[1], [0], [0], [1], [0, 0, 1, 1], [], []>} : vector<16x16xf32>, vector<16x8xf32>, vector<16x8xf32> -> vector<16x8xf32>
    %128 = tpu.concatenate %79, %95, %111, %127 in 1 : vector<16x8xf32>, vector<16x8xf32>, vector<16x8xf32>, vector<16x8xf32> -> vector<16x32xf32>
    %cst_38 = arith.constant dense<0.000000e+00> : vector<16x32xf32>
    %129 = tpu.matmul %128, %63, %cst_38 {dimension_numbers = #tpu.dot_dimension_numbers<[1], [0], [0], [1], [0, 0, 1, 1], [], []>} : vector<16x32xf32>, vector<32x32xf32>, vector<16x32xf32> -> vector<16x32xf32>
    %c3 = arith.constant 3 : index
    %c0_39 = arith.constant 0 : index
    %130 = vector.load %arg3[%c3, %c0_39] : memref<32x128xf32, #tpu.memory_space<vmem>>, vector<1x32xf32>
    %131 = vector.broadcast %130 : vector<1x32xf32> to vector<16x32xf32>
    %132 = arith.addf %129, %131 : vector<16x32xf32>
    %133 = arith.addf %25, %132 : vector<16x32xf32>
    %c4 = arith.constant 4 : index
    %c0_40 = arith.constant 0 : index
    %134 = vector.load %arg3[%c4, %c0_40] : memref<32x128xf32, #tpu.memory_space<vmem>>, vector<1x32xf32>
    %c5 = arith.constant 5 : index
    %c0_41 = arith.constant 0 : index
    %135 = vector.load %arg3[%c5, %c0_41] : memref<32x128xf32, #tpu.memory_space<vmem>>, vector<1x32xf32>
    %cst_42 = arith.constant dense<0.000000e+00> : vector<16xf32>
    %136 = vector.multi_reduction <add>, %133, %cst_42 [1] : vector<16x32xf32> to vector<16xf32>
    %137 = vector.shape_cast %136 : vector<16xf32> to vector<16x1xf32>
    %cst_43 = arith.constant 3.200000e+01 : f32
    %138 = vector.broadcast %cst_43 : f32 to vector<16x1xf32>
    %139 = arith.divf %137, %138 : vector<16x1xf32>
    %140 = vector.broadcast %139 : vector<16x1xf32> to vector<16x32xf32>
    %141 = arith.subf %133, %140 : vector<16x32xf32>
    %142 = arith.mulf %141, %141 : vector<16x32xf32>
    %cst_44 = arith.constant dense<0.000000e+00> : vector<16xf32>
    %143 = vector.multi_reduction <add>, %142, %cst_44 [1] : vector<16x32xf32> to vector<16xf32>
    %144 = vector.shape_cast %143 : vector<16xf32> to vector<16x1xf32>
    %cst_45 = arith.constant 3.200000e+01 : f32
    %145 = vector.broadcast %cst_45 : f32 to vector<16x1xf32>
    %146 = arith.divf %144, %145 : vector<16x1xf32>
    %147 = vector.broadcast %139 : vector<16x1xf32> to vector<16x32xf32>
    %148 = arith.subf %133, %147 : vector<16x32xf32>
    %cst_46 = arith.constant 9.99999974E-6 : f32
    %149 = vector.broadcast %cst_46 : f32 to vector<16x1xf32>
    %150 = arith.addf %146, %149 : vector<16x1xf32>
    %151 = math.rsqrt %150 : vector<16x1xf32>
    %152 = vector.broadcast %151 : vector<16x1xf32> to vector<16x32xf32>
    %153 = arith.mulf %148, %152 : vector<16x32xf32>
    %154 = vector.broadcast %134 : vector<1x32xf32> to vector<16x32xf32>
    %155 = arith.mulf %153, %154 : vector<16x32xf32>
    %156 = vector.broadcast %135 : vector<1x32xf32> to vector<16x32xf32>
    %157 = arith.addf %155, %156 : vector<16x32xf32>
    %c64 = arith.constant 64 : index
    %c0_47 = arith.constant 0 : index
    %158 = vector.load %arg2[%c64, %c0_47] : memref<576x128xf32, #tpu.memory_space<vmem>>, vector<32x64xf32>
    %cst_48 = arith.constant dense<0.000000e+00> : vector<16x64xf32>
    %159 = tpu.matmul %157, %158, %cst_48 {dimension_numbers = #tpu.dot_dimension_numbers<[1], [0], [0], [1], [0, 0, 1, 1], [], []>} : vector<16x32xf32>, vector<32x64xf32>, vector<16x64xf32> -> vector<16x64xf32>
    %c6 = arith.constant 6 : index
    %c0_49 = arith.constant 0 : index
    %160 = vector.load %arg3[%c6, %c0_49] : memref<32x128xf32, #tpu.memory_space<vmem>>, vector<1x64xf32>
    %161 = vector.broadcast %160 : vector<1x64xf32> to vector<16x64xf32>
    %162 = arith.addf %159, %161 : vector<16x64xf32>
    %cst_50 = arith.constant 5.000000e-01 : f32
    %163 = vector.broadcast %cst_50 : f32 to vector<16x64xf32>
    %164 = arith.mulf %163, %162 : vector<16x64xf32>
    %cst_51 = arith.constant 0.707106769 : f32
    %165 = vector.broadcast %cst_51 : f32 to vector<16x64xf32>
    %166 = arith.mulf %162, %165 : vector<16x64xf32>
    %cst_52 = arith.constant 0.000000e+00 : f32
    %167 = vector.broadcast %cst_52 : f32 to vector<16x64xf32>
    %168 = arith.cmpf oge, %166, %167 : vector<16x64xf32>
    %cst_53 = arith.constant 1.000000e+00 : f32
    %cst_54 = arith.constant -1.000000e+00 : f32
    %169 = vector.broadcast %cst_53 : f32 to vector<16x64xf32>
    %170 = vector.broadcast %cst_54 : f32 to vector<16x64xf32>
    %171 = arith.select %168, %169, %170 : vector<16x64xi1>, vector<16x64xf32>
    %172 = math.absf %166 : vector<16x64xf32>
    %cst_55 = arith.constant 0.327591091 : f32
    %173 = vector.broadcast %cst_55 : f32 to vector<16x64xf32>
    %174 = arith.mulf %173, %172 : vector<16x64xf32>
    %cst_56 = arith.constant 1.000000e+00 : f32
    %175 = vector.broadcast %cst_56 : f32 to vector<16x64xf32>
    %176 = arith.addf %175, %174 : vector<16x64xf32>
    %cst_57 = arith.constant 1.000000e+00 : f32
    %177 = vector.broadcast %cst_57 : f32 to vector<16x64xf32>
    %178 = arith.divf %177, %176 : vector<16x64xf32>
    %cst_58 = arith.constant 1.06140542 : f32
    %179 = vector.broadcast %cst_58 : f32 to vector<16x64xf32>
    %180 = arith.mulf %178, %179 : vector<16x64xf32>
    %cst_59 = arith.constant -1.45315206 : f32
    %181 = vector.broadcast %cst_59 : f32 to vector<16x64xf32>
    %182 = arith.addf %181, %180 : vector<16x64xf32>
    %183 = arith.mulf %178, %182 : vector<16x64xf32>
    %cst_60 = arith.constant 1.42141378 : f32
    %184 = vector.broadcast %cst_60 : f32 to vector<16x64xf32>
    %185 = arith.addf %184, %183 : vector<16x64xf32>
    %186 = arith.mulf %178, %185 : vector<16x64xf32>
    %cst_61 = arith.constant -0.284496725 : f32
    %187 = vector.broadcast %cst_61 : f32 to vector<16x64xf32>
    %188 = arith.addf %187, %186 : vector<16x64xf32>
    %189 = arith.mulf %178, %188 : vector<16x64xf32>
    %cst_62 = arith.constant 0.254829586 : f32
    %190 = vector.broadcast %cst_62 : f32 to vector<16x64xf32>
    %191 = arith.addf %190, %189 : vector<16x64xf32>
    %192 = arith.mulf %178, %191 : vector<16x64xf32>
    %cst_63 = arith.constant 0.000000e+00 : f32
    %193 = vector.broadcast %cst_63 : f32 to vector<16x64xf32>
    %194 = arith.subf %193, %172 : vector<16x64xf32>
    %195 = arith.mulf %194, %172 : vector<16x64xf32>
    %196 = math.exp %195 : vector<16x64xf32>
    %197 = arith.mulf %192, %196 : vector<16x64xf32>
    %cst_64 = arith.constant 1.000000e+00 : f32
    %198 = vector.broadcast %cst_64 : f32 to vector<16x64xf32>
    %199 = arith.subf %198, %197 : vector<16x64xf32>
    %200 = arith.mulf %171, %199 : vector<16x64xf32>
    %cst_65 = arith.constant 1.000000e+00 : f32
    %201 = vector.broadcast %cst_65 : f32 to vector<16x64xf32>
    %202 = arith.addf %201, %200 : vector<16x64xf32>
    %203 = arith.mulf %164, %202 : vector<16x64xf32>
    %c96 = arith.constant 96 : index
    %c0_66 = arith.constant 0 : index
    %204 = vector.load %arg2[%c96, %c0_66] : memref<576x128xf32, #tpu.memory_space<vmem>>, vector<64x32xf32>
    %cst_67 = arith.constant dense<0.000000e+00> : vector<16x32xf32>
    %205 = tpu.matmul %203, %204, %cst_67 {dimension_numbers = #tpu.dot_dimension_numbers<[1], [0], [0], [1], [0, 0, 1, 1], [], []>} : vector<16x64xf32>, vector<64x32xf32>, vector<16x32xf32> -> vector<16x32xf32>
    %c7 = arith.constant 7 : index
    %c0_68 = arith.constant 0 : index
    %206 = vector.load %arg3[%c7, %c0_68] : memref<32x128xf32, #tpu.memory_space<vmem>>, vector<1x32xf32>
    %207 = vector.broadcast %206 : vector<1x32xf32> to vector<16x32xf32>
    %208 = arith.addf %205, %207 : vector<16x32xf32>
    %209 = arith.addf %157, %208 : vector<16x32xf32>
    %c8 = arith.constant 8 : index
    %c0_69 = arith.constant 0 : index
    %210 = vector.load %arg3[%c8, %c0_69] : memref<32x128xf32, #tpu.memory_space<vmem>>, vector<1x32xf32>
    %c9 = arith.constant 9 : index
    %c0_70 = arith.constant 0 : index
    %211 = vector.load %arg3[%c9, %c0_70] : memref<32x128xf32, #tpu.memory_space<vmem>>, vector<1x32xf32>
    %cst_71 = arith.constant dense<0.000000e+00> : vector<16xf32>
    %212 = vector.multi_reduction <add>, %209, %cst_71 [1] : vector<16x32xf32> to vector<16xf32>
    %213 = vector.shape_cast %212 : vector<16xf32> to vector<16x1xf32>
    %cst_72 = arith.constant 3.200000e+01 : f32
    %214 = vector.broadcast %cst_72 : f32 to vector<16x1xf32>
    %215 = arith.divf %213, %214 : vector<16x1xf32>
    %216 = vector.broadcast %215 : vector<16x1xf32> to vector<16x32xf32>
    %217 = arith.subf %209, %216 : vector<16x32xf32>
    %218 = arith.mulf %217, %217 : vector<16x32xf32>
    %cst_73 = arith.constant dense<0.000000e+00> : vector<16xf32>
    %219 = vector.multi_reduction <add>, %218, %cst_73 [1] : vector<16x32xf32> to vector<16xf32>
    %220 = vector.shape_cast %219 : vector<16xf32> to vector<16x1xf32>
    %cst_74 = arith.constant 3.200000e+01 : f32
    %221 = vector.broadcast %cst_74 : f32 to vector<16x1xf32>
    %222 = arith.divf %220, %221 : vector<16x1xf32>
    %223 = vector.broadcast %215 : vector<16x1xf32> to vector<16x32xf32>
    %224 = arith.subf %209, %223 : vector<16x32xf32>
    %cst_75 = arith.constant 9.99999974E-6 : f32
    %225 = vector.broadcast %cst_75 : f32 to vector<16x1xf32>
    %226 = arith.addf %222, %225 : vector<16x1xf32>
    %227 = math.rsqrt %226 : vector<16x1xf32>
    %228 = vector.broadcast %227 : vector<16x1xf32> to vector<16x32xf32>
    %229 = arith.mulf %224, %228 : vector<16x32xf32>
    %230 = vector.broadcast %210 : vector<1x32xf32> to vector<16x32xf32>
    %231 = arith.mulf %229, %230 : vector<16x32xf32>
    %232 = vector.broadcast %211 : vector<1x32xf32> to vector<16x32xf32>
    %233 = arith.addf %231, %232 : vector<16x32xf32>
    %c160 = arith.constant 160 : index
    %c0_76 = arith.constant 0 : index
    %234 = vector.load %arg2[%c160, %c0_76] : memref<576x128xf32, #tpu.memory_space<vmem>>, vector<32x96xf32>
    %cst_77 = arith.constant dense<0.000000e+00> : vector<16x96xf32>
    %235 = tpu.matmul %50, %234, %cst_77 {dimension_numbers = #tpu.dot_dimension_numbers<[1], [0], [0], [1], [0, 0, 1, 1], [], []>} : vector<16x32xf32>, vector<32x96xf32>, vector<16x96xf32> -> vector<16x96xf32>
    %c10 = arith.constant 10 : index
    %c0_78 = arith.constant 0 : index
    %236 = vector.load %arg3[%c10, %c0_78] : memref<32x128xf32, #tpu.memory_space<vmem>>, vector<1x96xf32>
    %237 = vector.broadcast %236 : vector<1x96xf32> to vector<16x96xf32>
    %238 = arith.addf %235, %237 : vector<16x96xf32>
    %239 = vector.extract_strided_slice %238 {offsets = [0, 0], sizes = [16, 32], strides = [1, 1]} : vector<16x96xf32> to vector<16x32xf32>
    %240 = vector.extract_strided_slice %238 {offsets = [0, 32], sizes = [16, 32], strides = [1, 1]} : vector<16x96xf32> to vector<16x32xf32>
    %241 = vector.extract_strided_slice %238 {offsets = [0, 64], sizes = [16, 32], strides = [1, 1]} : vector<16x96xf32> to vector<16x32xf32>
    %c192 = arith.constant 192 : index
    %c0_79 = arith.constant 0 : index
    %242 = vector.load %arg2[%c192, %c0_79] : memref<576x128xf32, #tpu.memory_space<vmem>>, vector<32x32xf32>
    %243 = vector.extract_strided_slice %239 {offsets = [0, 0], sizes = [16, 8], strides = [1, 1]} : vector<16x32xf32> to vector<16x8xf32>
    %244 = vector.extract_strided_slice %240 {offsets = [0, 0], sizes = [16, 8], strides = [1, 1]} : vector<16x32xf32> to vector<16x8xf32>
    %cst_80 = arith.constant dense<0.000000e+00> : vector<16x16xf32>
    %245 = tpu.matmul %243, %244, %cst_80 {dimension_numbers = #tpu.dot_dimension_numbers<[1], [1], [0], [0], [0, 0, 1, 0], [], []>} : vector<16x8xf32>, vector<16x8xf32>, vector<16x16xf32> -> vector<16x16xf32>
    %246 = arith.addf %245, %52 : vector<16x16xf32>
    %cst_81 = arith.constant dense<0xFF800000> : vector<16xf32>
    %247 = vector.multi_reduction <maximumf>, %246, %cst_81 [1] : vector<16x16xf32> to vector<16xf32>
    %248 = vector.shape_cast %247 : vector<16xf32> to vector<16x1xf32>
    %249 = vector.broadcast %248 : vector<16x1xf32> to vector<16x16xf32>
    %250 = arith.subf %246, %249 : vector<16x16xf32>
    %251 = math.exp %250 : vector<16x16xf32>
    %cst_82 = arith.constant dense<0.000000e+00> : vector<16xf32>
    %252 = vector.multi_reduction <add>, %251, %cst_82 [1] : vector<16x16xf32> to vector<16xf32>
    %253 = vector.shape_cast %252 : vector<16xf32> to vector<16x1xf32>
    %254 = tpu.reciprocal %253 {approx = true} : vector<16x1xf32> -> vector<16x1xf32>
    %255 = vector.broadcast %254 : vector<16x1xf32> to vector<16x16xf32>
    %256 = arith.mulf %251, %255 : vector<16x16xf32>
    %257 = vector.extract_strided_slice %241 {offsets = [0, 0], sizes = [16, 8], strides = [1, 1]} : vector<16x32xf32> to vector<16x8xf32>
    %cst_83 = arith.constant dense<0.000000e+00> : vector<16x8xf32>
    %258 = tpu.matmul %256, %257, %cst_83 {dimension_numbers = #tpu.dot_dimension_numbers<[1], [0], [0], [1], [0, 0, 1, 1], [], []>} : vector<16x16xf32>, vector<16x8xf32>, vector<16x8xf32> -> vector<16x8xf32>
    %259 = vector.extract_strided_slice %239 {offsets = [0, 8], sizes = [16, 8], strides = [1, 1]} : vector<16x32xf32> to vector<16x8xf32>
    %260 = vector.extract_strided_slice %240 {offsets = [0, 8], sizes = [16, 8], strides = [1, 1]} : vector<16x32xf32> to vector<16x8xf32>
    %cst_84 = arith.constant dense<0.000000e+00> : vector<16x16xf32>
    %261 = tpu.matmul %259, %260, %cst_84 {dimension_numbers = #tpu.dot_dimension_numbers<[1], [1], [0], [0], [0, 0, 1, 0], [], []>} : vector<16x8xf32>, vector<16x8xf32>, vector<16x16xf32> -> vector<16x16xf32>
    %262 = arith.addf %261, %52 : vector<16x16xf32>
    %cst_85 = arith.constant dense<0xFF800000> : vector<16xf32>
    %263 = vector.multi_reduction <maximumf>, %262, %cst_85 [1] : vector<16x16xf32> to vector<16xf32>
    %264 = vector.shape_cast %263 : vector<16xf32> to vector<16x1xf32>
    %265 = vector.broadcast %264 : vector<16x1xf32> to vector<16x16xf32>
    %266 = arith.subf %262, %265 : vector<16x16xf32>
    %267 = math.exp %266 : vector<16x16xf32>
    %cst_86 = arith.constant dense<0.000000e+00> : vector<16xf32>
    %268 = vector.multi_reduction <add>, %267, %cst_86 [1] : vector<16x16xf32> to vector<16xf32>
    %269 = vector.shape_cast %268 : vector<16xf32> to vector<16x1xf32>
    %270 = tpu.reciprocal %269 {approx = true} : vector<16x1xf32> -> vector<16x1xf32>
    %271 = vector.broadcast %270 : vector<16x1xf32> to vector<16x16xf32>
    %272 = arith.mulf %267, %271 : vector<16x16xf32>
    %273 = vector.extract_strided_slice %241 {offsets = [0, 8], sizes = [16, 8], strides = [1, 1]} : vector<16x32xf32> to vector<16x8xf32>
    %cst_87 = arith.constant dense<0.000000e+00> : vector<16x8xf32>
    %274 = tpu.matmul %272, %273, %cst_87 {dimension_numbers = #tpu.dot_dimension_numbers<[1], [0], [0], [1], [0, 0, 1, 1], [], []>} : vector<16x16xf32>, vector<16x8xf32>, vector<16x8xf32> -> vector<16x8xf32>
    %275 = vector.extract_strided_slice %239 {offsets = [0, 16], sizes = [16, 8], strides = [1, 1]} : vector<16x32xf32> to vector<16x8xf32>
    %276 = vector.extract_strided_slice %240 {offsets = [0, 16], sizes = [16, 8], strides = [1, 1]} : vector<16x32xf32> to vector<16x8xf32>
    %cst_88 = arith.constant dense<0.000000e+00> : vector<16x16xf32>
    %277 = tpu.matmul %275, %276, %cst_88 {dimension_numbers = #tpu.dot_dimension_numbers<[1], [1], [0], [0], [0, 0, 1, 0], [], []>} : vector<16x8xf32>, vector<16x8xf32>, vector<16x16xf32> -> vector<16x16xf32>
    %278 = arith.addf %277, %52 : vector<16x16xf32>
    %cst_89 = arith.constant dense<0xFF800000> : vector<16xf32>
    %279 = vector.multi_reduction <maximumf>, %278, %cst_89 [1] : vector<16x16xf32> to vector<16xf32>
    %280 = vector.shape_cast %279 : vector<16xf32> to vector<16x1xf32>
    %281 = vector.broadcast %280 : vector<16x1xf32> to vector<16x16xf32>
    %282 = arith.subf %278, %281 : vector<16x16xf32>
    %283 = math.exp %282 : vector<16x16xf32>
    %cst_90 = arith.constant dense<0.000000e+00> : vector<16xf32>
    %284 = vector.multi_reduction <add>, %283, %cst_90 [1] : vector<16x16xf32> to vector<16xf32>
    %285 = vector.shape_cast %284 : vector<16xf32> to vector<16x1xf32>
    %286 = tpu.reciprocal %285 {approx = true} : vector<16x1xf32> -> vector<16x1xf32>
    %287 = vector.broadcast %286 : vector<16x1xf32> to vector<16x16xf32>
    %288 = arith.mulf %283, %287 : vector<16x16xf32>
    %289 = vector.extract_strided_slice %241 {offsets = [0, 16], sizes = [16, 8], strides = [1, 1]} : vector<16x32xf32> to vector<16x8xf32>
    %cst_91 = arith.constant dense<0.000000e+00> : vector<16x8xf32>
    %290 = tpu.matmul %288, %289, %cst_91 {dimension_numbers = #tpu.dot_dimension_numbers<[1], [0], [0], [1], [0, 0, 1, 1], [], []>} : vector<16x16xf32>, vector<16x8xf32>, vector<16x8xf32> -> vector<16x8xf32>
    %291 = vector.extract_strided_slice %239 {offsets = [0, 24], sizes = [16, 8], strides = [1, 1]} : vector<16x32xf32> to vector<16x8xf32>
    %292 = vector.extract_strided_slice %240 {offsets = [0, 24], sizes = [16, 8], strides = [1, 1]} : vector<16x32xf32> to vector<16x8xf32>
    %cst_92 = arith.constant dense<0.000000e+00> : vector<16x16xf32>
    %293 = tpu.matmul %291, %292, %cst_92 {dimension_numbers = #tpu.dot_dimension_numbers<[1], [1], [0], [0], [0, 0, 1, 0], [], []>} : vector<16x8xf32>, vector<16x8xf32>, vector<16x16xf32> -> vector<16x16xf32>
    %294 = arith.addf %293, %52 : vector<16x16xf32>
    %cst_93 = arith.constant dense<0xFF800000> : vector<16xf32>
    %295 = vector.multi_reduction <maximumf>, %294, %cst_93 [1] : vector<16x16xf32> to vector<16xf32>
    %296 = vector.shape_cast %295 : vector<16xf32> to vector<16x1xf32>
    %297 = vector.broadcast %296 : vector<16x1xf32> to vector<16x16xf32>
    %298 = arith.subf %294, %297 : vector<16x16xf32>
    %299 = math.exp %298 : vector<16x16xf32>
    %cst_94 = arith.constant dense<0.000000e+00> : vector<16xf32>
    %300 = vector.multi_reduction <add>, %299, %cst_94 [1] : vector<16x16xf32> to vector<16xf32>
    %301 = vector.shape_cast %300 : vector<16xf32> to vector<16x1xf32>
    %302 = tpu.reciprocal %301 {approx = true} : vector<16x1xf32> -> vector<16x1xf32>
    %303 = vector.broadcast %302 : vector<16x1xf32> to vector<16x16xf32>
    %304 = arith.mulf %299, %303 : vector<16x16xf32>
    %305 = vector.extract_strided_slice %241 {offsets = [0, 24], sizes = [16, 8], strides = [1, 1]} : vector<16x32xf32> to vector<16x8xf32>
    %cst_95 = arith.constant dense<0.000000e+00> : vector<16x8xf32>
    %306 = tpu.matmul %304, %305, %cst_95 {dimension_numbers = #tpu.dot_dimension_numbers<[1], [0], [0], [1], [0, 0, 1, 1], [], []>} : vector<16x16xf32>, vector<16x8xf32>, vector<16x8xf32> -> vector<16x8xf32>
    %307 = tpu.concatenate %258, %274, %290, %306 in 1 : vector<16x8xf32>, vector<16x8xf32>, vector<16x8xf32>, vector<16x8xf32> -> vector<16x32xf32>
    %cst_96 = arith.constant dense<0.000000e+00> : vector<16x32xf32>
    %308 = tpu.matmul %307, %242, %cst_96 {dimension_numbers = #tpu.dot_dimension_numbers<[1], [0], [0], [1], [0, 0, 1, 1], [], []>} : vector<16x32xf32>, vector<32x32xf32>, vector<16x32xf32> -> vector<16x32xf32>
    %c11 = arith.constant 11 : index
    %c0_97 = arith.constant 0 : index
    %309 = vector.load %arg3[%c11, %c0_97] : memref<32x128xf32, #tpu.memory_space<vmem>>, vector<1x32xf32>
    %310 = vector.broadcast %309 : vector<1x32xf32> to vector<16x32xf32>
    %311 = arith.addf %308, %310 : vector<16x32xf32>
    %312 = arith.addf %50, %311 : vector<16x32xf32>
    %c12 = arith.constant 12 : index
    %c0_98 = arith.constant 0 : index
    %313 = vector.load %arg3[%c12, %c0_98] : memref<32x128xf32, #tpu.memory_space<vmem>>, vector<1x32xf32>
    %c13 = arith.constant 13 : index
    %c0_99 = arith.constant 0 : index
    %314 = vector.load %arg3[%c13, %c0_99] : memref<32x128xf32, #tpu.memory_space<vmem>>, vector<1x32xf32>
    %cst_100 = arith.constant dense<0.000000e+00> : vector<16xf32>
    %315 = vector.multi_reduction <add>, %312, %cst_100 [1] : vector<16x32xf32> to vector<16xf32>
    %316 = vector.shape_cast %315 : vector<16xf32> to vector<16x1xf32>
    %cst_101 = arith.constant 3.200000e+01 : f32
    %317 = vector.broadcast %cst_101 : f32 to vector<16x1xf32>
    %318 = arith.divf %316, %317 : vector<16x1xf32>
    %319 = vector.broadcast %318 : vector<16x1xf32> to vector<16x32xf32>
    %320 = arith.subf %312, %319 : vector<16x32xf32>
    %321 = arith.mulf %320, %320 : vector<16x32xf32>
    %cst_102 = arith.constant dense<0.000000e+00> : vector<16xf32>
    %322 = vector.multi_reduction <add>, %321, %cst_102 [1] : vector<16x32xf32> to vector<16xf32>
    %323 = vector.shape_cast %322 : vector<16xf32> to vector<16x1xf32>
    %cst_103 = arith.constant 3.200000e+01 : f32
    %324 = vector.broadcast %cst_103 : f32 to vector<16x1xf32>
    %325 = arith.divf %323, %324 : vector<16x1xf32>
    %326 = vector.broadcast %318 : vector<16x1xf32> to vector<16x32xf32>
    %327 = arith.subf %312, %326 : vector<16x32xf32>
    %cst_104 = arith.constant 9.99999974E-6 : f32
    %328 = vector.broadcast %cst_104 : f32 to vector<16x1xf32>
    %329 = arith.addf %325, %328 : vector<16x1xf32>
    %330 = math.rsqrt %329 : vector<16x1xf32>
    %331 = vector.broadcast %330 : vector<16x1xf32> to vector<16x32xf32>
    %332 = arith.mulf %327, %331 : vector<16x32xf32>
    %333 = vector.broadcast %313 : vector<1x32xf32> to vector<16x32xf32>
    %334 = arith.mulf %332, %333 : vector<16x32xf32>
    %335 = vector.broadcast %314 : vector<1x32xf32> to vector<16x32xf32>
    %336 = arith.addf %334, %335 : vector<16x32xf32>
    %c224 = arith.constant 224 : index
    %c0_105 = arith.constant 0 : index
    %337 = vector.load %arg2[%c224, %c0_105] : memref<576x128xf32, #tpu.memory_space<vmem>>, vector<32x32xf32>
    %cst_106 = arith.constant dense<0.000000e+00> : vector<16x32xf32>
    %338 = tpu.matmul %336, %337, %cst_106 {dimension_numbers = #tpu.dot_dimension_numbers<[1], [0], [0], [1], [0, 0, 1, 1], [], []>} : vector<16x32xf32>, vector<32x32xf32>, vector<16x32xf32> -> vector<16x32xf32>
    %c14 = arith.constant 14 : index
    %c0_107 = arith.constant 0 : index
    %339 = vector.load %arg3[%c14, %c0_107] : memref<32x128xf32, #tpu.memory_space<vmem>>, vector<1x32xf32>
    %340 = vector.broadcast %339 : vector<1x32xf32> to vector<16x32xf32>
    %341 = arith.addf %338, %340 : vector<16x32xf32>
    %c256 = arith.constant 256 : index
    %c0_108 = arith.constant 0 : index
    %342 = vector.load %arg2[%c256, %c0_108] : memref<576x128xf32, #tpu.memory_space<vmem>>, vector<32x64xf32>
    %cst_109 = arith.constant dense<0.000000e+00> : vector<16x64xf32>
    %343 = tpu.matmul %233, %342, %cst_109 {dimension_numbers = #tpu.dot_dimension_numbers<[1], [0], [0], [1], [0, 0, 1, 1], [], []>} : vector<16x32xf32>, vector<32x64xf32>, vector<16x64xf32> -> vector<16x64xf32>
    %c15 = arith.constant 15 : index
    %c0_110 = arith.constant 0 : index
    %344 = vector.load %arg3[%c15, %c0_110] : memref<32x128xf32, #tpu.memory_space<vmem>>, vector<1x64xf32>
    %345 = vector.broadcast %344 : vector<1x64xf32> to vector<16x64xf32>
    %346 = arith.addf %343, %345 : vector<16x64xf32>
    %347 = vector.extract_strided_slice %346 {offsets = [0, 0], sizes = [16, 32], strides = [1, 1]} : vector<16x64xf32> to vector<16x32xf32>
    %348 = vector.extract_strided_slice %346 {offsets = [0, 32], sizes = [16, 32], strides = [1, 1]} : vector<16x64xf32> to vector<16x32xf32>
    %c288 = arith.constant 288 : index
    %c0_111 = arith.constant 0 : index
    %349 = vector.load %arg2[%c288, %c0_111] : memref<576x128xf32, #tpu.memory_space<vmem>>, vector<32x32xf32>
    %350 = vector.extract_strided_slice %341 {offsets = [0, 0], sizes = [16, 8], strides = [1, 1]} : vector<16x32xf32> to vector<16x8xf32>
    %351 = vector.extract_strided_slice %347 {offsets = [0, 0], sizes = [16, 8], strides = [1, 1]} : vector<16x32xf32> to vector<16x8xf32>
    %cst_112 = arith.constant dense<0.000000e+00> : vector<16x16xf32>
    %352 = tpu.matmul %350, %351, %cst_112 {dimension_numbers = #tpu.dot_dimension_numbers<[1], [1], [0], [0], [0, 0, 1, 0], [], []>} : vector<16x8xf32>, vector<16x8xf32>, vector<16x16xf32> -> vector<16x16xf32>
    %353 = arith.addf %352, %53 : vector<16x16xf32>
    %cst_113 = arith.constant dense<0xFF800000> : vector<16xf32>
    %354 = vector.multi_reduction <maximumf>, %353, %cst_113 [1] : vector<16x16xf32> to vector<16xf32>
    %355 = vector.shape_cast %354 : vector<16xf32> to vector<16x1xf32>
    %356 = vector.broadcast %355 : vector<16x1xf32> to vector<16x16xf32>
    %357 = arith.subf %353, %356 : vector<16x16xf32>
    %358 = math.exp %357 : vector<16x16xf32>
    %cst_114 = arith.constant dense<0.000000e+00> : vector<16xf32>
    %359 = vector.multi_reduction <add>, %358, %cst_114 [1] : vector<16x16xf32> to vector<16xf32>
    %360 = vector.shape_cast %359 : vector<16xf32> to vector<16x1xf32>
    %361 = tpu.reciprocal %360 {approx = true} : vector<16x1xf32> -> vector<16x1xf32>
    %362 = vector.broadcast %361 : vector<16x1xf32> to vector<16x16xf32>
    %363 = arith.mulf %358, %362 : vector<16x16xf32>
    %364 = vector.extract_strided_slice %348 {offsets = [0, 0], sizes = [16, 8], strides = [1, 1]} : vector<16x32xf32> to vector<16x8xf32>
    %cst_115 = arith.constant dense<0.000000e+00> : vector<16x8xf32>
    %365 = tpu.matmul %363, %364, %cst_115 {dimension_numbers = #tpu.dot_dimension_numbers<[1], [0], [0], [1], [0, 0, 1, 1], [], []>} : vector<16x16xf32>, vector<16x8xf32>, vector<16x8xf32> -> vector<16x8xf32>
    %366 = vector.extract_strided_slice %341 {offsets = [0, 8], sizes = [16, 8], strides = [1, 1]} : vector<16x32xf32> to vector<16x8xf32>
    %367 = vector.extract_strided_slice %347 {offsets = [0, 8], sizes = [16, 8], strides = [1, 1]} : vector<16x32xf32> to vector<16x8xf32>
    %cst_116 = arith.constant dense<0.000000e+00> : vector<16x16xf32>
    %368 = tpu.matmul %366, %367, %cst_116 {dimension_numbers = #tpu.dot_dimension_numbers<[1], [1], [0], [0], [0, 0, 1, 0], [], []>} : vector<16x8xf32>, vector<16x8xf32>, vector<16x16xf32> -> vector<16x16xf32>
    %369 = arith.addf %368, %53 : vector<16x16xf32>
    %cst_117 = arith.constant dense<0xFF800000> : vector<16xf32>
    %370 = vector.multi_reduction <maximumf>, %369, %cst_117 [1] : vector<16x16xf32> to vector<16xf32>
    %371 = vector.shape_cast %370 : vector<16xf32> to vector<16x1xf32>
    %372 = vector.broadcast %371 : vector<16x1xf32> to vector<16x16xf32>
    %373 = arith.subf %369, %372 : vector<16x16xf32>
    %374 = math.exp %373 : vector<16x16xf32>
    %cst_118 = arith.constant dense<0.000000e+00> : vector<16xf32>
    %375 = vector.multi_reduction <add>, %374, %cst_118 [1] : vector<16x16xf32> to vector<16xf32>
    %376 = vector.shape_cast %375 : vector<16xf32> to vector<16x1xf32>
    %377 = tpu.reciprocal %376 {approx = true} : vector<16x1xf32> -> vector<16x1xf32>
    %378 = vector.broadcast %377 : vector<16x1xf32> to vector<16x16xf32>
    %379 = arith.mulf %374, %378 : vector<16x16xf32>
    %380 = vector.extract_strided_slice %348 {offsets = [0, 8], sizes = [16, 8], strides = [1, 1]} : vector<16x32xf32> to vector<16x8xf32>
    %cst_119 = arith.constant dense<0.000000e+00> : vector<16x8xf32>
    %381 = tpu.matmul %379, %380, %cst_119 {dimension_numbers = #tpu.dot_dimension_numbers<[1], [0], [0], [1], [0, 0, 1, 1], [], []>} : vector<16x16xf32>, vector<16x8xf32>, vector<16x8xf32> -> vector<16x8xf32>
    %382 = vector.extract_strided_slice %341 {offsets = [0, 16], sizes = [16, 8], strides = [1, 1]} : vector<16x32xf32> to vector<16x8xf32>
    %383 = vector.extract_strided_slice %347 {offsets = [0, 16], sizes = [16, 8], strides = [1, 1]} : vector<16x32xf32> to vector<16x8xf32>
    %cst_120 = arith.constant dense<0.000000e+00> : vector<16x16xf32>
    %384 = tpu.matmul %382, %383, %cst_120 {dimension_numbers = #tpu.dot_dimension_numbers<[1], [1], [0], [0], [0, 0, 1, 0], [], []>} : vector<16x8xf32>, vector<16x8xf32>, vector<16x16xf32> -> vector<16x16xf32>
    %385 = arith.addf %384, %53 : vector<16x16xf32>
    %cst_121 = arith.constant dense<0xFF800000> : vector<16xf32>
    %386 = vector.multi_reduction <maximumf>, %385, %cst_121 [1] : vector<16x16xf32> to vector<16xf32>
    %387 = vector.shape_cast %386 : vector<16xf32> to vector<16x1xf32>
    %388 = vector.broadcast %387 : vector<16x1xf32> to vector<16x16xf32>
    %389 = arith.subf %385, %388 : vector<16x16xf32>
    %390 = math.exp %389 : vector<16x16xf32>
    %cst_122 = arith.constant dense<0.000000e+00> : vector<16xf32>
    %391 = vector.multi_reduction <add>, %390, %cst_122 [1] : vector<16x16xf32> to vector<16xf32>
    %392 = vector.shape_cast %391 : vector<16xf32> to vector<16x1xf32>
    %393 = tpu.reciprocal %392 {approx = true} : vector<16x1xf32> -> vector<16x1xf32>
    %394 = vector.broadcast %393 : vector<16x1xf32> to vector<16x16xf32>
    %395 = arith.mulf %390, %394 : vector<16x16xf32>
    %396 = vector.extract_strided_slice %348 {offsets = [0, 16], sizes = [16, 8], strides = [1, 1]} : vector<16x32xf32> to vector<16x8xf32>
    %cst_123 = arith.constant dense<0.000000e+00> : vector<16x8xf32>
    %397 = tpu.matmul %395, %396, %cst_123 {dimension_numbers = #tpu.dot_dimension_numbers<[1], [0], [0], [1], [0, 0, 1, 1], [], []>} : vector<16x16xf32>, vector<16x8xf32>, vector<16x8xf32> -> vector<16x8xf32>
    %398 = vector.extract_strided_slice %341 {offsets = [0, 24], sizes = [16, 8], strides = [1, 1]} : vector<16x32xf32> to vector<16x8xf32>
    %399 = vector.extract_strided_slice %347 {offsets = [0, 24], sizes = [16, 8], strides = [1, 1]} : vector<16x32xf32> to vector<16x8xf32>
    %cst_124 = arith.constant dense<0.000000e+00> : vector<16x16xf32>
    %400 = tpu.matmul %398, %399, %cst_124 {dimension_numbers = #tpu.dot_dimension_numbers<[1], [1], [0], [0], [0, 0, 1, 0], [], []>} : vector<16x8xf32>, vector<16x8xf32>, vector<16x16xf32> -> vector<16x16xf32>
    %401 = arith.addf %400, %53 : vector<16x16xf32>
    %cst_125 = arith.constant dense<0xFF800000> : vector<16xf32>
    %402 = vector.multi_reduction <maximumf>, %401, %cst_125 [1] : vector<16x16xf32> to vector<16xf32>
    %403 = vector.shape_cast %402 : vector<16xf32> to vector<16x1xf32>
    %404 = vector.broadcast %403 : vector<16x1xf32> to vector<16x16xf32>
    %405 = arith.subf %401, %404 : vector<16x16xf32>
    %406 = math.exp %405 : vector<16x16xf32>
    %cst_126 = arith.constant dense<0.000000e+00> : vector<16xf32>
    %407 = vector.multi_reduction <add>, %406, %cst_126 [1] : vector<16x16xf32> to vector<16xf32>
    %408 = vector.shape_cast %407 : vector<16xf32> to vector<16x1xf32>
    %409 = tpu.reciprocal %408 {approx = true} : vector<16x1xf32> -> vector<16x1xf32>
    %410 = vector.broadcast %409 : vector<16x1xf32> to vector<16x16xf32>
    %411 = arith.mulf %406, %410 : vector<16x16xf32>
    %412 = vector.extract_strided_slice %348 {offsets = [0, 24], sizes = [16, 8], strides = [1, 1]} : vector<16x32xf32> to vector<16x8xf32>
    %cst_127 = arith.constant dense<0.000000e+00> : vector<16x8xf32>
    %413 = tpu.matmul %411, %412, %cst_127 {dimension_numbers = #tpu.dot_dimension_numbers<[1], [0], [0], [1], [0, 0, 1, 1], [], []>} : vector<16x16xf32>, vector<16x8xf32>, vector<16x8xf32> -> vector<16x8xf32>
    %414 = tpu.concatenate %365, %381, %397, %413 in 1 : vector<16x8xf32>, vector<16x8xf32>, vector<16x8xf32>, vector<16x8xf32> -> vector<16x32xf32>
    %cst_128 = arith.constant dense<0.000000e+00> : vector<16x32xf32>
    %415 = tpu.matmul %414, %349, %cst_128 {dimension_numbers = #tpu.dot_dimension_numbers<[1], [0], [0], [1], [0, 0, 1, 1], [], []>} : vector<16x32xf32>, vector<32x32xf32>, vector<16x32xf32> -> vector<16x32xf32>
    %c16 = arith.constant 16 : index
    %c0_129 = arith.constant 0 : index
    %416 = vector.load %arg3[%c16, %c0_129] : memref<32x128xf32, #tpu.memory_space<vmem>>, vector<1x32xf32>
    %417 = vector.broadcast %416 : vector<1x32xf32> to vector<16x32xf32>
    %418 = arith.addf %415, %417 : vector<16x32xf32>
    %419 = arith.addf %336, %418 : vector<16x32xf32>
    %c17 = arith.constant 17 : index
    %c0_130 = arith.constant 0 : index
    %420 = vector.load %arg3[%c17, %c0_130] : memref<32x128xf32, #tpu.memory_space<vmem>>, vector<1x32xf32>
    %c18 = arith.constant 18 : index
    %c0_131 = arith.constant 0 : index
    %421 = vector.load %arg3[%c18, %c0_131] : memref<32x128xf32, #tpu.memory_space<vmem>>, vector<1x32xf32>
    %cst_132 = arith.constant dense<0.000000e+00> : vector<16xf32>
    %422 = vector.multi_reduction <add>, %419, %cst_132 [1] : vector<16x32xf32> to vector<16xf32>
    %423 = vector.shape_cast %422 : vector<16xf32> to vector<16x1xf32>
    %cst_133 = arith.constant 3.200000e+01 : f32
    %424 = vector.broadcast %cst_133 : f32 to vector<16x1xf32>
    %425 = arith.divf %423, %424 : vector<16x1xf32>
    %426 = vector.broadcast %425 : vector<16x1xf32> to vector<16x32xf32>
    %427 = arith.subf %419, %426 : vector<16x32xf32>
    %428 = arith.mulf %427, %427 : vector<16x32xf32>
    %cst_134 = arith.constant dense<0.000000e+00> : vector<16xf32>
    %429 = vector.multi_reduction <add>, %428, %cst_134 [1] : vector<16x32xf32> to vector<16xf32>
    %430 = vector.shape_cast %429 : vector<16xf32> to vector<16x1xf32>
    %cst_135 = arith.constant 3.200000e+01 : f32
    %431 = vector.broadcast %cst_135 : f32 to vector<16x1xf32>
    %432 = arith.divf %430, %431 : vector<16x1xf32>
    %433 = vector.broadcast %425 : vector<16x1xf32> to vector<16x32xf32>
    %434 = arith.subf %419, %433 : vector<16x32xf32>
    %cst_136 = arith.constant 9.99999974E-6 : f32
    %435 = vector.broadcast %cst_136 : f32 to vector<16x1xf32>
    %436 = arith.addf %432, %435 : vector<16x1xf32>
    %437 = math.rsqrt %436 : vector<16x1xf32>
    %438 = vector.broadcast %437 : vector<16x1xf32> to vector<16x32xf32>
    %439 = arith.mulf %434, %438 : vector<16x32xf32>
    %440 = vector.broadcast %420 : vector<1x32xf32> to vector<16x32xf32>
    %441 = arith.mulf %439, %440 : vector<16x32xf32>
    %442 = vector.broadcast %421 : vector<1x32xf32> to vector<16x32xf32>
    %443 = arith.addf %441, %442 : vector<16x32xf32>
    %c320 = arith.constant 320 : index
    %c0_137 = arith.constant 0 : index
    %444 = vector.load %arg2[%c320, %c0_137] : memref<576x128xf32, #tpu.memory_space<vmem>>, vector<32x64xf32>
    %cst_138 = arith.constant dense<0.000000e+00> : vector<16x64xf32>
    %445 = tpu.matmul %443, %444, %cst_138 {dimension_numbers = #tpu.dot_dimension_numbers<[1], [0], [0], [1], [0, 0, 1, 1], [], []>} : vector<16x32xf32>, vector<32x64xf32>, vector<16x64xf32> -> vector<16x64xf32>
    %c19 = arith.constant 19 : index
    %c0_139 = arith.constant 0 : index
    %446 = vector.load %arg3[%c19, %c0_139] : memref<32x128xf32, #tpu.memory_space<vmem>>, vector<1x64xf32>
    %447 = vector.broadcast %446 : vector<1x64xf32> to vector<16x64xf32>
    %448 = arith.addf %445, %447 : vector<16x64xf32>
    %cst_140 = arith.constant 0.000000e+00 : f32
    %449 = vector.broadcast %cst_140 : f32 to vector<16x64xf32>
    %450 = arith.maximumf %448, %449 : vector<16x64xf32>
    %c352 = arith.constant 352 : index
    %c0_141 = arith.constant 0 : index
    %451 = vector.load %arg2[%c352, %c0_141] : memref<576x128xf32, #tpu.memory_space<vmem>>, vector<64x32xf32>
    %cst_142 = arith.constant dense<0.000000e+00> : vector<16x32xf32>
    %452 = tpu.matmul %450, %451, %cst_142 {dimension_numbers = #tpu.dot_dimension_numbers<[1], [0], [0], [1], [0, 0, 1, 1], [], []>} : vector<16x64xf32>, vector<64x32xf32>, vector<16x32xf32> -> vector<16x32xf32>
    %c20 = arith.constant 20 : index
    %c0_143 = arith.constant 0 : index
    %453 = vector.load %arg3[%c20, %c0_143] : memref<32x128xf32, #tpu.memory_space<vmem>>, vector<1x32xf32>
    %454 = vector.broadcast %453 : vector<1x32xf32> to vector<16x32xf32>
    %455 = arith.addf %452, %454 : vector<16x32xf32>
    %456 = arith.addf %443, %455 : vector<16x32xf32>
    %c21 = arith.constant 21 : index
    %c0_144 = arith.constant 0 : index
    %457 = vector.load %arg3[%c21, %c0_144] : memref<32x128xf32, #tpu.memory_space<vmem>>, vector<1x32xf32>
    %c22 = arith.constant 22 : index
    %c0_145 = arith.constant 0 : index
    %458 = vector.load %arg3[%c22, %c0_145] : memref<32x128xf32, #tpu.memory_space<vmem>>, vector<1x32xf32>
    %cst_146 = arith.constant dense<0.000000e+00> : vector<16xf32>
    %459 = vector.multi_reduction <add>, %456, %cst_146 [1] : vector<16x32xf32> to vector<16xf32>
    %460 = vector.shape_cast %459 : vector<16xf32> to vector<16x1xf32>
    %cst_147 = arith.constant 3.200000e+01 : f32
    %461 = vector.broadcast %cst_147 : f32 to vector<16x1xf32>
    %462 = arith.divf %460, %461 : vector<16x1xf32>
    %463 = vector.broadcast %462 : vector<16x1xf32> to vector<16x32xf32>
    %464 = arith.subf %456, %463 : vector<16x32xf32>
    %465 = arith.mulf %464, %464 : vector<16x32xf32>
    %cst_148 = arith.constant dense<0.000000e+00> : vector<16xf32>
    %466 = vector.multi_reduction <add>, %465, %cst_148 [1] : vector<16x32xf32> to vector<16xf32>
    %467 = vector.shape_cast %466 : vector<16xf32> to vector<16x1xf32>
    %cst_149 = arith.constant 3.200000e+01 : f32
    %468 = vector.broadcast %cst_149 : f32 to vector<16x1xf32>
    %469 = arith.divf %467, %468 : vector<16x1xf32>
    %470 = vector.broadcast %462 : vector<16x1xf32> to vector<16x32xf32>
    %471 = arith.subf %456, %470 : vector<16x32xf32>
    %cst_150 = arith.constant 9.99999974E-6 : f32
    %472 = vector.broadcast %cst_150 : f32 to vector<16x1xf32>
    %473 = arith.addf %469, %472 : vector<16x1xf32>
    %474 = math.rsqrt %473 : vector<16x1xf32>
    %475 = vector.broadcast %474 : vector<16x1xf32> to vector<16x32xf32>
    %476 = arith.mulf %471, %475 : vector<16x32xf32>
    %477 = vector.broadcast %457 : vector<1x32xf32> to vector<16x32xf32>
    %478 = arith.mulf %476, %477 : vector<16x32xf32>
    %479 = vector.broadcast %458 : vector<1x32xf32> to vector<16x32xf32>
    %480 = arith.addf %478, %479 : vector<16x32xf32>
    %c416 = arith.constant 416 : index
    %c0_151 = arith.constant 0 : index
    %481 = vector.load %arg2[%c416, %c0_151] : memref<576x128xf32, #tpu.memory_space<vmem>>, vector<32x32xf32>
    %cst_152 = arith.constant dense<0.000000e+00> : vector<16x32xf32>
    %482 = tpu.matmul %480, %481, %cst_152 {dimension_numbers = #tpu.dot_dimension_numbers<[1], [0], [0], [1], [0, 0, 1, 1], [], []>} : vector<16x32xf32>, vector<32x32xf32>, vector<16x32xf32> -> vector<16x32xf32>
    %c23 = arith.constant 23 : index
    %c0_153 = arith.constant 0 : index
    %483 = vector.load %arg3[%c23, %c0_153] : memref<32x128xf32, #tpu.memory_space<vmem>>, vector<1x32xf32>
    %484 = vector.broadcast %483 : vector<1x32xf32> to vector<16x32xf32>
    %485 = arith.addf %482, %484 : vector<16x32xf32>
    %486 = math.tanh %485 : vector<16x32xf32>
    %c448 = arith.constant 448 : index
    %c0_154 = arith.constant 0 : index
    %487 = vector.load %arg2[%c448, %c0_154] : memref<576x128xf32, #tpu.memory_space<vmem>>, vector<128x32xf32>
    %cst_155 = arith.constant dense<0.000000e+00> : vector<16x128xf32>
    %488 = tpu.matmul %486, %487, %cst_155 {dimension_numbers = #tpu.dot_dimension_numbers<[1], [1], [0], [0], [0, 0, 1, 0], [], []>} : vector<16x32xf32>, vector<128x32xf32>, vector<16x128xf32> -> vector<16x128xf32>
    %c24 = arith.constant 24 : index
    %c0_156 = arith.constant 0 : index
    %489 = vector.load %arg3[%c24, %c0_156] : memref<32x128xf32, #tpu.memory_space<vmem>>, vector<1x128xf32>
    %490 = vector.broadcast %489 : vector<1x128xf32> to vector<16x128xf32>
    %491 = arith.addf %488, %490 : vector<16x128xf32>
    %cst_157 = arith.constant dense<0xFF800000> : vector<16xf32>
    %492 = vector.multi_reduction <maximumf>, %491, %cst_157 [1] : vector<16x128xf32> to vector<16xf32>
    %493 = vector.shape_cast %492 : vector<16xf32> to vector<16x1xf32>
    %494 = vector.broadcast %493 : vector<16x1xf32> to vector<16x128xf32>
    %495 = arith.subf %491, %494 : vector<16x128xf32>
    %496 = math.exp %495 : vector<16x128xf32>
    %cst_158 = arith.constant dense<0.000000e+00> : vector<16xf32>
    %497 = vector.multi_reduction <add>, %496, %cst_158 [1] : vector<16x128xf32> to vector<16xf32>
    %498 = vector.shape_cast %497 : vector<16xf32> to vector<16x1xf32>
    %499 = math.log %498 : vector<16x1xf32>
    %500 = arith.addf %493, %499 : vector<16x1xf32>
    %cst_159 = arith.constant dense<0.000000e+00> : vector<16xf32>
    %501 = vector.multi_reduction <add>, %54, %cst_159 [1] : vector<16x128xf32> to vector<16xf32>
    %502 = vector.shape_cast %501 : vector<16xf32> to vector<16x1xf32>
    %503 = arith.mulf %491, %54 : vector<16x128xf32>
    %cst_160 = arith.constant dense<0.000000e+00> : vector<16xf32>
    %504 = vector.multi_reduction <add>, %503, %cst_160 [1] : vector<16x128xf32> to vector<16xf32>
    %505 = vector.shape_cast %504 : vector<16xf32> to vector<16x1xf32>
    %506 = arith.mulf %500, %502 : vector<16x1xf32>
    %507 = arith.subf %506, %505 : vector<16x1xf32>
    %508 = vector.shape_cast %507 : vector<16x1xf32> to vector<1x16x1xf32>
    %cst_161 = arith.constant dense<0.000000e+00> : vector<1xf32>
    %509 = vector.multi_reduction <add>, %508, %cst_161 [1, 2] : vector<1x16x1xf32> to vector<1xf32>
    %510 = vector.shape_cast %509 : vector<1xf32> to vector<1x1x1xf32>
    %511 = vector.extract %510[0, 0, 0] : f32 from vector<1x1x1xf32>
    %512 = vector.shape_cast %502 : vector<16x1xf32> to vector<1x16x1xf32>
    %cst_162 = arith.constant dense<0.000000e+00> : vector<1xf32>
    %513 = vector.multi_reduction <add>, %512, %cst_162 [1, 2] : vector<1x16x1xf32> to vector<1xf32>
    %514 = vector.shape_cast %513 : vector<1xf32> to vector<1x1x1xf32>
    %515 = vector.extract %514[0, 0, 0] : f32 from vector<1x1x1xf32>
    %516 = tpu.iota {dimensions = array<i32: 1>} : vector<1x128xi32>
    %c0_i32 = arith.constant 0 : i32
    %517 = vector.broadcast %c0_i32 : i32 to vector<1x128xi32>
    %518 = arith.cmpi eq, %516, %517 : vector<1x128xi32>
    %c1_i32 = arith.constant 1 : i32
    %519 = vector.broadcast %c1_i32 : i32 to vector<1x128xi32>
    %520 = arith.cmpi eq, %516, %519 : vector<1x128xi32>
    %cst_163 = arith.constant 0.000000e+00 : f32
    %521 = vector.broadcast %515 : f32 to vector<1x128xf32>
    %522 = vector.broadcast %cst_163 : f32 to vector<1x128xf32>
    %523 = arith.select %520, %521, %522 : vector<1x128xi1>, vector<1x128xf32>
    %524 = vector.broadcast %511 : f32 to vector<1x128xf32>
    %525 = arith.select %518, %524, %523 : vector<1x128xi1>, vector<1x128xf32>
    %c0_164 = arith.constant 0 : index
    %c0_165 = arith.constant 0 : index
    %526 = vector.load %arg4[%c0_164, %c0_165] : memref<1x128xf32, #tpu.memory_space<vmem>>, vector<1x128xf32>
    tpu.vector_store %arg4[%c0_164, %c0_165], %525 {strides = array<i32>} : memref<1x128xf32, #tpu.memory_space<vmem>>, vector<1x128xf32>,
    return
  }
  func.func @transform_0(%arg0: i32) -> (i32, i32) {
    %c0_i32 = arith.constant 0 : i32
    %c0_i32_0 = arith.constant 0 : i32
    %c0_i32_1 = arith.constant 0 : i32
    return %c0_i32, %c0_i32_0 : i32, i32
  }
  func.func @transform_1(%arg0: i32) -> (i32, i32) {
    %c0_i32 = arith.constant 0 : i32
    %c0_i32_0 = arith.constant 0 : i32
    %c0_i32_1 = arith.constant 0 : i32
    return %c0_i32, %c0_i32_0 : i32, i32
  }
  func.func @transform_2(%arg0: i32) -> (i32, i32) {
    %c0_i32 = arith.constant 0 : i32
    %c0_i32_0 = arith.constant 0 : i32
    %c0_i32_1 = arith.constant 0 : i32
    return %c0_i32, %c0_i32_0 : i32, i32
  }
  func.func @transform_3(%arg0: i32) -> (i32, i32) {
    %c0_i32 = arith.constant 0 : i32
    %c0_i32_0 = arith.constant 0 : i32
    %c0_i32_1 = arith.constant 0 : i32
    return %c0_i32, %c0_i32_0 : i32, i32
  }
}

</mosaic_0001>

<bundles_post_ra>
// kernel: seq2seq_forward.1
= control target key start
LH: loop header
LB: loop body
LE: loop exit
PB: predicated region body
PF: predicated region fallthrough
CT: control target
= control target key end

     0   :  { %vm20_vm0 = vcmask 261120   ;;  %vm220_vm1 = vcmask 64512   ;;  %s5158_s30 = smov 96   ;;  %s5159_s4 = smov 64   ;;  %vm304_vm2 = vcmask 130048   ;;  %vm1042_vm3 = vcmask 195584   ;;  %s6149_s0 = inlined_call_operand.vmem [shape: f32[16,256], index: 0, kind: input, shape index: {}]   ;;  %s6150_s1 = inlined_call_operand.vmem [shape: f32[576,128], index: 1, kind: input, shape index: {}]   ;;  %s6151_s2 = inlined_call_operand.vmem [shape: f32[32,128], index: 2, kind: input, shape index: {}]   ;;  %s6152_s3 = inlined_call_operand.vmem [shape: f32[1,128], index: 3, kind: output, shape index: {}]  }
   0x1   :  { %v5197_v0 = vld [vmem:[%s6149_s0] sm:$0xff]  ;;  %v5202_v1 = vld [vmem:[%s6149_s0 + $0x10] sm:$0xff]  ;;  %v117_v14 = vld [vmem:[%s6150_s1 + $0x18] sm:$0xff]  ;;  %s5160_s5 = smov 88   ;;  %s5161_s6 = smov 120   ;;  %vm1330_vm6 = vcmask 523264  }
   0x2   :  { %v21_v2 = vsel %vm20_vm0, %v5197_v0, 0.0  ;;  %v24_v3 = vsel %vm20_vm0, %v5202_v1, 0.0  ;;  %v116_v15 = vld [vmem:[%s6150_s1 + $0x10] sm:$0xff]  ;;  %4641 = vmatprep.subr.mxu0 %v117_v14  ;;  %v115_v16 = vld [vmem:[%s6150_s1 + $0x8] sm:$0xff]  ;;  %v114_v17 = vld [vmem:[%s6150_s1] sm:$0xff]  ;;  %s5162_s7 = smov 56  }
   0x3   :  { %22 = vadd.xlane.f32.xlu0 %v21_v2  ;;  %4642 = vmatpush3.msra.mxu0 %v117_v14  ;;  %v5227_v25 = vld [vmem:[%s6151_s2] ss:$0 sm:$0xff]  ;;  %v5232_v27 = vld [vmem:[%s6151_s2 + $0x1] ss:$0 sm:$0xff]  ;;  %v4310_v34 = vld [vmem:[%s6151_s2 + $0x2] ss:$0 sm:$0xff] }
   0x4   :  { %4643 = vmatprep.subr.mxu0 %v116_v15  ;;  %s5163_s8 = smov 80   ;;  %s5164_s9 = smov 112   ;;  %vm4270_vm7 = vcmask 7168  }
   0x5   :  { %4644 = vmatpush3.msra.mxu0 %v116_v15  ;;  %s5165_s10 = smov 48   ;;  %s5166_s11 = smov 72  }
   0x6   :  { %4645 = vmatprep.subr.mxu0 %v115_v16  ;;  %s5167_s12 = smov 104   ;;  %s5168_s13 = smov 40  }
   0x7   :  { %25 = vadd.xlane.f32.xlu0 %v24_v3  ;;  %4646 = vmatpush3.msra.mxu0 %v115_v16  ;;  %s5169_s14 = smov 8   ;;  %s5170_s15 = smov 16  }
   0x8   :  { %4647 = vmatprep.subr.mxu0 %v114_v17  ;;  %s5171_s24 = smov 24   ;;  %s5172_s27 = smov 32  }
   0x9   :  { %4648 = vmatpush3.msra.mxu0 %v114_v17 }
  0x8c   :  { %v23_v4 = vpop.xlane.xlu0 %22 }
  0x8d   :  { %v28_v5 = vmul.f32 0.03125, %v23_v4 }
  0x8f   :  { %v30_v6 = vsub.f32 %v5197_v0, %v28_v5 }
  0x90   :  { %v26_v7 = vpop.xlane.xlu0 %25 }
  0x91   :  { %v29_v8 = vmul.f32 0.03125, %v26_v7  ;;  %v32_v9 = vmul.f32 %v30_v6, %v30_v6 }
  0x93   :  { %v31_v10 = vsub.f32 %v5202_v1, %v29_v8  ;;  %v34_v11 = vsel %vm20_vm0, %v32_v9, 0.0 }
  0x94   :  { %35 = vadd.xlane.f32.xlu1 %v34_v11 }
  0x95   :  { %v33_v12 = vmul.f32 %v31_v10, %v31_v10 }
  0x97   :  { %v37_v13 = vsel %vm20_vm0, %v33_v12, 0.0 }
  0x98   :  { %38 = vadd.xlane.f32.xlu1 %v37_v13 }
 0x11d   :  { %v36_v18 = vpop.xlane.xlu1 %35 }
 0x11e   :  { %v40_v19 = vmul.f32 0.03125, %v36_v18 }
 0x120   :  { %v42_v20 = vadd.f32 1e-05, %v40_v19 }
 0x121   :  { %v39_v21 = vpop.xlane.xlu1 %38 }
 0x122   :  { %5012 = vrsqrt.f32 %v42_v20  ;;  %v41_v22 = vmul.f32 0.03125, %v39_v21 }
 0x124   :  { %v43_v23 = vadd.f32 1e-05, %v41_v22 }
 0x126   :  { %5014 = vrsqrt.f32 %v43_v23 }
 0x12f   :  { %v5013_v24 = vpop.eup %5012 }
 0x130   :  { %v46_v26 = vmul.f32 %v5013_v24, %v30_v6 }
 0x132   :  { %v52_v28 = vmul.f32 %v5227_v25, %v46_v26 }
 0x133   :  { %v5015_v29 = vpop.eup %5014 }
 0x134   :  { %v47_v30 = vmul.f32 %v5015_v29, %v31_v10  ;;  %v5236_v31 = vadd.f32 %v5232_v27, %v52_v28 }
 0x136   :  { %v53_v32 = vmul.f32 %v5227_v25, %v47_v30  ;;  %4649 = vmatprep.mubr.msk.f32.mxu0 %vm20_vm0, %v5236_v31 }
 0x138   :  { %v5242_v33 = vadd.f32 %v5232_v27, %v53_v32 }
 0x13a   :  { %4650 = vmatmul.mubr.msk.f32.vlgmr.msra.gmra.mxu0 %vm20_vm0, %v5242_v33 }
 0x1fa   :  { %v4651_v35 = vpop.f32.mrf.mxu0 }
 0x1fb   :  { %v5249_v36 = vadd.f32 %v4651_v35, %v4310_v34 }
 0x1fc   :  { %v195_v37 = vpop.f32.mrf.mxu0 }
 0x1fd   :  { %v5251_v38 = vadd.f32 %v4310_v34, %v195_v37  ;;  %212 = vrot.lane.b32.xlu0 %v5249_v36, %s5158_s30 }
 0x1ff   :  { %210 = vrot.lane.b32.xlu1 %v5251_v38, %s5158_s30  ;;  %4656 = vmatprep.mubr.msk.f32.mxu0 %vm220_vm1, %v5251_v38 }
 0x203   :  { %214 = vrot.lane.b32.xlu1 %v5197_v0, %s5159_s4 }
 0x207   :  { %216 = vrot.lane.b32.xlu1 %v5202_v1, %s5159_s4 }
 0x26f   :  { %v213_v39 = vpop.permute.xlu0 %212 }
 0x270   :  { %4652 = vmatprep.subr.msk.mxu0 %vm220_vm1, %v213_v39 }
 0x271   :  { %4653 = vmatpush3.xpose.msk.msra.mxu0 %vm220_vm1, %v213_v39  ;;  %v211_v40 = vpop.permute.xlu1 %210 }
 0x272   :  { %4654 = vmatprep.subr.msk.mxu0 %vm220_vm1, %v211_v40 }
 0x275   :  { %4655 = vmatpush3.xpose.msk.msra.mxu0 %vm220_vm1, %v211_v40  ;;  %v5269_v41 = vpop.permute.xlu1 %214 }
 0x278   :  { %4657 = vmatmul.mubr.msk.f32.vlgmr.msra.gmra.mxu0 %vm220_vm1, %v5249_v36 }
 0x279   :  { %v5271_v42 = vpop.permute.xlu1 %216 }
 0x338   :  { %v4658_v43 = vpop.f32.mrf.mxu0 }
 0x339   :  { %v301_v44 = vadd.f32 %v4658_v43, %v5271_v42 }
 0x33a   :  { %v295_v45 = vpop.f32.mrf.mxu0 }
 0x33b   :  { %v296_v46 = vadd.f32 %v295_v45, %v5269_v41  ;;  %v308_v47 = vsel %vm304_vm2, %v301_v44, -inf }
 0x33c   :  { %309 = vmax.xlane.f32.xlu1 %v308_v47 }
 0x33d   :  { %v305_v48 = vsel %vm304_vm2, %v296_v46, -inf }
 0x33e   :  { %306 = vmax.xlane.f32.xlu0 %v305_v48 }
 0x34d   :  { %327 = vrot.lane.b32.xlu1 %v5251_v38, %s5159_s4 }
 0x351   :  { %420 = vrot.lane.b32.xlu1 %v5249_v36, %s5160_s5 }
 0x355   :  { %418 = vrot.lane.b32.xlu1 %v5251_v38, %s5160_s5 }
 0x359   :  { %416 = vrot.lane.b32.xlu1 %v5249_v36, %s5161_s6 }
 0x3c5   :  { %v310_v49 = vpop.xlane.xlu1 %309 }
 0x3c6   :  { %v312_v50 = vsub.f32 %v301_v44, %v310_v49 }
 0x3c7   :  { %v307_v51 = vpop.xlane.xlu0 %306 }
 0x3c8   :  { %v315_v52 = vmul.f32 1.442695, %v312_v50  ;;  %v311_v53 = vsub.f32 %v296_v46, %v307_v51 }
 0x3c9   :  { %v328_v61 = vpop.permute.xlu1 %327 }
 0x3ca   :  { %5016 = vpow2.f32 %v315_v52  ;;  %v313_v54 = vmul.f32 1.442695, %v311_v53 }
 0x3cc   :  { %5018 = vpow2.f32 %v313_v54 }
 0x3cd   :  { %v421_v63 = vpop.permute.xlu1 %420 }
 0x3d1   :  { %v419_v7 = vpop.permute.xlu1 %418 }
 0x3d5   :  { %v417_v8 = vpop.permute.xlu1 %416 }
 0x3d7   :  { %v5017_v55 = vpop.eup %5016 }
 0x3d8   :  { %v320_v56 = vsel %vm304_vm2, %v5017_v55, 0.0 }
 0x3d9   :  { %v5019_v57 = vpop.eup %5018  ;;  %321 = vadd.xlane.f32.xlu0 %v320_v56 }
 0x3da   :  { %v317_v58 = vsel %vm304_vm2, %v5019_v57, 0.0 }
 0x3dd   :  { %318 = vadd.xlane.f32.xlu0 %v317_v58 }
 0x3f3   :  { %329 = vrot.lane.b32.xlu0 %v5249_v36, %s5159_s4 }
 0x3f7   :  { %414 = vrot.lane.b32.xlu0 %v5251_v38, %s5161_s6 }
 0x462   :  { %v322_v59 = vpop.xlane.xlu0 %321 }
 0x463   :  { %5020 = vrcp.f32 %v322_v59 }
 0x466   :  { %v319_v60 = vpop.xlane.xlu0 %318 }
 0x467   :  { %5022 = vrcp.f32 %v319_v60 }
 0x46a   :  { %v330_v62 = vpop.permute.xlu0 %329 }
 0x46b   :  { %4659 = vmatprep.subr.mxu0 %v330_v62 }
 0x46c   :  { %4660 = vmatpush3.msra.mxu0 %v330_v62 }
 0x46d   :  { %4661 = vmatprep.subr.mxu0 %v328_v61 }
 0x46e   :  { %4662 = vmatpush3.msra.mxu0 %v328_v61  ;;  %v415_v6 = vpop.permute.xlu0 %414 }
 0x46f   :  { %4666 = vmatprep.subr.msk.mxu0 %vm220_vm1, %v421_v63 }
 0x470   :  { %v5021_v2 = vpop.eup %5020 }
 0x471   :  { %v326_v5 = vmul.f32 %v5021_v2, %v5017_v55 }
 0x474   :  { %v5023_v3 = vpop.eup %5022 }
 0x475   :  { %v325_v4 = vmul.f32 %v5023_v3, %v5019_v57 }
 0x477   :  { %4663 = vmatprep.mubr.msk.f32.mxu0 %vm304_vm2, %v325_v4 }
 0x478   :  { %4664 = vmatmul.mubr.msk.f32.vlgmr.msra.gmra.mxu0 %vm304_vm2, %v326_v5 }
 0x479   :  { %4667 = vmatpush3.xpose.msk.msra.mxu0 %vm220_vm1, %v421_v63  ;;  %4670 = vmatprep.mubr.msk.f32.mxu0 %vm220_vm1, %v415_v6 }
 0x47a   :  { %4668 = vmatprep.subr.msk.mxu0 %vm220_vm1, %v419_v7 }
 0x47d   :  { %4669 = vmatpush3.xpose.msk.msra.mxu0 %vm220_vm1, %v419_v7 }
 0x480   :  { %4671 = vmatmul.mubr.msk.f32.vlgmr.msra.gmra.mxu0 %vm220_vm1, %v417_v8 }
 0x538   :  { %v5299_v9 = vpop.f32.mrf.mxu0 }
 0x53a   :  { %v5301_v10 = vpop.f32.mrf.mxu0 }
 0x540   :  { %v4672_v11 = vpop.f32.mrf.mxu0 }
 0x541   :  { %v502_v12 = vadd.f32 %v4672_v11, %v5271_v42 }
 0x542   :  { %v496_v13 = vpop.f32.mrf.mxu0 }
 0x543   :  { %v497_v14 = vadd.f32 %v496_v13, %v5269_v41  ;;  %v508_v15 = vsel %vm304_vm2, %v502_v12, -inf }
 0x544   :  { %509 = vmax.xlane.f32.xlu1 %v508_v15 }
 0x545   :  { %v505_v16 = vsel %vm304_vm2, %v497_v14, -inf }
 0x546   :  { %506 = vmax.xlane.f32.xlu0 %v505_v16 }
 0x555   :  { %527 = vrot.lane.b32.xlu1 %v5251_v38, %s5162_s7 }
 0x559   :  { %620 = vrot.lane.b32.xlu1 %v5249_v36, %s5163_s8 }
 0x55d   :  { %618 = vrot.lane.b32.xlu1 %v5251_v38, %s5163_s8 }
 0x561   :  { %616 = vrot.lane.b32.xlu1 %v5249_v36, %s5164_s9 }
 0x5cd   :  { %v510_v17 = vpop.xlane.xlu1 %509 }
 0x5ce   :  { %v512_v18 = vsub.f32 %v502_v12, %v510_v17 }
 0x5cf   :  { %v507_v19 = vpop.xlane.xlu0 %506 }
 0x5d0   :  { %v515_v20 = vmul.f32 1.442695, %v512_v18  ;;  %v511_v21 = vsub.f32 %v497_v14, %v507_v19 }
 0x5d1   :  { %v528_v32 = vpop.permute.xlu1 %527 }
 0x5d2   :  { %5024 = vpow2.f32 %v515_v20  ;;  %v513_v22 = vmul.f32 1.442695, %v511_v21 }
 0x5d4   :  { %5026 = vpow2.f32 %v513_v22 }
 0x5d5   :  { %v621_v35 = vpop.permute.xlu1 %620 }
 0x5d9   :  { %v619_v45 = vpop.permute.xlu1 %618 }
 0x5dd   :  { %v617_v46 = vpop.permute.xlu1 %616 }
 0x5df   :  { %v5025_v23 = vpop.eup %5024 }
 0x5e0   :  { %v520_v24 = vsel %vm304_vm2, %v5025_v23, 0.0 }
 0x5e1   :  { %v5027_v26 = vpop.eup %5026  ;;  %521 = vadd.xlane.f32.xlu0 %v520_v24 }
 0x5e2   :  { %v517_v28 = vsel %vm304_vm2, %v5027_v26, 0.0 }
 0x5e5   :  { %518 = vadd.xlane.f32.xlu0 %v517_v28 }
 0x5fb   :  { %529 = vrot.lane.b32.xlu0 %v5249_v36, %s5162_s7 }
 0x5ff   :  { %614 = vrot.lane.b32.xlu0 %v5251_v38, %s5164_s9 }
 0x66a   :  { %v522_v29 = vpop.xlane.xlu0 %521 }
 0x66b   :  { %5028 = vrcp.f32 %v522_v29 }
 0x66e   :  { %v519_v30 = vpop.xlane.xlu0 %518 }
 0x66f   :  { %5030 = vrcp.f32 %v519_v30 }
 0x672   :  { %v530_v34 = vpop.permute.xlu0 %529 }
 0x673   :  { %4673 = vmatprep.subr.mxu0 %v530_v34 }
 0x674   :  { %4674 = vmatpush3.msra.mxu0 %v530_v34 }
 0x675   :  { %4675 = vmatprep.subr.mxu0 %v528_v32 }
 0x676   :  { %4676 = vmatpush3.msra.mxu0 %v528_v32  ;;  %v615_v44 = vpop.permute.xlu0 %614 }
 0x677   :  { %4680 = vmatprep.subr.msk.mxu0 %vm220_vm1, %v621_v35 }
 0x678   :  { %v5029_v37 = vpop.eup %5028 }
 0x679   :  { %v526_v43 = vmul.f32 %v5029_v37, %v5025_v23 }
 0x67c   :  { %v5031_v39 = vpop.eup %5030 }
 0x67d   :  { %v525_v40 = vmul.f32 %v5031_v39, %v5027_v26 }
 0x67f   :  { %4677 = vmatprep.mubr.msk.f32.mxu0 %vm304_vm2, %v525_v40 }
 0x680   :  { %4678 = vmatmul.mubr.msk.f32.vlgmr.msra.gmra.mxu0 %vm304_vm2, %v526_v43 }
 0x681   :  { %4681 = vmatpush3.xpose.msk.msra.mxu0 %vm220_vm1, %v621_v35  ;;  %4684 = vmatprep.mubr.msk.f32.mxu0 %vm220_vm1, %v615_v44 }
 0x682   :  { %4682 = vmatprep.subr.msk.mxu0 %vm220_vm1, %v619_v45 }
 0x685   :  { %4683 = vmatpush3.xpose.msk.msra.mxu0 %vm220_vm1, %v619_v45 }
 0x688   :  { %4685 = vmatmul.mubr.msk.f32.vlgmr.msra.gmra.mxu0 %vm220_vm1, %v617_v46 }
 0x740   :  { %v5329_v47 = vpop.f32.mrf.mxu0 }
 0x742   :  { %v5331_v48 = vpop.f32.mrf.mxu0 }
 0x748   :  { %v4686_v49 = vpop.f32.mrf.mxu0 }
 0x749   :  { %v702_v50 = vadd.f32 %v4686_v49, %v5271_v42  ;;  %v205_v49 = vld [vmem:[%s6150_s1 + $0x28] sm:$0xff] }
 0x74a   :  { %v696_v51 = vpop.f32.mrf.mxu0 }
 0x74b   :  { %v697_v52 = vadd.f32 %v696_v51, %v5269_v41  ;;  %v708_v53 = vsel %vm304_vm2, %v702_v50, -inf }
 0x74c   :  { %709 = vmax.xlane.f32.xlu1 %v708_v53 }
 0x74d   :  { %v705_v54 = vsel %vm304_vm2, %v697_v52, -inf }
 0x74e   :  { %706 = vmax.xlane.f32.xlu0 %v705_v54 }
 0x75d   :  { %727 = vrot.lane.b32.xlu1 %v5251_v38, %s5165_s10 }
 0x761   :  { %820 = vrot.lane.b32.xlu1 %v5249_v36, %s5166_s11 }
 0x765   :  { %818 = vrot.lane.b32.xlu1 %v5251_v38, %s5166_s11 }
 0x769   :  { %816 = vrot.lane.b32.xlu1 %v5249_v36, %s5167_s12 }
 0x7d5   :  { %v710_v55 = vpop.xlane.xlu1 %709 }
 0x7d6   :  { %v712_v56 = vsub.f32 %v702_v50, %v710_v55  ;;  %v204_v50 = vld [vmem:[%s6150_s1 + $0x20] sm:$0xff] }
 0x7d7   :  { %v707_v57 = vpop.xlane.xlu0 %706 }
 0x7d8   :  { %v715_v58 = vmul.f32 1.442695, %v712_v56  ;;  %v711_v59 = vsub.f32 %v697_v52, %v707_v57 }
 0x7d9   :  { %v728_v5 = vpop.permute.xlu1 %727 }
 0x7da   :  { %5032 = vpow2.f32 %v715_v58  ;;  %v713_v60 = vmul.f32 1.442695, %v711_v59 }
 0x7dc   :  { %5034 = vpow2.f32 %v713_v60 }
 0x7dd   :  { %v821_v7 = vpop.permute.xlu1 %820 }
 0x7e1   :  { %v819_v15 = vpop.permute.xlu1 %818 }
 0x7e5   :  { %v817_v16 = vpop.permute.xlu1 %816 }
 0x7e7   :  { %v5033_v61 = vpop.eup %5032 }
 0x7e8   :  { %v720_v62 = vsel %vm304_vm2, %v5033_v61, 0.0 }
 0x7e9   :  { %v5035_v63 = vpop.eup %5034  ;;  %721 = vadd.xlane.f32.xlu0 %v720_v62 }
 0x7ea   :  { %v717_v2 = vsel %vm304_vm2, %v5035_v63, 0.0 }
 0x7ed   :  { %718 = vadd.xlane.f32.xlu0 %v717_v2 }
 0x803   :  { %729 = vrot.lane.b32.xlu0 %v5249_v36, %s5165_s10 }
 0x807   :  { %814 = vrot.lane.b32.xlu0 %v5251_v38, %s5167_s12 }
 0x872   :  { %v722_v3 = vpop.xlane.xlu0 %721 }
 0x873   :  { %5036 = vrcp.f32 %v722_v3 }
 0x876   :  { %v719_v4 = vpop.xlane.xlu0 %718 }
 0x877   :  { %5038 = vrcp.f32 %v719_v4 }
 0x87a   :  { %v730_v6 = vpop.permute.xlu0 %729 }
 0x87b   :  { %4687 = vmatprep.subr.mxu0 %v730_v6 }
 0x87c   :  { %4688 = vmatpush3.msra.mxu0 %v730_v6 }
 0x87d   :  { %4689 = vmatprep.subr.mxu0 %v728_v5 }
 0x87e   :  { %4690 = vmatpush3.msra.mxu0 %v728_v5  ;;  %v815_v14 = vpop.permute.xlu0 %814 }
 0x87f   :  { %4694 = vmatprep.subr.msk.mxu0 %vm220_vm1, %v821_v7 }
 0x880   :  { %v5037_v8 = vpop.eup %5036 }
 0x881   :  { %v726_v13 = vmul.f32 %v5037_v8, %v5033_v61 }
 0x884   :  { %v5039_v11 = vpop.eup %5038 }
 0x885   :  { %v725_v12 = vmul.f32 %v5039_v11, %v5035_v63 }
 0x887   :  { %4691 = vmatprep.mubr.msk.f32.mxu0 %vm304_vm2, %v725_v12 }
 0x888   :  { %4692 = vmatmul.mubr.msk.f32.vlgmr.msra.gmra.mxu0 %vm304_vm2, %v726_v13 }
 0x889   :  { %4695 = vmatpush3.xpose.msk.msra.mxu0 %vm220_vm1, %v821_v7  ;;  %4698 = vmatprep.mubr.msk.f32.mxu0 %vm220_vm1, %v815_v14 }
 0x88a   :  { %4696 = vmatprep.subr.msk.mxu0 %vm220_vm1, %v819_v15 }
 0x88d   :  { %4697 = vmatpush3.xpose.msk.msra.mxu0 %vm220_vm1, %v819_v15  ;;  %v4337_v15 = vld [vmem:[%s6151_s2 + $0x3] ss:$0 sm:$0xff] }
 0x890   :  { %4699 = vmatmul.mubr.msk.f32.vlgmr.msra.gmra.mxu0 %vm220_vm1, %v817_v16 }
 0x948   :  { %v4693_v17 = vpop.f32.mrf.mxu0 }
 0x94a   :  { %v805_v18 = vpop.f32.mrf.mxu0 }
 0x950   :  { %v4700_v19 = vpop.f32.mrf.mxu0 }
 0x951   :  { %v902_v20 = vadd.f32 %v4700_v19, %v5271_v42 }
 0x952   :  { %v896_v21 = vpop.f32.mrf.mxu0 }
 0x953   :  { %v897_v22 = vadd.f32 %v896_v21, %v5269_v41  ;;  %v908_v23 = vsel %vm304_vm2, %v902_v20, -inf }
 0x954   :  { %909 = vmax.xlane.f32.xlu1 %v908_v23 }
 0x955   :  { %v905_v24 = vsel %vm304_vm2, %v897_v22, -inf }
 0x956   :  { %906 = vmax.xlane.f32.xlu0 %v905_v24 }
 0x965   :  { %927 = vrot.lane.b32.xlu1 %v5251_v38, %s5168_s13 }
 0x969   :  { %1016 = vrot.lane.b32.xlu1 %v5331_v48, %s5169_s14  ;;  %v206_v48 = vld [vmem:[%s6150_s1 + $0x30] sm:$0xff] }
 0x96d   :  { %1018 = vrot.lane.b32.xlu1 %v5329_v47, %s5169_s14 }
 0x971   :  { %1026 = vrot.lane.b32.xlu1 %v4693_v17, %s5170_s15 }
 0x9dd   :  { %v910_v41 = vpop.xlane.xlu1 %909 }
 0x9de   :  { %v912_v42 = vsub.f32 %v902_v20, %v910_v41 }
 0x9df   :  { %v907_v26 = vpop.xlane.xlu0 %906 }
 0x9e0   :  { %v915_v28 = vmul.f32 1.442695, %v912_v42  ;;  %v911_v29 = vsub.f32 %v897_v22, %v907_v26 }
 0x9e1   :  { %v928_v43 = vpop.permute.xlu1 %927 }
 0x9e2   :  { %5040 = vpow2.f32 %v915_v28  ;;  %v913_v30 = vmul.f32 1.442695, %v911_v29 }
 0x9e4   :  { %5042 = vpow2.f32 %v913_v30 }
 0x9e5   :  { %v1017_v53 = vpop.permute.xlu1 %1016 }
 0x9e6   :  { %v1038_v58 = vsel %vm220_vm1, %v5301_v10, %v1017_v53 }
 0x9e9   :  { %v1019_v54 = vpop.permute.xlu1 %1018 }
 0x9ea   :  { %v1039_v59 = vsel %vm220_vm1, %v5299_v9, %v1019_v54 }
 0x9ed   :  { %v1027_v55 = vpop.permute.xlu1 %1026 }
 0x9ee   :  { %v1041_v62 = vsel %vm304_vm2, %v1039_v59, %v1027_v55 }
 0x9ef   :  { %v5041_v32 = vpop.eup %5040 }
 0x9f0   :  { %v920_v38 = vsel %vm304_vm2, %v5041_v32, 0.0 }
 0x9f1   :  { %v5043_v34 = vpop.eup %5042  ;;  %921 = vadd.xlane.f32.xlu0 %v920_v38 }
 0x9f2   :  { %v917_v35 = vsel %vm304_vm2, %v5043_v34, 0.0 }
 0x9f5   :  { %918 = vadd.xlane.f32.xlu0 %v917_v35  ;;  %v1174_v35 = vld [vmem:[%s6150_s1 + $0x48] sm:$0xff] }
 0xa0b   :  { %929 = vrot.lane.b32.xlu0 %v5249_v36, %s5168_s13  ;;  %v207_v36 = vld [vmem:[%s6150_s1 + $0x38] sm:$0xff] }
 0xa0f   :  { %1024 = vrot.lane.b32.xlu0 %v805_v18, %s5170_s15 }
 0xa7a   :  { %v922_v37 = vpop.xlane.xlu0 %921 }
 0xa7b   :  { %5044 = vrcp.f32 %v922_v37  ;;  %v1173_v37 = vld [vmem:[%s6150_s1 + $0x40] sm:$0xff] }
 0xa7e   :  { %v919_v39 = vpop.xlane.xlu0 %918 }
 0xa7f   :  { %5046 = vrcp.f32 %v919_v39  ;;  %v1457_v39 = vld [vmem:[%s6150_s1 + $0xb8] sm:$0xff] }
 0xa82   :  { %v930_v40 = vpop.permute.xlu0 %929 }
 0xa83   :  { %4701 = vmatprep.subr.mxu0 %v930_v40 }
 0xa84   :  { %4702 = vmatpush3.msra.mxu0 %v930_v40 }
 0xa85   :  { %4703 = vmatprep.subr.mxu0 %v928_v43 }
 0xa86   :  { %4704 = vmatpush3.msra.mxu0 %v928_v43  ;;  %v1025_v56 = vpop.permute.xlu0 %1024 }
 0xa87   :  { %4708 = vmatprep.subr.mxu0 %v207_v36  ;;  %v1040_v60 = vsel %vm304_vm2, %v1038_v58, %v1025_v56 }
 0xa88   :  { %v5045_v44 = vpop.eup %5044 }
 0xa89   :  { %v926_v47 = vmul.f32 %v5045_v44, %v5041_v32 }
 0xa8c   :  { %v5047_v45 = vpop.eup %5046 }
 0xa8d   :  { %v925_v46 = vmul.f32 %v5047_v45, %v5043_v34  ;;  %v1176_v34 = vld [vmem:[%s6150_s1 + $0x58] sm:$0xff] }
 0xa8e   :  { %4719 = vmatprep.subr.mxu1 %v1176_v34 }
 0xa8f   :  { %4705 = vmatprep.mubr.msk.f32.mxu0 %vm304_vm2, %v925_v46  ;;  %4720 = vmatpush3.msra.mxu1 %v1176_v34 }
 0xa90   :  { %4706 = vmatmul.mubr.msk.f32.vlgmr.msra.gmra.mxu0 %vm304_vm2, %v926_v47 }
 0xa91   :  { %4709 = vmatpush3.msra.mxu0 %v207_v36 }
 0xa92   :  { %4710 = vmatprep.subr.mxu0 %v206_v48 }
 0xa93   :  { %4711 = vmatpush3.msra.mxu0 %v206_v48 }
 0xa94   :  { %4712 = vmatprep.subr.mxu0 %v205_v49 }
 0xa95   :  { %4713 = vmatpush3.msra.mxu0 %v205_v49 }
 0xa96   :  { %4714 = vmatprep.subr.mxu0 %v204_v50 }
 0xa97   :  { %4715 = vmatpush3.msra.mxu0 %v204_v50 }
 0xb50   :  { %v4707_v51 = vpop.f32.mrf.mxu0 }
 0xb51   :  { %1034 = vrot.lane.b32.xlu1 %v4707_v51, %s5171_s24 }
 0xb52   :  { %v1005_v52 = vpop.f32.mrf.mxu0 }
 0xb53   :  { %1032 = vrot.lane.b32.xlu0 %v1005_v52, %s5171_s24 }
 0xb55   :  { %64 = vrot.lane.b32.xlu1 %v5202_v1, %s5158_s30 }
 0xb57   :  { %62 = vrot.lane.b32.xlu0 %v5197_v0, %s5158_s30 }
 0xbc3   :  { %v1035_v57 = vpop.permute.xlu1 %1034 }
 0xbc4   :  { %v1044_v2 = vsel %vm1042_vm3, %v1041_v62, %v1035_v57 }
 0xbc5   :  { %v1033_v61 = vpop.permute.xlu0 %1032 }
 0xbc6   :  { %v1043_v63 = vsel %vm1042_vm3, %v1040_v60, %v1033_v61 }
 0xbc7   :  { %4716 = vmatprep.mubr.msk.f32.mxu0 %vm20_vm0, %v1043_v63  ;;  %v65_v3 = vpop.permute.xlu1 %64 }
 0xbc8   :  { %4717 = vmatmul.mubr.msk.f32.vlgmr.msra.gmra.mxu0 %vm20_vm0, %v1044_v2  ;;  %v71_v10 = vsel %vm20_vm0, %v65_v3, 0.0  ;;  %v4340_v2 = vld [vmem:[%s6151_s2 + $0x4] ss:$0 sm:$0xff] }
 0xbc9   :  { %v63_v4 = vpop.permute.xlu0 %62  ;;  %72 = vadd.xlane.f32.xlu1 %v71_v10 }
 0xbca   :  { %v68_v9 = vsel %vm20_vm0, %v63_v4, 0.0 }
 0xbcb   :  { %69 = vadd.xlane.f32.xlu0 %v68_v9 }
 0xc52   :  { %v73_v5 = vpop.xlane.xlu1 %72 }
 0xc53   :  { %v75_v6 = vmul.f32 0.03125, %v73_v5  ;;  %v4341_v5 = vld [vmem:[%s6151_s2 + $0x5] ss:$0 sm:$0xff] }
 0xc54   :  { %v70_v7 = vpop.xlane.xlu0 %69 }
 0xc55   :  { %v74_v8 = vmul.f32 0.03125, %v70_v7  ;;  %v5408_v11 = vsub.f32 %v5202_v1, %v75_v6 }
 0xc57   :  { %v76_v12 = vsub.f32 %v5197_v0, %v74_v8  ;;  %v79_v13 = vmul.f32 %v5408_v11, %v5408_v11 }
 0xc59   :  { %v78_v14 = vmul.f32 %v76_v12, %v76_v12  ;;  %84 = vrot.lane.b32.xlu1 %v79_v13, %s5158_s30  ;;  %v1454_v13 = vld [vmem:[%s6150_s1 + $0xa0] sm:$0xff] }
 0xc5b   :  { %82 = vrot.lane.b32.xlu0 %v78_v14, %s5158_s30 }
 0xc88   :  { %v4718_v16 = vpop.f32.mrf.mxu0 }
 0xc89   :  { %v1128_v17 = vadd.f32 %v4718_v16, %v4337_v15  ;;  %v1324_v16 = vld [vmem:[%s6150_s1 + $0x98] sm:$0xff] }
 0xc8a   :  { %v1122_v18 = vpop.f32.mrf.mxu0  ;;  %4730 = vmatprep.subr.mxu0 %v1324_v16 }
 0xc8b   :  { %v1123_v19 = vadd.f32 %v4337_v15, %v1122_v18  ;;  %v1132_v1 = vadd.f32 %v1128_v17, %v5242_v33  ;;  %4731 = vmatpush3.msra.mxu0 %v1324_v16  ;;  %v1323_v17 = vld [vmem:[%s6150_s1 + $0x90] sm:$0xff]  ;;  %v1322_v18 = vld [vmem:[%s6150_s1 + $0x88] sm:$0xff]  ;;  %v5534_v16 = vld [vmem:[%s6149_s0] sm:$0xff] }
 0xc8c   :  { %4732 = vmatprep.subr.mxu0 %v1323_v17 }
 0xc8d   :  { %v1138_v0 = vsel %vm20_vm0, %v1132_v1, 0.0  ;;  %v1131_v20 = vadd.f32 %v1123_v19, %v5236_v31  ;;  %4733 = vmatpush3.msra.mxu0 %v1323_v17  ;;  %v1321_v19 = vld [vmem:[%s6150_s1 + $0x80] sm:$0xff] }
 0xc8e   :  { %1139 = vadd.xlane.f32.xlu1 %v1138_v0  ;;  %4734 = vmatprep.subr.mxu0 %v1322_v18  ;;  %v1319_v0 = vld [vmem:[%s6150_s1 + $0x70] sm:$0xff] }
 0xc8f   :  { %v1135_v21 = vsel %vm20_vm0, %v1131_v20, 0.0  ;;  %4735 = vmatpush3.msra.mxu0 %v1322_v18 }
 0xc90   :  { %1136 = vadd.xlane.f32.xlu0 %v1135_v21  ;;  %4736 = vmatprep.subr.mxu0 %v1321_v19  ;;  %v1317_v21 = vld [vmem:[%s6150_s1 + $0x60] sm:$0xff] }
 0xc91   :  { %4737 = vmatpush3.msra.mxu0 %v1321_v19 }
 0xc9f   :  { %109 = vrot.lane.b32.xlu1 %v5232_v27, %s5172_s27 }
 0xccb   :  { %v85_v23 = vpop.permute.xlu1 %84 }
 0xccc   :  { %v91_v41 = vsel %vm20_vm0, %v85_v23, 0.0 }
 0xccd   :  { %v83_v22 = vpop.permute.xlu0 %82 }
 0xcce   :  { %v88_v24 = vsel %vm20_vm0, %v83_v22, 0.0  ;;  %v4342_v22 = vld [vmem:[%s6151_s2 + $0x6] ss:$0 sm:$0xff] }
 0xccf   :  { %89 = vadd.xlane.f32.xlu0 %v88_v24 }
 0xcd3   :  { %92 = vadd.xlane.f32.xlu0 %v91_v41 }
 0xce9   :  { %103 = vrot.lane.b32.xlu0 %v5227_v25, %s5172_s27  ;;  %v1175_v25 = vld [vmem:[%s6150_s1 + $0x50] sm:$0xff] }
 0xcea   :  { %4721 = vmatprep.subr.mxu1 %v1175_v25 }
 0xceb   :  { %4722 = vmatpush3.msra.mxu1 %v1175_v25 }
 0xcec   :  { %4723 = vmatprep.subr.mxu1 %v1174_v35 }
 0xced   :  { %4724 = vmatpush3.msra.mxu1 %v1174_v35 }
 0xcee   :  { %4725 = vmatprep.subr.mxu1 %v1173_v37 }
 0xcef   :  { %4726 = vmatpush3.msra.mxu1 %v1173_v37 }
 0xcf0   :  { %4749 = vmatprep.subr.mxu1 %v1457_v39 }
 0xd17   :  { %v1140_v31 = vpop.xlane.xlu1 %1139 }
 0xd18   :  { %v1142_v33 = vmul.f32 0.03125, %v1140_v31 }
 0xd19   :  { %v1137_v42 = vpop.xlane.xlu0 %1136 }
 0xd1a   :  { %v1144_v26 = vsub.f32 %v1132_v1, %v1142_v33  ;;  %v1141_v28 = vmul.f32 0.03125, %v1137_v42  ;;  %v1320_v1 = vld [vmem:[%s6150_s1 + $0x78] sm:$0xff] }
 0xd1b   :  { %v110_v50 = vpop.permute.xlu1 %109  ;;  %4738 = vmatprep.subr.mxu0 %v1320_v1 }
 0xd1c   :  { %v1143_v29 = vsub.f32 %v1131_v20, %v1141_v28  ;;  %v1146_v30 = vmul.f32 %v1144_v26, %v1144_v26  ;;  %4739 = vmatpush3.msra.mxu0 %v1320_v1  ;;  %v1318_v20 = vld [vmem:[%s6150_s1 + $0x68] sm:$0xff] }
 0xd1d   :  { %4740 = vmatprep.subr.mxu0 %v1319_v0 }
 0xd1e   :  { %v1150_v27 = vsel %vm20_vm0, %v1146_v30, 0.0  ;;  %v1145_v32 = vmul.f32 %v1143_v29, %v1143_v29  ;;  %4741 = vmatpush3.msra.mxu0 %v1319_v0 }
 0xd1f   :  { %1151 = vadd.xlane.f32.xlu0 %v1150_v27  ;;  %4742 = vmatprep.subr.mxu0 %v1318_v20 }
 0xd20   :  { %v1147_v38 = vsel %vm20_vm0, %v1145_v32, 0.0  ;;  %4743 = vmatpush3.msra.mxu0 %v1318_v20 }
 0xd21   :  { %1148 = vadd.xlane.f32.xlu1 %v1147_v38  ;;  %4744 = vmatprep.subr.mxu0 %v1317_v21 }
 0xd22   :  { %4745 = vmatpush3.msra.mxu0 %v1317_v21 }
 0xd58   :  { %v90_v40 = vpop.xlane.xlu0 %89 }
 0xd59   :  { %v94_v43 = vmul.f32 0.03125, %v90_v40 }
 0xd5b   :  { %v96_v44 = vadd.f32 1e-05, %v94_v43 }
 0xd5c   :  { %v93_v45 = vpop.xlane.xlu0 %92 }
 0xd5d   :  { %5048 = vrsqrt.f32 %v96_v44  ;;  %v95_v46 = vmul.f32 0.03125, %v93_v45 }
 0xd5f   :  { %v97_v47 = vadd.f32 1e-05, %v95_v46 }
 0xd60   :  { %v104_v48 = vpop.permute.xlu0 %103 }
 0xd61   :  { %5050 = vrsqrt.f32 %v97_v47 }
 0xd6a   :  { %v5049_v36 = vpop.eup %5048 }
 0xd6b   :  { %v100_v49 = vmul.f32 %v5049_v36, %v76_v12  ;;  %v1455_v12 = vld [vmem:[%s6150_s1 + $0xa8] sm:$0xff] }
 0xd6d   :  { %v106_v51 = vmul.f32 %v104_v48, %v100_v49 }
 0xd6e   :  { %v5051_v52 = vpop.eup %5050 }
 0xd6f   :  { %v101_v53 = vmul.f32 %v5051_v52, %v5408_v11  ;;  %v5446_v54 = vadd.f32 %v110_v50, %v106_v51  ;;  %v1456_v11 = vld [vmem:[%s6150_s1 + $0xb0] sm:$0xff]  ;;  %v4350_v52 = vld [vmem:[%s6151_s2 + $0xa] ss:$0 sm:$0xff] }
 0xd71   :  { %v107_v55 = vmul.f32 %v104_v48, %v101_v53  ;;  %1465 = vrot.lane.b32.xlu0 %v5446_v54, %s5158_s30 }
 0xd73   :  { %v5450_v56 = vadd.f32 %v110_v50, %v107_v55 }
 0xd75   :  { %1467 = vrot.lane.b32.xlu1 %v5450_v56, %s5158_s30 }
 0xda8   :  { %v1152_v57 = vpop.xlane.xlu0 %1151 }
 0xda9   :  { %v1154_v58 = vmul.f32 0.03125, %v1152_v57 }
 0xdaa   :  { %v1149_v59 = vpop.xlane.xlu1 %1148 }
 0xdab   :  { %v1156_v60 = vadd.f32 1e-05, %v1154_v58  ;;  %v1153_v61 = vmul.f32 0.03125, %v1149_v59 }
 0xdad   :  { %5052 = vrsqrt.f32 %v1156_v60  ;;  %v1155_v62 = vadd.f32 1e-05, %v1153_v61 }
 0xdaf   :  { %5054 = vrsqrt.f32 %v1155_v62 }
 0xdba   :  { %v5053_v63 = vpop.eup %5052 }
 0xdbb   :  { %v1160_v3 = vmul.f32 %v5053_v63, %v1144_v26 }
 0xdbc   :  { %v5055_v10 = vpop.eup %5054 }
 0xdbd   :  { %v1159_v4 = vmul.f32 %v5055_v10, %v1143_v29  ;;  %v1166_v9 = vmul.f32 %v4340_v2, %v1160_v3 }
 0xdbf   :  { %v1165_v6 = vmul.f32 %v4340_v2, %v1159_v4  ;;  %v5462_v8 = vadd.f32 %v4341_v5, %v1166_v9 }
 0xdc1   :  { %v5460_v7 = vadd.f32 %v4341_v5, %v1165_v6 }
 0xdc3   :  { %4727 = vmatprep.mubr.msk.f32.mxu1 %vm20_vm0, %v5460_v7 }
 0xdc4   :  { %4728 = vmatmul.mubr.msk.f32.vlgmr.msra.gmra.mxu1 %vm20_vm0, %v5462_v8 }
 0xdc5   :  { %4750 = vmatpush3.msra.mxu1 %v1457_v39 }
 0xdc6   :  { %4751 = vmatprep.subr.mxu1 %v1456_v11 }
 0xdc7   :  { %4752 = vmatpush3.msra.mxu1 %v1456_v11 }
 0xdc8   :  { %4753 = vmatprep.subr.mxu1 %v1455_v12 }
 0xdc9   :  { %4754 = vmatpush3.msra.mxu1 %v1455_v12  ;;  %v5173_v12 = vmov -1.0  }
 0xdca   :  { %4755 = vmatprep.subr.mxu1 %v1454_v13 }
 0xdcb   :  { %4756 = vmatpush3.msra.mxu1 %v1454_v13 }
 0xde3   :  { %v1466_v14 = vpop.permute.xlu0 %1465 }
 0xde4   :  { %4757 = vmatprep.mubr.msk.f32.mxu1 %vm20_vm0, %v1466_v14 }
 0xde7   :  { %v1468_v15 = vpop.permute.xlu1 %1467 }
 0xde8   :  { %4758 = vmatmul.mubr.msk.f32.vlgmr.msra.gmra.mxu1 %vm20_vm0, %v1468_v15 }
 0xe84   :  { %v4729_v23 = vpop.f32.mrf.mxu1 }
 0xe85   :  { %v5506_v24 = vadd.f32 %v4729_v23, %v4342_v22 }
 0xe86   :  { %v1254_v41 = vpop.f32.mrf.mxu1 }
 0xe87   :  { %v1266_v31 = vmul.f32 0.70710677, %v5506_v24  ;;  %v5509_v33 = vadd.f32 %v4342_v22, %v1254_v41  ;;  %v1264_v21 = vmul.f32 0.5, %v5506_v24  ;;  %v5545_v41 = vld [vmem:[%s6149_s0 + $0x10] sm:$0xff] }
 0xe89   :  { %v1272_v42 = vand.u32 2147483647, %v1266_v31  ;;  %v1265_v26 = vmul.f32 0.70710677, %v5509_v33  ;;  %vm1268_vm4 = vcmp.ge.f32.partialorder %v1266_v31, 0.0  ;;  %v1263_v0 = vmul.f32 0.5, %v5509_v33 }
 0xe8a   :  { %v1270_v13 = vsel %vm1268_vm4, 1.0, %v5173_v12 }
 0xe8b   :  { %v1274_v28 = vmul.f32 0.3275911, %v1272_v42  ;;  %v1271_v29 = vand.u32 2147483647, %v1265_v26  ;;  %v1300_v38 = vsub.f32 0.0, %v1272_v42  ;;  %vm1267_vm5 = vcmp.ge.f32.partialorder %v1265_v26, 0.0 }
 0xe8c   :  { %v1269_v18 = vsel %vm1267_vm5, 1.0, %v5173_v12 }
 0xe8d   :  { %v1276_v30 = vadd.f32 1.0, %v1274_v28  ;;  %v1273_v27 = vmul.f32 0.3275911, %v1271_v29  ;;  %v1299_v34 = vsub.f32 0.0, %v1271_v29  ;;  %v1302_v25 = vmul.f32 %v1300_v38, %v1272_v42 }
 0xe8f   :  { %5056 = vrcp.f32 %v1276_v30  ;;  %v1275_v32 = vadd.f32 1.0, %v1273_v27  ;;  %v1301_v37 = vmul.f32 %v1299_v34, %v1271_v29  ;;  %v1305_v40 = vmul.f32 1.442695, %v1302_v25 }
 0xe91   :  { %5058 = vrcp.f32 %v1275_v32  ;;  %v1303_v46 = vmul.f32 1.442695, %v1301_v37 }
 0xe92   :  { %5060 = vpow2.f32 %v1305_v40 }
 0xe93   :  { %5062 = vpow2.f32 %v1303_v46 }
 0xe9c   :  { %v5057_v35 = vpop.eup %5056 }
 0xe9d   :  { %v1282_v39 = vmul.f32 1.0614054, %v5057_v35 }
 0xe9e   :  { %v5059_v43 = vpop.eup %5058 }
 0xe9f   :  { %v1284_v44 = vadd.f32 -1.4531521, %v1282_v39  ;;  %v1281_v45 = vmul.f32 1.0614054, %v5059_v43  ;;  %v5061_v10 = vpop.eup %5060 }
 0xea0   :  { %v5063_v6 = vpop.eup %5062 }
 0xea1   :  { %v1286_v47 = vmul.f32 %v5057_v35, %v1284_v44  ;;  %v1283_v36 = vadd.f32 -1.4531521, %v1281_v45 }
 0xea3   :  { %v1288_v48 = vadd.f32 1.4214138, %v1286_v47  ;;  %v1285_v49 = vmul.f32 %v5059_v43, %v1283_v36 }
 0xea5   :  { %v1290_v50 = vmul.f32 %v5057_v35, %v1288_v48  ;;  %v1287_v51 = vadd.f32 1.4214138, %v1285_v49 }
 0xea7   :  { %v1292_v53 = vadd.f32 -0.28449672, %v1290_v50  ;;  %v1289_v55 = vmul.f32 %v5059_v43, %v1287_v51 }
 0xea8   :  { %v4759_v57 = vpop.f32.mrf.mxu1 }
 0xea9   :  { %v1294_v58 = vmul.f32 %v5057_v35, %v1292_v53  ;;  %v5515_v59 = vadd.f32 %v4759_v57, %v4350_v52  ;;  %v1291_v60 = vadd.f32 -0.28449672, %v1289_v55 }
 0xeaa   :  { %v1539_v61 = vpop.f32.mrf.mxu1 }
 0xeab   :  { %v1296_v62 = vadd.f32 0.2548296, %v1294_v58  ;;  %v5517_v63 = vadd.f32 %v4350_v52, %v1539_v61  ;;  %1762 = vrot.lane.b32.xlu0 %v5515_v59, %s5160_s5  ;;  %1556 = vrot.lane.b32.xlu1 %v5515_v59, %s5158_s30  ;;  %v1293_v2 = vmul.f32 %v5059_v43, %v1291_v60 }
 0xead   :  { %v1298_v3 = vmul.f32 %v5057_v35, %v1296_v62  ;;  %4764 = vmatprep.mubr.msk.f32.mxu1 %vm220_vm1, %v5517_v63  ;;  %v1295_v4 = vadd.f32 0.2548296, %v1293_v2 }
 0xeaf   :  { %v1308_v9 = vmul.f32 %v5061_v10, %v1298_v3  ;;  %1756 = vrot.lane.b32.xlu0 %v5517_v63, %s5161_s6  ;;  %1554 = vrot.lane.b32.xlu1 %v5517_v63, %s5158_s30  ;;  %v1297_v5 = vmul.f32 %v5059_v43, %v1295_v4 }
 0xeb1   :  { %v1310_v11 = vsub.f32 1.0, %v1308_v9  ;;  %v1307_v14 = vmul.f32 %v5063_v6, %v1297_v5 }
 0xeb3   :  { %v1312_v15 = vmul.f32 %v1310_v11, %v1270_v13  ;;  %1760 = vrot.lane.b32.xlu1 %v5517_v63, %s5160_s5  ;;  %1558 = vrot.lane.b32.xlu0 %v5534_v16, %s5165_s10  ;;  %v1309_v17 = vsub.f32 1.0, %v1307_v14 }
 0xeb5   :  { %v1311_v19 = vmul.f32 %v1309_v17, %v1269_v18  ;;  %v1314_v1 = vadd.f32 1.0, %v1312_v15 }
 0xeb7   :  { %1758 = vrot.lane.b32.xlu1 %v5515_v59, %s5161_s6  ;;  %v1313_v20 = vadd.f32 1.0, %v1311_v19  ;;  %v1316_v23 = vmul.f32 %v1314_v1, %v1264_v21 }
 0xeb9   :  { %v1315_v22 = vmul.f32 %v1313_v20, %v1263_v0 }
 0xebb   :  { %1560 = vrot.lane.b32.xlu1 %v5545_v41, %s5165_s10  ;;  %4746 = vmatprep.mubr.msk.f32.mxu0 %vm1330_vm6, %v1315_v22 }
 0xebc   :  { %4747 = vmatmul.mubr.msk.f32.vlgmr.msra.gmra.mxu0 %vm1330_vm6, %v1316_v23 }
 0xf1d   :  { %v1557_v31 = vpop.permute.xlu1 %1556  ;;  %v1763_v24 = vpop.permute.xlu0 %1762 }
 0xf1e   :  { %4760 = vmatprep.subr.msk.mxu1 %vm220_vm1, %v1557_v31 }
 0xf1f   :  { %4761 = vmatpush3.xpose.msk.msra.mxu1 %vm220_vm1, %v1557_v31 }
 0xf21   :  { %v1555_v33 = vpop.permute.xlu1 %1554  ;;  %v1757_v42 = vpop.permute.xlu0 %1756 }
 0xf22   :  { %4762 = vmatprep.subr.msk.mxu1 %vm220_vm1, %v1555_v33 }
 0xf23   :  { %4763 = vmatpush3.xpose.msk.msra.mxu1 %vm220_vm1, %v1555_v33 }
 0xf24   :  { %4774 = vmatprep.subr.msk.mxu1 %vm220_vm1, %v1763_v24 }
 0xf25   :  { %v1761_v26 = vpop.permute.xlu1 %1760  ;;  %v5565_v27 = vpop.permute.xlu0 %1558 }
 0xf26   :  { %4765 = vmatmul.mubr.msk.f32.vlgmr.msra.gmra.mxu1 %vm220_vm1, %v5515_v59 }
 0xf27   :  { %4775 = vmatpush3.xpose.msk.msra.mxu1 %vm220_vm1, %v1763_v24  ;;  %4778 = vmatprep.mubr.msk.f32.mxu1 %vm220_vm1, %v1757_v42 }
 0xf28   :  { %4776 = vmatprep.subr.msk.mxu1 %vm220_vm1, %v1761_v26 }
 0xf29   :  { %v1759_v28 = vpop.permute.xlu1 %1758 }
 0xf2b   :  { %4777 = vmatpush3.xpose.msk.msra.mxu1 %vm220_vm1, %v1761_v26 }
 0xf2d   :  { %v5563_v29 = vpop.permute.xlu1 %1560 }
 0xf2e   :  { %4779 = vmatmul.mubr.msk.f32.vlgmr.msra.gmra.mxu1 %vm220_vm1, %v1759_v28 }
 0xf7c   :  { %v5605_v26 = vpop.f32.mrf.mxu0 }
 0xf7e   :  { %v5607_v28 = vpop.f32.mrf.mxu0 }
 0xfe6   :  { %v4766_v30 = vpop.f32.mrf.mxu1 }
 0xfe7   :  { %v1644_v32 = vadd.f32 %v4766_v30, %v5563_v29 }
 0xfe8   :  { %v1638_v38 = vpop.f32.mrf.mxu1 }
 0xfe9   :  { %v1639_v34 = vadd.f32 %v1638_v38, %v5565_v27  ;;  %v1650_v25 = vsel %vm304_vm2, %v1644_v32, -inf }
 0xfea   :  { %1651 = vmax.xlane.f32.xlu1 %v1650_v25 }
 0xfeb   :  { %v1647_v35 = vsel %vm304_vm2, %v1639_v34, -inf }
 0xfec   :  { %1648 = vmax.xlane.f32.xlu0 %v1647_v35 }
 0xfee   :  { %v4780_v37 = vpop.f32.mrf.mxu1 }
 0xfef   :  { %v1844_v43 = vadd.f32 %v4780_v37, %v5563_v29 }
 0xff0   :  { %v1838_v39 = vpop.f32.mrf.mxu1 }
 0xff1   :  { %v1839_v40 = vadd.f32 %v1838_v39, %v5565_v27  ;;  %v1850_v45 = vsel %vm304_vm2, %v1844_v43, -inf }
 0xff3   :  { %v1847_v44 = vsel %vm304_vm2, %v1839_v40, -inf }
 0xff4   :  { %1848 = vmax.xlane.f32.xlu0 %v1847_v44 }
 0xff8   :  { %1851 = vmax.xlane.f32.xlu0 %v1850_v45 }
 0xffb   :  { %1669 = vrot.lane.b32.xlu1 %v5517_v63, %s5159_s4 }
 0xfff   :  { %1871 = vrot.lane.b32.xlu1 %v5515_v59, %s5162_s7 }
0x1003   :  { %1869 = vrot.lane.b32.xlu1 %v5517_v63, %s5162_s7 }
0x100e   :  { %1671 = vrot.lane.b32.xlu0 %v5515_v59, %s5159_s4 }
0x1073   :  { %v1652_v46 = vpop.xlane.xlu1 %1651 }
0x1074   :  { %v1654_v47 = vsub.f32 %v1644_v32, %v1652_v46 }
0x1075   :  { %v1649_v36 = vpop.xlane.xlu0 %1648 }
0x1076   :  { %v1657_v48 = vmul.f32 1.442695, %v1654_v47  ;;  %v1653_v49 = vsub.f32 %v1639_v34, %v1649_v36 }
0x1077   :  { %v1670_v58 = vpop.permute.xlu1 %1669 }
0x1078   :  { %5064 = vpow2.f32 %v1657_v48  ;;  %v1655_v50 = vmul.f32 1.442695, %v1653_v49 }
0x107a   :  { %5066 = vpow2.f32 %v1655_v50 }
0x107b   :  { %v1872_v4 = vpop.permute.xlu1 %1871 }
0x107d   :  { %v1849_v51 = vpop.xlane.xlu0 %1848 }
0x107e   :  { %v1853_v52 = vsub.f32 %v1839_v40, %v1849_v51 }
0x107f   :  { %v1870_v12 = vpop.permute.xlu1 %1869 }
0x1080   :  { %v1855_v53 = vmul.f32 1.442695, %v1853_v52 }
0x1081   :  { %v1852_v55 = vpop.xlane.xlu0 %1851 }
0x1082   :  { %5068 = vpow2.f32 %v1855_v53  ;;  %v1854_v57 = vsub.f32 %v1844_v43, %v1852_v55 }
0x1084   :  { %v1857_v60 = vmul.f32 1.442695, %v1854_v57 }
0x1085   :  { %v5065_v61 = vpop.eup %5064  ;;  %v1672_v62 = vpop.permute.xlu0 %1671 }
0x1086   :  { %5070 = vpow2.f32 %v1857_v60  ;;  %4767 = vmatprep.subr.mxu0 %v1672_v62  ;;  %v1662_v2 = vsel %vm304_vm2, %v5065_v61, 0.0 }
0x1087   :  { %v5067_v3 = vpop.eup %5066  ;;  %1663 = vadd.xlane.f32.xlu1 %v1662_v2  ;;  %4768 = vmatpush3.msra.mxu0 %v1672_v62 }
0x1088   :  { %4769 = vmatprep.subr.mxu0 %v1670_v58  ;;  %v1659_v10 = vsel %vm304_vm2, %v5067_v3, 0.0 }
0x1089   :  { %1660 = vadd.xlane.f32.xlu0 %v1659_v10  ;;  %4770 = vmatpush3.msra.mxu0 %v1670_v58 }
0x108a   :  { %4781 = vmatprep.subr.mxu0 %v1872_v4 }
0x108f   :  { %v5069_v9 = vpop.eup %5068 }
0x1090   :  { %v1859_v5 = vsel %vm304_vm2, %v5069_v9, 0.0 }
0x1091   :  { %1860 = vadd.xlane.f32.xlu0 %v1859_v5 }
0x1093   :  { %v5071_v6 = vpop.eup %5070 }
0x1094   :  { %v1862_v11 = vsel %vm304_vm2, %v5071_v6, 0.0 }
0x1095   :  { %1863 = vadd.xlane.f32.xlu1 %v1862_v11 }
0x10a6   :  { %1960 = vrot.lane.b32.xlu1 %v5517_v63, %s5163_s8 }
0x10a7   :  { %1962 = vrot.lane.b32.xlu0 %v5515_v59, %s5163_s8 }
0x10aa   :  { %1958 = vrot.lane.b32.xlu1 %v5515_v59, %s5164_s9 }
0x10ab   :  { %1956 = vrot.lane.b32.xlu0 %v5517_v63, %s5164_s9 }
0x1110   :  { %v1664_v13 = vpop.xlane.xlu1 %1663 }
0x1111   :  { %5072 = vrcp.f32 %v1664_v13 }
0x1112   :  { %v1661_v14 = vpop.xlane.xlu0 %1660 }
0x1113   :  { %5074 = vrcp.f32 %v1661_v14 }
0x111a   :  { %v1861_v15 = vpop.xlane.xlu0 %1860 }
0x111b   :  { %5076 = vrcp.f32 %v1861_v15 }
0x111e   :  { %v1864_v17 = vpop.xlane.xlu1 %1863  ;;  %v5073_v18 = vpop.eup %5072 }
0x111f   :  { %5078 = vrcp.f32 %v1864_v17  ;;  %v1668_v0 = vmul.f32 %v5073_v18, %v5065_v61  ;;  %v1963_v20 = vpop.permute.xlu0 %1962 }
0x1120   :  { %v5075_v19 = vpop.eup %5074 }
0x1121   :  { %v1667_v1 = vmul.f32 %v5075_v19, %v5067_v3 }
0x1122   :  { %v1961_v33 = vpop.permute.xlu1 %1960 }
0x1123   :  { %4771 = vmatprep.mubr.msk.f32.mxu0 %vm304_vm2, %v1667_v1  ;;  %v1957_v24 = vpop.permute.xlu0 %1956 }
0x1124   :  { %4772 = vmatmul.mubr.msk.f32.vlgmr.msra.gmra.mxu0 %vm304_vm2, %v1668_v0 }
0x1125   :  { %4782 = vmatpush3.msra.mxu0 %v1872_v4 }
0x1126   :  { %4783 = vmatprep.subr.mxu0 %v1870_v12  ;;  %v1959_v42 = vpop.permute.xlu1 %1958 }
0x1127   :  { %4784 = vmatpush3.msra.mxu0 %v1870_v12 }
0x1128   :  { %v5077_v21 = vpop.eup %5076  ;;  %4788 = vmatprep.subr.msk.mxu0 %vm220_vm1, %v1963_v20 }
0x1129   :  { %v1867_v22 = vmul.f32 %v5077_v21, %v5069_v9 }
0x112b   :  { %4785 = vmatprep.mubr.msk.f32.mxu0 %vm304_vm2, %v1867_v22 }
0x112c   :  { %v5079_v23 = vpop.eup %5078 }
0x112d   :  { %v1868_v31 = vmul.f32 %v5079_v23, %v5071_v6 }
0x112f   :  { %4786 = vmatmul.mubr.msk.f32.vlgmr.msra.gmra.mxu0 %vm304_vm2, %v1868_v31 }
0x1130   :  { %4789 = vmatpush3.xpose.msk.msra.mxu0 %vm220_vm1, %v1963_v20  ;;  %4792 = vmatprep.mubr.msk.f32.mxu0 %vm220_vm1, %v1957_v24 }
0x1131   :  { %4790 = vmatprep.subr.msk.mxu0 %vm220_vm1, %v1961_v33 }
0x1134   :  { %4791 = vmatpush3.xpose.msk.msra.mxu0 %vm220_vm1, %v1961_v33 }
0x1137   :  { %4793 = vmatmul.mubr.msk.f32.vlgmr.msra.gmra.mxu0 %vm220_vm1, %v1959_v42 }
0x11e4   :  { %v5609_v30 = vpop.f32.mrf.mxu0 }
0x11e6   :  { %v5611_v32 = vpop.f32.mrf.mxu0 }
0x11ef   :  { %v5613_v38 = vpop.f32.mrf.mxu0 }
0x11f1   :  { %v5615_v34 = vpop.f32.mrf.mxu0 }
0x11f7   :  { %v4794_v25 = vpop.f32.mrf.mxu0 }
0x11f8   :  { %v2044_v35 = vadd.f32 %v4794_v25, %v5563_v29 }
0x11f9   :  { %v2038_v37 = vpop.f32.mrf.mxu0 }
0x11fa   :  { %v2039_v39 = vadd.f32 %v2038_v37, %v5565_v27  ;;  %v2050_v40 = vsel %vm304_vm2, %v2044_v35, -inf  ;;  %v1549_v37 = vld [vmem:[%s6150_s1 + $0xc8] sm:$0xff] }
0x11fb   :  { %2051 = vmax.xlane.f32.xlu1 %v2050_v40 }
0x11fc   :  { %v2047_v43 = vsel %vm304_vm2, %v2039_v39, -inf }
0x11fd   :  { %2048 = vmax.xlane.f32.xlu0 %v2047_v43 }
0x120c   :  { %2069 = vrot.lane.b32.xlu1 %v5517_v63, %s5165_s10 }
0x1210   :  { %2162 = vrot.lane.b32.xlu1 %v5515_v59, %s5166_s11 }
0x1214   :  { %2160 = vrot.lane.b32.xlu1 %v5517_v63, %s5166_s11 }
0x1218   :  { %2158 = vrot.lane.b32.xlu1 %v5515_v59, %s5167_s12 }
0x1284   :  { %v2052_v44 = vpop.xlane.xlu1 %2051 }
0x1285   :  { %v2054_v45 = vsub.f32 %v2044_v35, %v2052_v44  ;;  %v1550_v35 = vld [vmem:[%s6150_s1 + $0xd0] sm:$0xff] }
0x1286   :  { %v2049_v46 = vpop.xlane.xlu0 %2048 }
0x1287   :  { %v2057_v47 = vmul.f32 1.442695, %v2054_v45  ;;  %v2053_v36 = vsub.f32 %v2039_v39, %v2049_v46  ;;  %v1548_v39 = vld [vmem:[%s6150_s1 + $0xc0] sm:$0xff] }
0x1288   :  { %v2070_v57 = vpop.permute.xlu1 %2069 }
0x1289   :  { %5080 = vpow2.f32 %v2057_v47  ;;  %v2055_v48 = vmul.f32 1.442695, %v2053_v36 }
0x128b   :  { %5082 = vpow2.f32 %v2055_v48 }
0x128c   :  { %v2163_v60 = vpop.permute.xlu1 %2162 }
0x1290   :  { %v2161_v4 = vpop.permute.xlu1 %2160 }
0x1294   :  { %v2159_v9 = vpop.permute.xlu1 %2158 }
0x1296   :  { %v5081_v49 = vpop.eup %5080 }
0x1297   :  { %v2062_v50 = vsel %vm304_vm2, %v5081_v49, 0.0 }
0x1298   :  { %v5083_v51 = vpop.eup %5082  ;;  %2063 = vadd.xlane.f32.xlu0 %v2062_v50 }
0x1299   :  { %v2059_v52 = vsel %vm304_vm2, %v5083_v51, 0.0 }
0x129c   :  { %2060 = vadd.xlane.f32.xlu0 %v2059_v52 }
0x12b2   :  { %2071 = vrot.lane.b32.xlu0 %v5515_v59, %s5165_s10 }
0x12b6   :  { %2156 = vrot.lane.b32.xlu0 %v5517_v63, %s5167_s12 }
0x1321   :  { %v2064_v53 = vpop.xlane.xlu0 %2063 }
0x1322   :  { %5084 = vrcp.f32 %v2064_v53 }
0x1325   :  { %v2061_v55 = vpop.xlane.xlu0 %2060 }
0x1326   :  { %5086 = vrcp.f32 %v2061_v55 }
0x1329   :  { %v2072_v58 = vpop.permute.xlu0 %2071 }
0x132a   :  { %4795 = vmatprep.subr.mxu1 %v2072_v58 }
0x132b   :  { %4796 = vmatpush3.msra.mxu1 %v2072_v58 }
0x132c   :  { %4797 = vmatprep.subr.mxu1 %v2070_v57 }
0x132d   :  { %4798 = vmatpush3.msra.mxu1 %v2070_v57  ;;  %v2157_v10 = vpop.permute.xlu0 %2156 }
0x132e   :  { %4802 = vmatprep.subr.msk.mxu1 %vm220_vm1, %v2163_v60 }
0x132f   :  { %v5085_v61 = vpop.eup %5084 }
0x1330   :  { %v2068_v3 = vmul.f32 %v5085_v61, %v5081_v49 }
0x1333   :  { %v5087_v62 = vpop.eup %5086 }
0x1334   :  { %v2067_v2 = vmul.f32 %v5087_v62, %v5083_v51 }
0x1336   :  { %4799 = vmatprep.mubr.msk.f32.mxu1 %vm304_vm2, %v2067_v2 }
0x1337   :  { %4800 = vmatmul.mubr.msk.f32.vlgmr.msra.gmra.mxu1 %vm304_vm2, %v2068_v3 }
0x1338   :  { %4803 = vmatpush3.xpose.msk.msra.mxu1 %vm220_vm1, %v2163_v60  ;;  %4806 = vmatprep.mubr.msk.f32.mxu1 %vm220_vm1, %v2157_v10 }
0x1339   :  { %4804 = vmatprep.subr.msk.mxu1 %vm220_vm1, %v2161_v4 }
0x133c   :  { %4805 = vmatpush3.xpose.msk.msra.mxu1 %vm220_vm1, %v2161_v4 }
0x133f   :  { %4807 = vmatmul.mubr.msk.f32.vlgmr.msra.gmra.mxu1 %vm220_vm1, %v2159_v9 }
0x13f7   :  { %v4801_v5 = vpop.f32.mrf.mxu1 }
0x13f9   :  { %v2147_v6 = vpop.f32.mrf.mxu1 }
0x13ff   :  { %v4808_v11 = vpop.f32.mrf.mxu1 }
0x1400   :  { %v2244_v12 = vadd.f32 %v4808_v11, %v5563_v29 }
0x1401   :  { %v2238_v13 = vpop.f32.mrf.mxu1 }
0x1402   :  { %v2239_v14 = vadd.f32 %v2238_v13, %v5565_v27  ;;  %v2250_v15 = vsel %vm304_vm2, %v2244_v12, -inf }
0x1403   :  { %2251 = vmax.xlane.f32.xlu1 %v2250_v15 }
0x1404   :  { %v2247_v17 = vsel %vm304_vm2, %v2239_v14, -inf }
0x1405   :  { %2248 = vmax.xlane.f32.xlu0 %v2247_v17  ;;  %v4345_v17 = vld [vmem:[%s6151_s2 + $0x7] ss:$0 sm:$0xff] }
0x1414   :  { %2269 = vrot.lane.b32.xlu1 %v5517_v63, %s5168_s13 }
0x1418   :  { %2358 = vrot.lane.b32.xlu1 %v5615_v34, %s5169_s14 }
0x141c   :  { %2360 = vrot.lane.b32.xlu1 %v5613_v38, %s5169_s14 }
0x1420   :  { %2368 = vrot.lane.b32.xlu1 %v4801_v5, %s5170_s15 }
0x148c   :  { %v2252_v29 = vpop.xlane.xlu1 %2251 }
0x148d   :  { %v2254_v18 = vsub.f32 %v2244_v12, %v2252_v29  ;;  %v1404_v29 = vadd.f32 %v4345_v17, %v5607_v28 }
0x148e   :  { %v2249_v27 = vpop.xlane.xlu0 %2248 }
0x148f   :  { %v2257_v19 = vmul.f32 1.442695, %v2254_v18  ;;  %v2253_v1 = vsub.f32 %v2239_v14, %v2249_v27  ;;  %v1409_v18 = vadd.f32 %v5605_v26, %v4345_v17  ;;  %v1412_v27 = vadd.f32 %v1404_v29, %v5460_v7 }
0x1490   :  { %v2270_v33 = vpop.permute.xlu1 %2269 }
0x1491   :  { %5088 = vpow2.f32 %v2257_v19  ;;  %v2255_v0 = vmul.f32 1.442695, %v2253_v1  ;;  %v1413_v19 = vadd.f32 %v1409_v18, %v5462_v8  ;;  %v1416_v1 = vsel %vm20_vm0, %v1412_v27, 0.0  ;;  %v4380_v8 = vld [vmem:[%s6151_s2 + $0xc] ss:$0 sm:$0xff] }
0x1493   :  { %5090 = vpow2.f32 %v2255_v0  ;;  %v1419_v0 = vsel %vm20_vm0, %v1413_v19, 0.0 }
0x1494   :  { %v2359_v44 = vpop.permute.xlu1 %2358 }
0x1495   :  { %v2380_v36 = vsel %vm220_vm1, %v5611_v32, %v2359_v44  ;;  %v4377_v32 = vld [vmem:[%s6151_s2 + $0xb] ss:$0 sm:$0xff] }
0x1498   :  { %v2361_v45 = vpop.permute.xlu1 %2360 }
0x1499   :  { %v2381_v49 = vsel %vm220_vm1, %v5609_v30, %v2361_v45 }
0x149c   :  { %v2369_v46 = vpop.permute.xlu1 %2368 }
0x149d   :  { %v2383_v52 = vsel %vm304_vm2, %v2381_v49, %v2369_v46  ;;  %v2547_v49 = vld [vmem:[%s6150_s1 + $0xe8] sm:$0xff] }
0x149e   :  { %v5089_v20 = vpop.eup %5088 }
0x149f   :  { %v2262_v21 = vsel %vm304_vm2, %v5089_v20, 0.0 }
0x14a0   :  { %v5091_v63 = vpop.eup %5090  ;;  %2263 = vadd.xlane.f32.xlu0 %v2262_v21 }
0x14a1   :  { %v2259_v22 = vsel %vm304_vm2, %v5091_v63, 0.0 }
0x14a4   :  { %2260 = vadd.xlane.f32.xlu0 %v2259_v22 }
0x14ba   :  { %2271 = vrot.lane.b32.xlu0 %v5515_v59, %s5168_s13  ;;  %v1551_v59 = vld [vmem:[%s6150_s1 + $0xd8] sm:$0xff] }
0x14be   :  { %2366 = vrot.lane.b32.xlu0 %v2147_v6, %s5170_s15 }
0x1529   :  { %v2264_v23 = vpop.xlane.xlu0 %2263 }
0x152a   :  { %5092 = vrcp.f32 %v2264_v23 }
0x152d   :  { %v2261_v31 = vpop.xlane.xlu0 %2260 }
0x152e   :  { %5094 = vrcp.f32 %v2261_v31 }
0x1531   :  { %v2272_v24 = vpop.permute.xlu0 %2271 }
0x1532   :  { %4809 = vmatprep.subr.mxu0 %v2272_v24 }
0x1533   :  { %4810 = vmatpush3.msra.mxu0 %v2272_v24 }
0x1534   :  { %4811 = vmatprep.subr.mxu0 %v2270_v33 }
0x1535   :  { %4812 = vmatpush3.msra.mxu0 %v2270_v33  ;;  %v2367_v47 = vpop.permute.xlu0 %2366 }
0x1536   :  { %4816 = vmatprep.subr.mxu0 %v1551_v59  ;;  %v2382_v50 = vsel %vm304_vm2, %v2380_v36, %v2367_v47 }
0x1537   :  { %v5093_v42 = vpop.eup %5092 }
0x1538   :  { %v2268_v25 = vmul.f32 %v5093_v42, %v5089_v20  ;;  %v4381_v20 = vld [vmem:[%s6151_s2 + $0xd] ss:$0 sm:$0xff] }
0x153b   :  { %v5095_v38 = vpop.eup %5094 }
0x153c   :  { %v2267_v34 = vmul.f32 %v5095_v38, %v5091_v63 }
0x153e   :  { %4813 = vmatprep.mubr.msk.f32.mxu0 %vm304_vm2, %v2267_v34 }
0x153f   :  { %4814 = vmatmul.mubr.msk.f32.vlgmr.msra.gmra.mxu0 %vm304_vm2, %v2268_v25 }
0x1540   :  { %4817 = vmatpush3.msra.mxu0 %v1551_v59  ;;  %v2643_v59 = vld [vmem:[%s6150_s1 + $0x118] sm:$0xff] }
0x1541   :  { %4818 = vmatprep.subr.mxu0 %v1550_v35 }
0x1542   :  { %4819 = vmatpush3.msra.mxu0 %v1550_v35  ;;  %v2642_v35 = vld [vmem:[%s6150_s1 + $0x110] sm:$0xff] }
0x1543   :  { %4820 = vmatprep.subr.mxu0 %v1549_v37 }
0x1544   :  { %4821 = vmatpush3.msra.mxu0 %v1549_v37  ;;  %v2641_v37 = vld [vmem:[%s6150_s1 + $0x108] sm:$0xff] }
0x1545   :  { %4822 = vmatprep.subr.mxu0 %v1548_v39 }
0x1546   :  { %4823 = vmatpush3.msra.mxu0 %v1548_v39  ;;  %v2640_v39 = vld [vmem:[%s6150_s1 + $0x100] sm:$0xff] }
0x1547   :  { %4838 = vmatprep.subr.mxu0 %v2643_v59 }
0x15ff   :  { %v4815_v40 = vpop.f32.mrf.mxu0 }
0x1600   :  { %2376 = vrot.lane.b32.xlu1 %v4815_v40, %s5171_s24  ;;  %v2549_v40 = vld [vmem:[%s6150_s1 + $0xf8] sm:$0xff] }
0x1601   :  { %v2347_v43 = vpop.f32.mrf.mxu0  ;;  %4827 = vmatprep.subr.mxu1 %v2549_v40 }
0x1602   :  { %2374 = vrot.lane.b32.xlu0 %v2347_v43, %s5171_s24  ;;  %v2548_v43 = vld [vmem:[%s6150_s1 + $0xf0] sm:$0xff]  ;;  %4828 = vmatpush3.msra.mxu1 %v2549_v40 }
0x1603   :  { %4829 = vmatprep.subr.mxu1 %v2548_v43 }
0x1604   :  { %4830 = vmatpush3.msra.mxu1 %v2548_v43 }
0x1605   :  { %4831 = vmatprep.subr.mxu1 %v2547_v49 }
0x1606   :  { %4832 = vmatpush3.msra.mxu1 %v2547_v49 }
0x1672   :  { %v2377_v48 = vpop.permute.xlu1 %2376 }
0x1673   :  { %v2385_v55 = vsel %vm1042_vm3, %v2383_v52, %v2377_v48 }
0x1674   :  { %v2375_v51 = vpop.permute.xlu0 %2374 }
0x1675   :  { %v2384_v53 = vsel %vm1042_vm3, %v2382_v50, %v2375_v51  ;;  %v2546_v50 = vld [vmem:[%s6150_s1 + $0xe0] sm:$0xff] }
0x1676   :  { %4824 = vmatprep.mubr.msk.f32.mxu0 %vm20_vm0, %v2384_v53  ;;  %4833 = vmatprep.subr.mxu1 %v2546_v50 }
0x1677   :  { %4825 = vmatmul.mubr.msk.f32.vlgmr.msra.gmra.mxu0 %vm20_vm0, %v2385_v55  ;;  %4834 = vmatpush3.msra.mxu1 %v2546_v50 }
0x1678   :  { %4839 = vmatpush3.msra.mxu0 %v2643_v59 }
0x1679   :  { %4840 = vmatprep.subr.mxu0 %v2642_v35 }
0x167a   :  { %4841 = vmatpush3.msra.mxu0 %v2642_v35 }
0x167b   :  { %4842 = vmatprep.subr.mxu0 %v2641_v37 }
0x167c   :  { %4843 = vmatpush3.msra.mxu0 %v2641_v37 }
0x167d   :  { %4844 = vmatprep.subr.mxu0 %v2640_v39 }
0x167e   :  { %4845 = vmatpush3.msra.mxu0 %v2640_v39 }
0x1737   :  { %v4826_v57 = vpop.f32.mrf.mxu0 }
0x1738   :  { %v2469_v58 = vadd.f32 %v4826_v57, %v4377_v32 }
0x1739   :  { %v2463_v30 = vpop.f32.mrf.mxu0 }
0x173a   :  { %v2464_v60 = vadd.f32 %v4377_v32, %v2463_v30  ;;  %2476 = vrot.lane.b32.xlu1 %v2469_v58, %s5172_s27 }
0x173c   :  { %2474 = vrot.lane.b32.xlu0 %v2464_v60, %s5172_s27 }
0x17ac   :  { %v2477_v61 = vpop.permute.xlu1 %2476 }
0x17ad   :  { %v2481_v62 = vadd.f32 %v2477_v61, %v5450_v56 }
0x17ae   :  { %v2475_v2 = vpop.permute.xlu0 %2474 }
0x17af   :  { %v2480_v3 = vadd.f32 %v2475_v2, %v5446_v54  ;;  %2488 = vrot.lane.b32.xlu1 %v2481_v62, %s5158_s30 }
0x17b1   :  { %2486 = vrot.lane.b32.xlu0 %v2480_v3, %s5158_s30 }
0x1821   :  { %v2489_v10 = vpop.permute.xlu1 %2488 }
0x1822   :  { %v2495_v4 = vsel %vm20_vm0, %v2489_v10, 0.0 }
0x1823   :  { %2496 = vadd.xlane.f32.xlu1 %v2495_v4  ;;  %v2487_v9 = vpop.permute.xlu0 %2486 }
0x1824   :  { %v2492_v5 = vsel %vm20_vm0, %v2487_v9, 0.0 }
0x1825   :  { %2493 = vadd.xlane.f32.xlu0 %v2492_v5 }
0x18ac   :  { %v2497_v6 = vpop.xlane.xlu1 %2496 }
0x18ad   :  { %v2499_v11 = vmul.f32 0.03125, %v2497_v6  ;;  %v4348_v6 = vld [vmem:[%s6151_s2 + $0x8] ss:$0 sm:$0xff] }
0x18ae   :  { %v2494_v12 = vpop.xlane.xlu0 %2493 }
0x18af   :  { %v5696_v13 = vsub.f32 %v2481_v62, %v2499_v11  ;;  %v2498_v56 = vmul.f32 0.03125, %v2494_v12  ;;  %v4349_v12 = vld [vmem:[%s6151_s2 + $0x9] ss:$0 sm:$0xff] }
0x18b1   :  { %v2503_v54 = vmul.f32 %v5696_v13, %v5696_v13  ;;  %v5700_v14 = vsub.f32 %v2480_v3, %v2498_v56 }
0x18b3   :  { %v2502_v15 = vmul.f32 %v5700_v14, %v5700_v14  ;;  %2508 = vrot.lane.b32.xlu1 %v2503_v54, %s5158_s30 }
0x18b5   :  { %2506 = vrot.lane.b32.xlu0 %v2502_v15, %s5158_s30 }
0x18d4   :  { %1417 = vadd.xlane.f32.xlu0 %v1416_v1 }
0x18d7   :  { %1420 = vadd.xlane.f32.xlu1 %v1419_v0 }
0x18e8   :  { %2541 = vrot.lane.b32.xlu1 %v4381_v20, %s5172_s27 }
0x1925   :  { %v2509_v26 = vpop.permute.xlu1 %2508 }
0x1926   :  { %v2515_v7 = vsel %vm20_vm0, %v2509_v26, 0.0 }
0x1927   :  { %v2507_v21 = vpop.permute.xlu0 %2506 }
0x1928   :  { %v2512_v28 = vsel %vm20_vm0, %v2507_v21, 0.0  ;;  %v4382_v21 = vld [vmem:[%s6151_s2 + $0xe] ss:$0 sm:$0xff] }
0x1929   :  { %2513 = vadd.xlane.f32.xlu0 %v2512_v28 }
0x192d   :  { %2516 = vadd.xlane.f32.xlu0 %v2515_v7 }
0x1943   :  { %2531 = vrot.lane.b32.xlu0 %v4380_v8, %s5172_s27 }
0x195d   :  { %v1418_v63 = vpop.xlane.xlu0 %1417 }
0x195e   :  { %v1422_v22 = vmul.f32 0.03125, %v1418_v63 }
0x1960   :  { %v5725_v23 = vsub.f32 %v1412_v27, %v1422_v22  ;;  %v1421_v31 = vpop.xlane.xlu1 %1420  ;;  %v4385_v27 = vld [vmem:[%s6151_s2 + $0xf] ss:$0 sm:$0xff] }
0x1961   :  { %v1423_v24 = vmul.f32 0.03125, %v1421_v31 }
0x1962   :  { %v1426_v33 = vmul.f32 %v5725_v23, %v5725_v23 }
0x1963   :  { %v5729_v42 = vsub.f32 %v1413_v19, %v1423_v24 }
0x1964   :  { %v1428_v38 = vsel %vm20_vm0, %v1426_v33, 0.0  ;;  %v2542_v55 = vpop.permute.xlu1 %2541 }
0x1965   :  { %1429 = vadd.xlane.f32.xlu1 %v1428_v38  ;;  %v1427_v34 = vmul.f32 %v5729_v42, %v5729_v42 }
0x1967   :  { %v1431_v25 = vsel %vm20_vm0, %v1427_v34, 0.0 }
0x1968   :  { %1432 = vadd.xlane.f32.xlu0 %v1431_v25 }
0x19b2   :  { %v2514_v44 = vpop.xlane.xlu0 %2513 }
0x19b3   :  { %v2518_v45 = vmul.f32 0.03125, %v2514_v44 }
0x19b5   :  { %v2520_v46 = vadd.f32 1e-05, %v2518_v45 }
0x19b6   :  { %v2517_v47 = vpop.xlane.xlu0 %2516 }
0x19b7   :  { %5096 = vrsqrt.f32 %v2520_v46  ;;  %v2519_v36 = vmul.f32 0.03125, %v2517_v47 }
0x19b9   :  { %v2521_v48 = vadd.f32 1e-05, %v2519_v36 }
0x19ba   :  { %v2532_v52 = vpop.permute.xlu0 %2531 }
0x19bb   :  { %5098 = vrsqrt.f32 %v2521_v48 }
0x19c4   :  { %v5097_v51 = vpop.eup %5096 }
0x19c5   :  { %v2524_v53 = vmul.f32 %v5097_v51, %v5700_v14 }
0x19c7   :  { %v2534_v32 = vmul.f32 %v2532_v52, %v2524_v53 }
0x19c8   :  { %v5099_v57 = vpop.eup %5098 }
0x19c9   :  { %v2525_v58 = vmul.f32 %v5099_v57, %v5696_v13  ;;  %v5761_v30 = vadd.f32 %v2542_v55, %v2534_v32 }
0x19cb   :  { %v2535_v60 = vmul.f32 %v2532_v52, %v2525_v58  ;;  %2557 = vrot.lane.b32.xlu0 %v5761_v30, %s5158_s30 }
0x19cd   :  { %v5765_v61 = vadd.f32 %v2542_v55, %v2535_v60 }
0x19cf   :  { %2559 = vrot.lane.b32.xlu1 %v5765_v61, %s5158_s30 }
0x19ee   :  { %v1430_v62 = vpop.xlane.xlu1 %1429 }
0x19ef   :  { %v1434_v2 = vmul.f32 0.03125, %v1430_v62 }
0x19f1   :  { %v1436_v3 = vadd.f32 1e-05, %v1434_v2  ;;  %v1433_v10 = vpop.xlane.xlu0 %1432 }
0x19f2   :  { %v1435_v4 = vmul.f32 0.03125, %v1433_v10 }
0x19f3   :  { %5100 = vrsqrt.f32 %v1436_v3 }
0x19f4   :  { %v1437_v9 = vadd.f32 1e-05, %v1435_v4 }
0x19f6   :  { %5102 = vrsqrt.f32 %v1437_v9 }
0x1a00   :  { %v5101_v5 = vpop.eup %5100 }
0x1a01   :  { %v1440_v11 = vmul.f32 %v5101_v5, %v5725_v23 }
0x1a03   :  { %v5103_v13 = vpop.eup %5102  ;;  %v1446_v56 = vmul.f32 %v4348_v6, %v1440_v11 }
0x1a04   :  { %v1441_v54 = vmul.f32 %v5103_v13, %v5729_v42 }
0x1a05   :  { %v1452_v14 = vadd.f32 %v4349_v12, %v1446_v56 }
0x1a06   :  { %v1447_v15 = vmul.f32 %v4348_v6, %v1441_v54 }
0x1a07   :  { %4846 = vmatprep.mubr.msk.f32.mxu0 %vm20_vm0, %v1452_v14 }
0x1a08   :  { %v1453_v17 = vadd.f32 %v4349_v12, %v1447_v15 }
0x1a0a   :  { %4847 = vmatmul.mubr.msk.f32.vlgmr.msra.gmra.mxu0 %vm20_vm0, %v1453_v17 }
0x1a3d   :  { %v2558_v29 = vpop.permute.xlu0 %2557 }
0x1a3e   :  { %4835 = vmatprep.mubr.msk.f32.mxu1 %vm20_vm0, %v2558_v29 }
0x1a41   :  { %v2560_v18 = vpop.permute.xlu1 %2559 }
0x1a42   :  { %4836 = vmatmul.mubr.msk.f32.vlgmr.msra.gmra.mxu1 %vm20_vm0, %v2560_v18 }
0x1aca   :  { %v4848_v19 = vpop.f32.mrf.mxu0 }
0x1acb   :  { %v5784_v1 = vadd.f32 %v4848_v19, %v4385_v27 }
0x1acc   :  { %v2721_v0 = vpop.f32.mrf.mxu0 }
0x1acd   :  { %v5786_v20 = vadd.f32 %v4385_v27, %v2721_v0  ;;  %2942 = vrot.lane.b32.xlu1 %v5784_v1, %s5161_s6  ;;  %4849 = vmatprep.subr.msk.mxu1 %vm220_vm1, %v5784_v1 }
0x1ace   :  { %4850 = vmatpush3.xpose.msk.msra.mxu1 %vm220_vm1, %v5784_v1 }
0x1acf   :  { %4851 = vmatprep.subr.msk.mxu1 %vm220_vm1, %v5786_v20 }
0x1ad1   :  { %2940 = vrot.lane.b32.xlu1 %v5786_v20, %s5161_s6 }
0x1ad2   :  { %4852 = vmatpush3.xpose.msk.msra.mxu1 %vm220_vm1, %v5786_v20 }
0x1b02   :  { %v4837_v28 = vpop.f32.mrf.mxu1 }
0x1b03   :  { %v5803_v26 = vadd.f32 %v4837_v28, %v4382_v21 }
0x1b04   :  { %v2631_v7 = vpop.f32.mrf.mxu1 }
0x1b05   :  { %v5805_v8 = vadd.f32 %v4382_v21, %v2631_v7  ;;  %2938 = vrot.lane.b32.xlu1 %v5803_v26, %s5161_s6 }
0x1b07   :  { %2936 = vrot.lane.b32.xlu0 %v5805_v8, %s5161_s6  ;;  %4853 = vmatprep.mubr.msk.f32.mxu1 %vm220_vm1, %v5805_v8 }
0x1b08   :  { %4854 = vmatmul.mubr.msk.f32.vlgmr.msra.gmra.mxu1 %vm220_vm1, %v5803_v26 }
0x1b09   :  { %2736 = vrot.lane.b32.xlu1 %v5545_v41, %s5172_s27 }
0x1b0b   :  { %2734 = vrot.lane.b32.xlu0 %v5534_v16, %s5172_s27 }
0x1b3f   :  { %v2943_v63 = vpop.permute.xlu1 %2942 }
0x1b40   :  { %4863 = vmatprep.subr.msk.mxu1 %vm220_vm1, %v2943_v63 }
0x1b41   :  { %4864 = vmatpush3.xpose.msk.msra.mxu1 %vm220_vm1, %v2943_v63 }
0x1b43   :  { %v2941_v22 = vpop.permute.xlu1 %2940 }
0x1b44   :  { %4865 = vmatprep.subr.msk.mxu1 %vm220_vm1, %v2941_v22 }
0x1b45   :  { %4866 = vmatpush3.xpose.msk.msra.mxu1 %vm220_vm1, %v2941_v22 }
0x1b77   :  { %v2939_v31 = vpop.permute.xlu1 %2938 }
0x1b79   :  { %v2937_v23 = vpop.permute.xlu0 %2936 }
0x1b7a   :  { %4867 = vmatprep.mubr.msk.f32.mxu1 %vm220_vm1, %v2937_v23 }
0x1b7b   :  { %4868 = vmatmul.mubr.msk.f32.vlgmr.msra.gmra.mxu1 %vm220_vm1, %v2939_v31  ;;  %v5825_v41 = vpop.permute.xlu1 %2736 }
0x1b7d   :  { %v5827_v16 = vpop.permute.xlu0 %2734 }
0x1bc8   :  { %v4855_v24 = vpop.f32.mrf.mxu1 }
0x1bc9   :  { %v2824_v33 = vadd.f32 %v4855_v24, %v5825_v41 }
0x1bca   :  { %v2818_v42 = vpop.f32.mrf.mxu1 }
0x1bcb   :  { %v2819_v38 = vadd.f32 %v2818_v42, %v5827_v16  ;;  %v2830_v34 = vsel %vm304_vm2, %v2824_v33, -inf }
0x1bcc   :  { %2831 = vmax.xlane.f32.xlu1 %v2830_v34 }
0x1bcd   :  { %v2827_v25 = vsel %vm304_vm2, %v2819_v38, -inf }
0x1bce   :  { %2828 = vmax.xlane.f32.xlu0 %v2827_v25 }
0x1bdd   :  { %2849 = vrot.lane.b32.xlu1 %v5786_v20, %s5158_s30 }
0x1be1   :  { %3051 = vrot.lane.b32.xlu1 %v5784_v1, %s5160_s5 }
0x1be5   :  { %3049 = vrot.lane.b32.xlu1 %v5786_v20, %s5160_s5 }
0x1c3b   :  { %v4869_v59 = vpop.f32.mrf.mxu1 }
0x1c3c   :  { %v3024_v39 = vadd.f32 %v4869_v59, %v5825_v41 }
0x1c3d   :  { %v3018_v35 = vpop.f32.mrf.mxu1 }
0x1c3e   :  { %v3019_v37 = vadd.f32 %v3018_v35, %v5827_v16  ;;  %v3030_v43 = vsel %vm304_vm2, %v3024_v39, -inf }
0x1c40   :  { %v3027_v40 = vsel %vm304_vm2, %v3019_v37, -inf }
0x1c41   :  { %3028 = vmax.xlane.f32.xlu0 %v3027_v40 }
0x1c45   :  { %3031 = vmax.xlane.f32.xlu0 %v3030_v43 }
0x1c55   :  { %v2832_v44 = vpop.xlane.xlu1 %2831 }
0x1c56   :  { %v2834_v45 = vsub.f32 %v2824_v33, %v2832_v44 }
0x1c57   :  { %v2829_v47 = vpop.xlane.xlu0 %2828 }
0x1c58   :  { %v2837_v46 = vmul.f32 1.442695, %v2834_v45  ;;  %v2833_v36 = vsub.f32 %v2819_v38, %v2829_v47 }
0x1c59   :  { %v2850_v60 = vpop.permute.xlu1 %2849 }
0x1c5a   :  { %5104 = vpow2.f32 %v2837_v46  ;;  %v2835_v48 = vmul.f32 1.442695, %v2833_v36 }
0x1c5b   :  { %2851 = vrot.lane.b32.xlu0 %v5784_v1, %s5158_s30 }
0x1c5c   :  { %5106 = vpow2.f32 %v2835_v48 }
0x1c5d   :  { %v3052_v3 = vpop.permute.xlu1 %3051 }
0x1c61   :  { %v3050_v6 = vpop.permute.xlu1 %3049 }
0x1c67   :  { %v5105_v49 = vpop.eup %5104 }
0x1c68   :  { %v2842_v50 = vsel %vm304_vm2, %v5105_v49, 0.0 }
0x1c69   :  { %2843 = vadd.xlane.f32.xlu1 %v2842_v50  ;;  %v5107_v51 = vpop.eup %5106 }
0x1c6a   :  { %v2839_v52 = vsel %vm304_vm2, %v5107_v51, 0.0 }
0x1c7a   :  { %2840 = vadd.xlane.f32.xlu0 %v2839_v52 }
0x1cca   :  { %v3029_v53 = vpop.xlane.xlu0 %3028 }
0x1ccb   :  { %v3033_v55 = vsub.f32 %v3019_v37, %v3029_v53 }
0x1ccd   :  { %v3035_v32 = vmul.f32 1.442695, %v3033_v55 }
0x1cce   :  { %v3032_v57 = vpop.xlane.xlu0 %3031 }
0x1ccf   :  { %5108 = vpow2.f32 %v3035_v32  ;;  %v3034_v58 = vsub.f32 %v3024_v39, %v3032_v57 }
0x1cd1   :  { %v3037_v62 = vmul.f32 1.442695, %v3034_v58 }
0x1cd2   :  { %v2852_v2 = vpop.permute.xlu0 %2851 }
0x1cd3   :  { %5110 = vpow2.f32 %v3037_v62  ;;  %4856 = vmatprep.subr.mxu0 %v2852_v2 }
0x1cd4   :  { %4857 = vmatpush3.msra.mxu0 %v2852_v2 }
0x1cd5   :  { %4858 = vmatprep.subr.mxu0 %v2850_v60 }
0x1cd6   :  { %4859 = vmatpush3.msra.mxu0 %v2850_v60 }
0x1cd7   :  { %4870 = vmatprep.subr.mxu0 %v3052_v3 }
0x1cdc   :  { %v5109_v10 = vpop.eup %5108 }
0x1cdd   :  { %v3039_v4 = vsel %vm304_vm2, %v5109_v10, 0.0 }
0x1cde   :  { %3040 = vadd.xlane.f32.xlu0 %v3039_v4 }
0x1ce0   :  { %v5111_v9 = vpop.eup %5110 }
0x1ce1   :  { %v3042_v5 = vsel %vm304_vm2, %v5111_v9, 0.0 }
0x1ce2   :  { %3043 = vadd.xlane.f32.xlu1 %v3042_v5 }
0x1cf2   :  { %v2844_v11 = vpop.xlane.xlu1 %2843 }
0x1cf3   :  { %3140 = vrot.lane.b32.xlu1 %v5786_v20, %s5164_s9  ;;  %5112 = vrcp.f32 %v2844_v11 }
0x1cf4   :  { %3142 = vrot.lane.b32.xlu0 %v5784_v1, %s5164_s9 }
0x1cf7   :  { %3138 = vrot.lane.b32.xlu1 %v5803_v26, %s5164_s9 }
0x1cf8   :  { %3136 = vrot.lane.b32.xlu0 %v5805_v8, %s5164_s9 }
0x1d00   :  { %v5113_v13 = vpop.eup %5112 }
0x1d01   :  { %v2848_v14 = vmul.f32 %v5113_v13, %v5105_v49 }
0x1d03   :  { %v2841_v12 = vpop.xlane.xlu0 %2840 }
0x1d04   :  { %5114 = vrcp.f32 %v2841_v12 }
0x1d11   :  { %v5115_v56 = vpop.eup %5114 }
0x1d12   :  { %v2847_v54 = vmul.f32 %v5115_v56, %v5107_v51 }
0x1d14   :  { %4860 = vmatprep.mubr.msk.f32.mxu0 %vm304_vm2, %v2847_v54 }
0x1d15   :  { %4861 = vmatmul.mubr.msk.f32.vlgmr.msra.gmra.mxu0 %vm304_vm2, %v2848_v14 }
0x1d16   :  { %4871 = vmatpush3.msra.mxu0 %v3052_v3 }
0x1d17   :  { %4872 = vmatprep.subr.mxu0 %v3050_v6 }
0x1d18   :  { %4873 = vmatpush3.msra.mxu0 %v3050_v6 }
0x1d67   :  { %v3041_v15 = vpop.xlane.xlu0 %3040 }
0x1d68   :  { %5116 = vrcp.f32 %v3041_v15 }
0x1d6b   :  { %v3044_v17 = vpop.xlane.xlu1 %3043  ;;  %v3143_v29 = vpop.permute.xlu0 %3142 }
0x1d6c   :  { %5118 = vrcp.f32 %v3044_v17  ;;  %4877 = vmatprep.subr.msk.mxu0 %vm220_vm1, %v3143_v29 }
0x1d6f   :  { %v3137_v21 = vpop.permute.xlu0 %3136  ;;  %v3141_v28 = vpop.permute.xlu1 %3140 }
0x1d73   :  { %v3139_v7 = vpop.permute.xlu1 %3138 }
0x1d75   :  { %v5117_v18 = vpop.eup %5116 }
0x1d76   :  { %v3047_v27 = vmul.f32 %v5117_v18, %v5109_v10 }
0x1d78   :  { %4874 = vmatprep.mubr.msk.f32.mxu0 %vm304_vm2, %v3047_v27 }
0x1d79   :  { %v5119_v19 = vpop.eup %5118 }
0x1d7a   :  { %v3048_v0 = vmul.f32 %v5119_v19, %v5111_v9 }
0x1d7c   :  { %4875 = vmatmul.mubr.msk.f32.vlgmr.msra.gmra.mxu0 %vm304_vm2, %v3048_v0 }
0x1d7d   :  { %4878 = vmatpush3.xpose.msk.msra.mxu0 %vm220_vm1, %v3143_v29  ;;  %4881 = vmatprep.mubr.msk.f32.mxu0 %vm220_vm1, %v3137_v21  ;;  %v2732_v21 = vld [vmem:[%s6150_s1 + $0x130] sm:$0xff] }
0x1d7e   :  { %4879 = vmatprep.subr.msk.mxu0 %vm220_vm1, %v3141_v28 }
0x1d81   :  { %4880 = vmatpush3.xpose.msk.msra.mxu0 %vm220_vm1, %v3141_v28  ;;  %v2731_v28 = vld [vmem:[%s6150_s1 + $0x128] sm:$0xff] }
0x1d84   :  { %4882 = vmatmul.mubr.msk.f32.vlgmr.msra.gmra.mxu0 %vm220_vm1, %v3139_v7  ;;  %v2730_v7 = vld [vmem:[%s6150_s1 + $0x120] sm:$0xff] }
0x1dd5   :  { %v5867_v63 = vpop.f32.mrf.mxu0 }
0x1dd7   :  { %v5869_v22 = vpop.f32.mrf.mxu0 }
0x1e3c   :  { %v5871_v23 = vpop.f32.mrf.mxu0 }
0x1e3e   :  { %v5873_v31 = vpop.f32.mrf.mxu0 }
0x1e44   :  { %v4883_v24 = vpop.f32.mrf.mxu0 }
0x1e45   :  { %v3224_v33 = vadd.f32 %v4883_v24, %v5825_v41 }
0x1e46   :  { %v3218_v42 = vpop.f32.mrf.mxu0 }
0x1e47   :  { %v3219_v38 = vadd.f32 %v3218_v42, %v5827_v16  ;;  %v3230_v34 = vsel %vm304_vm2, %v3224_v33, -inf }
0x1e48   :  { %3231 = vmax.xlane.f32.xlu1 %v3230_v34 }
0x1e49   :  { %v3227_v25 = vsel %vm304_vm2, %v3219_v38, -inf }
0x1e4a   :  { %3228 = vmax.xlane.f32.xlu0 %v3227_v25 }
0x1e59   :  { %3249 = vrot.lane.b32.xlu1 %v5786_v20, %s5163_s8 }
0x1e5d   :  { %3342 = vrot.lane.b32.xlu1 %v5784_v1, %s5167_s12 }
0x1e61   :  { %3340 = vrot.lane.b32.xlu1 %v5786_v20, %s5167_s12 }
0x1e65   :  { %3338 = vrot.lane.b32.xlu1 %v5803_v26, %s5167_s12 }
0x1ed1   :  { %v3232_v59 = vpop.xlane.xlu1 %3231 }
0x1ed2   :  { %v3234_v35 = vsub.f32 %v3224_v33, %v3232_v59 }
0x1ed3   :  { %v3229_v37 = vpop.xlane.xlu0 %3228 }
0x1ed4   :  { %v3237_v39 = vmul.f32 1.442695, %v3234_v35  ;;  %v3233_v40 = vsub.f32 %v3219_v38, %v3229_v37 }
0x1ed5   :  { %v3250_v48 = vpop.permute.xlu1 %3249 }
0x1ed6   :  { %5120 = vpow2.f32 %v3237_v39  ;;  %v3235_v43 = vmul.f32 1.442695, %v3233_v40 }
0x1ed8   :  { %5122 = vpow2.f32 %v3235_v43 }
0x1ed9   :  { %v3343_v50 = vpop.permute.xlu1 %3342 }
0x1edd   :  { %v3341_v32 = vpop.permute.xlu1 %3340 }
0x1ee1   :  { %v3339_v57 = vpop.permute.xlu1 %3338 }
0x1ee3   :  { %v5121_v44 = vpop.eup %5120 }
0x1ee4   :  { %v3242_v45 = vsel %vm304_vm2, %v5121_v44, 0.0 }
0x1ee5   :  { %v5123_v46 = vpop.eup %5122  ;;  %3243 = vadd.xlane.f32.xlu0 %v3242_v45 }
0x1ee6   :  { %v3239_v47 = vsel %vm304_vm2, %v5123_v46, 0.0 }
0x1ee9   :  { %3240 = vadd.xlane.f32.xlu0 %v3239_v47 }
0x1eff   :  { %3251 = vrot.lane.b32.xlu0 %v5784_v1, %s5163_s8 }
0x1f03   :  { %3336 = vrot.lane.b32.xlu0 %v5805_v8, %s5167_s12 }
0x1f6e   :  { %v3244_v26 = vpop.xlane.xlu0 %3243 }
0x1f6f   :  { %5124 = vrcp.f32 %v3244_v26 }
0x1f72   :  { %v3241_v36 = vpop.xlane.xlu0 %3240 }
0x1f73   :  { %5126 = vrcp.f32 %v3241_v36 }
0x1f76   :  { %v3252_v49 = vpop.permute.xlu0 %3251 }
0x1f77   :  { %4884 = vmatprep.subr.mxu1 %v3252_v49 }
0x1f78   :  { %4885 = vmatpush3.msra.mxu1 %v3252_v49 }
0x1f79   :  { %4886 = vmatprep.subr.mxu1 %v3250_v48 }
0x1f7a   :  { %4887 = vmatpush3.msra.mxu1 %v3250_v48  ;;  %v3337_v8 = vpop.permute.xlu0 %3336 }
0x1f7b   :  { %4891 = vmatprep.subr.msk.mxu1 %vm220_vm1, %v3343_v50 }
0x1f7c   :  { %v5125_v51 = vpop.eup %5124 }
0x1f7d   :  { %v3248_v55 = vmul.f32 %v5125_v51, %v5121_v44 }
0x1f80   :  { %v5127_v52 = vpop.eup %5126 }
0x1f81   :  { %v3247_v53 = vmul.f32 %v5127_v52, %v5123_v46 }
0x1f83   :  { %4888 = vmatprep.mubr.msk.f32.mxu1 %vm304_vm2, %v3247_v53 }
0x1f84   :  { %4889 = vmatmul.mubr.msk.f32.vlgmr.msra.gmra.mxu1 %vm304_vm2, %v3248_v55 }
0x1f85   :  { %4892 = vmatpush3.xpose.msk.msra.mxu1 %vm220_vm1, %v3343_v50  ;;  %4895 = vmatprep.mubr.msk.f32.mxu1 %vm220_vm1, %v3337_v8 }
0x1f86   :  { %4893 = vmatprep.subr.msk.mxu1 %vm220_vm1, %v3341_v32 }
0x1f89   :  { %4894 = vmatpush3.xpose.msk.msra.mxu1 %vm220_vm1, %v3341_v32 }
0x1f8c   :  { %4896 = vmatmul.mubr.msk.f32.vlgmr.msra.gmra.mxu1 %vm220_vm1, %v3339_v57 }
0x2044   :  { %v4890_v58 = vpop.f32.mrf.mxu1 }
0x2046   :  { %v3327_v60 = vpop.f32.mrf.mxu1 }
0x204c   :  { %v4897_v62 = vpop.f32.mrf.mxu1 }
0x204d   :  { %v3424_v2 = vadd.f32 %v4897_v62, %v5825_v41 }
0x204e   :  { %v3418_v3 = vpop.f32.mrf.mxu1 }
0x204f   :  { %v3419_v10 = vadd.f32 %v3418_v3, %v5827_v16  ;;  %v3430_v4 = vsel %vm304_vm2, %v3424_v2, -inf }
0x2050   :  { %3431 = vmax.xlane.f32.xlu1 %v3430_v4  ;;  %v4415_v4 = vld [vmem:[%s6151_s2 + $0x11] ss:$0 sm:$0xff] }
0x2051   :  { %v3427_v9 = vsel %vm304_vm2, %v3419_v10, -inf }
0x2052   :  { %3428 = vmax.xlane.f32.xlu0 %v3427_v9  ;;  %v3729_v9 = vld [vmem:[%s6150_s1 + $0x158] sm:$0xff] }
0x2053   :  { %4916 = vmatprep.subr.mxu1 %v3729_v9 }
0x2054   :  { %4917 = vmatpush3.msra.mxu1 %v3729_v9  ;;  %v3993_v9 = vld [vmem:[%s6150_s1 + $0x1b8] sm:$0xff] }
0x2061   :  { %3449 = vrot.lane.b32.xlu1 %v5786_v20, %s5166_s11 }
0x2065   :  { %3538 = vrot.lane.b32.xlu1 %v5873_v31, %s5169_s14 }
0x2069   :  { %3540 = vrot.lane.b32.xlu1 %v5871_v23, %s5169_s14 }
0x206d   :  { %3548 = vrot.lane.b32.xlu1 %v4890_v58, %s5170_s15 }
0x20d9   :  { %v3432_v41 = vpop.xlane.xlu1 %3431 }
0x20da   :  { %v3434_v5 = vsub.f32 %v3424_v2, %v3432_v41  ;;  %v3728_v41 = vld [vmem:[%s6150_s1 + $0x150] sm:$0xff] }
0x20db   :  { %v3429_v16 = vpop.xlane.xlu0 %3428  ;;  %4918 = vmatprep.subr.mxu1 %v3728_v41 }
0x20dc   :  { %v3437_v6 = vmul.f32 1.442695, %v3434_v5  ;;  %v3433_v11 = vsub.f32 %v3419_v10, %v3429_v16  ;;  %v4416_v10 = vld [vmem:[%s6151_s2 + $0x12] ss:$0 sm:$0xff]  ;;  %v3727_v5 = vld [vmem:[%s6150_s1 + $0x148] sm:$0xff]  ;;  %4919 = vmatpush3.msra.mxu1 %v3728_v41 }
0x20dd   :  { %v3450_v29 = vpop.permute.xlu1 %3449  ;;  %4920 = vmatprep.subr.mxu1 %v3727_v5  ;;  %v3992_v41 = vld [vmem:[%s6150_s1 + $0x1b0] sm:$0xff] }
0x20de   :  { %5128 = vpow2.f32 %v3437_v6  ;;  %v3435_v12 = vmul.f32 1.442695, %v3433_v11  ;;  %4921 = vmatpush3.msra.mxu1 %v3727_v5  ;;  %v3991_v5 = vld [vmem:[%s6150_s1 + $0x1a8] sm:$0xff] }
0x20e0   :  { %5130 = vpow2.f32 %v3435_v12 }
0x20e1   :  { %v3539_v24 = vpop.permute.xlu1 %3538 }
0x20e2   :  { %v3560_v34 = vsel %vm220_vm1, %v5869_v22, %v3539_v24  ;;  %v4412_v22 = vld [vmem:[%s6151_s2 + $0x10] ss:$0 sm:$0xff] }
0x20e5   :  { %v3541_v33 = vpop.permute.xlu1 %3540 }
0x20e6   :  { %v3561_v59 = vsel %vm220_vm1, %v5867_v63, %v3541_v33  ;;  %v3825_v33 = vld [vmem:[%s6150_s1 + $0x178] sm:$0xff] }
0x20e9   :  { %v3549_v42 = vpop.permute.xlu1 %3548 }
0x20ea   :  { %v3563_v39 = vsel %vm304_vm2, %v3561_v59, %v3549_v42  ;;  %v3824_v42 = vld [vmem:[%s6150_s1 + $0x170] sm:$0xff] }
0x20eb   :  { %v5129_v13 = vpop.eup %5128 }
0x20ec   :  { %v3442_v56 = vsel %vm304_vm2, %v5129_v13, 0.0 }
0x20ed   :  { %v5131_v20 = vpop.eup %5130  ;;  %3443 = vadd.xlane.f32.xlu0 %v3442_v56 }
0x20ee   :  { %v3439_v54 = vsel %vm304_vm2, %v5131_v20, 0.0 }
0x20f1   :  { %3440 = vadd.xlane.f32.xlu0 %v3439_v54  ;;  %v3829_v54 = vld [vmem:[%s6150_s1 + $0x198] sm:$0xff] }
0x2107   :  { %3451 = vrot.lane.b32.xlu0 %v5784_v1, %s5166_s11  ;;  %v2733_v1 = vld [vmem:[%s6150_s1 + $0x138] sm:$0xff] }
0x210b   :  { %3546 = vrot.lane.b32.xlu0 %v3327_v60, %s5170_s15 }
0x2176   :  { %v3444_v14 = vpop.xlane.xlu0 %3443 }
0x2177   :  { %5132 = vrcp.f32 %v3444_v14  ;;  %v3828_v14 = vld [vmem:[%s6150_s1 + $0x190] sm:$0xff] }
0x217a   :  { %v3441_v15 = vpop.xlane.xlu0 %3440 }
0x217b   :  { %5134 = vrcp.f32 %v3441_v15  ;;  %v3827_v15 = vld [vmem:[%s6150_s1 + $0x188] sm:$0xff] }
0x217e   :  { %v3452_v17 = vpop.permute.xlu0 %3451 }
0x217f   :  { %4898 = vmatprep.subr.mxu0 %v3452_v17 }
0x2180   :  { %4899 = vmatpush3.msra.mxu0 %v3452_v17 }
0x2181   :  { %4900 = vmatprep.subr.mxu0 %v3450_v29 }
0x2182   :  { %4901 = vmatpush3.msra.mxu0 %v3450_v29  ;;  %v3547_v38 = vpop.permute.xlu0 %3546 }
0x2183   :  { %4905 = vmatprep.subr.mxu0 %v2733_v1  ;;  %v3562_v35 = vsel %vm304_vm2, %v3560_v34, %v3547_v38  ;;  %v3823_v38 = vld [vmem:[%s6150_s1 + $0x168] sm:$0xff]  ;;  %v3822_v34 = vld [vmem:[%s6150_s1 + $0x160] sm:$0xff] }
0x2184   :  { %v5133_v18 = vpop.eup %5132 }
0x2185   :  { %v3448_v0 = vmul.f32 %v5133_v18, %v5129_v13 }
0x2188   :  { %v5135_v27 = vpop.eup %5134 }
0x2189   :  { %v3447_v19 = vmul.f32 %v5135_v27, %v5131_v20  ;;  %v3726_v20 = vld [vmem:[%s6150_s1 + $0x140] sm:$0xff] }
0x218a   :  { %4922 = vmatprep.subr.mxu1 %v3726_v20  ;;  %v3826_v27 = vld [vmem:[%s6150_s1 + $0x180] sm:$0xff] }
0x218b   :  { %4902 = vmatprep.mubr.msk.f32.mxu0 %vm304_vm2, %v3447_v19  ;;  %4923 = vmatpush3.msra.mxu1 %v3726_v20  ;;  %v3990_v20 = vld [vmem:[%s6150_s1 + $0x1a0] sm:$0xff] }
0x218c   :  { %4903 = vmatmul.mubr.msk.f32.vlgmr.msra.gmra.mxu0 %vm304_vm2, %v3448_v0  ;;  %4946 = vmatprep.subr.mxu1 %v3993_v9 }
0x218d   :  { %4906 = vmatpush3.msra.mxu0 %v2733_v1 }
0x218e   :  { %4907 = vmatprep.subr.mxu0 %v2732_v21 }
0x218f   :  { %4908 = vmatpush3.msra.mxu0 %v2732_v21 }
0x2190   :  { %4909 = vmatprep.subr.mxu0 %v2731_v28 }
0x2191   :  { %4910 = vmatpush3.msra.mxu0 %v2731_v28 }
0x2192   :  { %4911 = vmatprep.subr.mxu0 %v2730_v7 }
0x2193   :  { %4912 = vmatpush3.msra.mxu0 %v2730_v7 }
0x2194   :  { %4927 = vmatprep.subr.mxu0 %v3829_v54 }
0x224c   :  { %v4904_v23 = vpop.f32.mrf.mxu0 }
0x224d   :  { %3556 = vrot.lane.b32.xlu1 %v4904_v23, %s5171_s24 }
0x224e   :  { %v3527_v31 = vpop.f32.mrf.mxu0 }
0x224f   :  { %3554 = vrot.lane.b32.xlu0 %v3527_v31, %s5171_s24 }
0x22bf   :  { %v3557_v25 = vpop.permute.xlu1 %3556 }
0x22c0   :  { %v3565_v43 = vsel %vm1042_vm3, %v3563_v39, %v3557_v25  ;;  %v4417_v25 = vld [vmem:[%s6151_s2 + $0x13] ss:$0 sm:$0xff] }
0x22c1   :  { %v3555_v37 = vpop.permute.xlu0 %3554 }
0x22c2   :  { %v3564_v40 = vsel %vm1042_vm3, %v3562_v35, %v3555_v37 }
0x22c3   :  { %4913 = vmatprep.mubr.msk.f32.mxu0 %vm20_vm0, %v3564_v40 }
0x22c4   :  { %4914 = vmatmul.mubr.msk.f32.vlgmr.msra.gmra.mxu0 %vm20_vm0, %v3565_v43 }
0x22c5   :  { %4928 = vmatpush3.msra.mxu0 %v3829_v54  ;;  %v4101_v54 = vld [vmem:[%s6150_s1 + $0x238] sm:$0xff] }
0x22c6   :  { %4929 = vmatprep.subr.mxu0 %v3828_v14 }
0x22c7   :  { %4930 = vmatpush3.msra.mxu0 %v3828_v14 }
0x22c8   :  { %4931 = vmatprep.subr.mxu0 %v3827_v15 }
0x22c9   :  { %4932 = vmatpush3.msra.mxu0 %v3827_v15 }
0x22ca   :  { %4933 = vmatprep.subr.mxu0 %v3826_v27 }
0x22cb   :  { %4934 = vmatpush3.msra.mxu0 %v3826_v27 }
0x22cc   :  { %4935 = vmatprep.subr.mxu0 %v3825_v33 }
0x22cd   :  { %4936 = vmatpush3.msra.mxu0 %v3825_v33  ;;  %v4097_v33 = vld [vmem:[%s6150_s1 + $0x218] sm:$0xff] }
0x22ce   :  { %4937 = vmatprep.subr.mxu0 %v3824_v42 }
0x22cf   :  { %4938 = vmatpush3.msra.mxu0 %v3824_v42  ;;  %v4096_v42 = vld [vmem:[%s6150_s1 + $0x210] sm:$0xff] }
0x22d0   :  { %4939 = vmatprep.subr.mxu0 %v3823_v38 }
0x22d1   :  { %4940 = vmatpush3.msra.mxu0 %v3823_v38  ;;  %v4095_v38 = vld [vmem:[%s6150_s1 + $0x208] sm:$0xff] }
0x22d2   :  { %4941 = vmatprep.subr.mxu0 %v3822_v34 }
0x22d3   :  { %4942 = vmatpush3.msra.mxu0 %v3822_v34  ;;  %v4094_v34 = vld [vmem:[%s6150_s1 + $0x200] sm:$0xff] }
0x2384   :  { %v4915_v44 = vpop.f32.mrf.mxu0 }
0x2385   :  { %v3649_v45 = vadd.f32 %v4915_v44, %v4412_v22 }
0x2386   :  { %v3643_v63 = vpop.f32.mrf.mxu0 }
0x2387   :  { %v3644_v46 = vadd.f32 %v4412_v22, %v3643_v63  ;;  %3656 = vrot.lane.b32.xlu1 %v3649_v45, %s5172_s27  ;;  %v4420_v22 = vld [vmem:[%s6151_s2 + $0x14] ss:$0 sm:$0xff] }
0x2389   :  { %3654 = vrot.lane.b32.xlu0 %v3644_v46, %s5172_s27 }
0x23f9   :  { %v3657_v47 = vpop.permute.xlu1 %3656 }
0x23fa   :  { %v3661_v26 = vadd.f32 %v3657_v47, %v5765_v61 }
0x23fb   :  { %v3655_v36 = vpop.permute.xlu0 %3654 }
0x23fc   :  { %v3660_v48 = vadd.f32 %v3655_v36, %v5761_v30  ;;  %3668 = vrot.lane.b32.xlu1 %v3661_v26, %s5158_s30 }
0x23fe   :  { %3666 = vrot.lane.b32.xlu0 %v3660_v48, %s5158_s30 }
0x246e   :  { %v3669_v49 = vpop.permute.xlu1 %3668 }
0x246f   :  { %v3675_v50 = vsel %vm20_vm0, %v3669_v49, 0.0 }
0x2470   :  { %3676 = vadd.xlane.f32.xlu1 %v3675_v50  ;;  %v3667_v51 = vpop.permute.xlu0 %3666 }
0x2471   :  { %v3672_v52 = vsel %vm20_vm0, %v3667_v51, 0.0 }
0x2472   :  { %3673 = vadd.xlane.f32.xlu0 %v3672_v52 }
0x24f9   :  { %v3677_v53 = vpop.xlane.xlu1 %3676 }
0x24fa   :  { %v3679_v55 = vmul.f32 0.03125, %v3677_v53 }
0x24fb   :  { %v3674_v8 = vpop.xlane.xlu0 %3673 }
0x24fc   :  { %v3681_v32 = vsub.f32 %v3661_v26, %v3679_v55  ;;  %v3678_v61 = vmul.f32 0.03125, %v3674_v8 }
0x24fe   :  { %v3683_v57 = vmul.f32 %v3681_v32, %v3681_v32  ;;  %v3680_v58 = vsub.f32 %v3660_v48, %v3678_v61 }
0x2500   :  { %v3682_v30 = vmul.f32 %v3680_v58, %v3680_v58  ;;  %3688 = vrot.lane.b32.xlu1 %v3683_v57, %s5158_s30 }
0x2502   :  { %3686 = vrot.lane.b32.xlu0 %v3682_v30, %s5158_s30 }
0x2572   :  { %v3689_v60 = vpop.permute.xlu1 %3688 }
0x2573   :  { %v3695_v62 = vsel %vm20_vm0, %v3689_v60, 0.0 }
0x2574   :  { %3696 = vadd.xlane.f32.xlu1 %v3695_v62  ;;  %v3687_v2 = vpop.permute.xlu0 %3686 }
0x2575   :  { %v3692_v3 = vsel %vm20_vm0, %v3687_v2, 0.0 }
0x2576   :  { %3693 = vadd.xlane.f32.xlu0 %v3692_v3 }
0x2585   :  { %3721 = vrot.lane.b32.xlu1 %v4416_v10, %s5172_s27  ;;  %v4424_v10 = vld [vmem:[%s6151_s2 + $0x16] ss:$0 sm:$0xff] }
0x258c   :  { %3711 = vrot.lane.b32.xlu0 %v4415_v4, %s5172_s27  ;;  %v4423_v4 = vld [vmem:[%s6151_s2 + $0x15] ss:$0 sm:$0xff] }
0x25fd   :  { %v3697_v16 = vpop.xlane.xlu1 %3696 }
0x25fe   :  { %v3699_v6 = vmul.f32 0.03125, %v3697_v16 }
0x25ff   :  { %v3694_v11 = vpop.xlane.xlu0 %3693 }
0x2600   :  { %v3701_v12 = vadd.f32 1e-05, %v3699_v6  ;;  %v3698_v13 = vmul.f32 0.03125, %v3694_v11 }
0x2601   :  { %v3722_v0 = vpop.permute.xlu1 %3721 }
0x2602   :  { %5136 = vrsqrt.f32 %v3701_v12  ;;  %v3700_v56 = vadd.f32 1e-05, %v3698_v13 }
0x2603   :  { %v3712_v29 = vpop.permute.xlu0 %3711 }
0x2604   :  { %5138 = vrsqrt.f32 %v3700_v56 }
0x260f   :  { %v5137_v17 = vpop.eup %5136 }
0x2610   :  { %v3705_v18 = vmul.f32 %v5137_v17, %v3681_v32 }
0x2611   :  { %v5139_v19 = vpop.eup %5138 }
0x2612   :  { %v3704_v1 = vmul.f32 %v5139_v19, %v3680_v58  ;;  %v3715_v21 = vmul.f32 %v3712_v29, %v3705_v18 }
0x2614   :  { %v3714_v28 = vmul.f32 %v3712_v29, %v3704_v1  ;;  %v3725_v7 = vadd.f32 %v3722_v0, %v3715_v21 }
0x2616   :  { %v3724_v23 = vadd.f32 %v3722_v0, %v3714_v28  ;;  %3739 = vrot.lane.b32.xlu1 %v3725_v7, %s5158_s30 }
0x2618   :  { %3737 = vrot.lane.b32.xlu0 %v3724_v23, %s5158_s30 }
0x2688   :  { %v3740_v24 = vpop.permute.xlu1 %3739 }
0x268a   :  { %v3738_v31 = vpop.permute.xlu0 %3737 }
0x268b   :  { %4924 = vmatprep.mubr.msk.f32.mxu1 %vm20_vm0, %v3738_v31  ;;  %v4099_v31 = vld [vmem:[%s6150_s1 + $0x228] sm:$0xff] }
0x268c   :  { %4925 = vmatmul.mubr.msk.f32.vlgmr.msra.gmra.mxu1 %vm20_vm0, %v3740_v24  ;;  %v4098_v24 = vld [vmem:[%s6150_s1 + $0x220] sm:$0xff] }
0x268d   :  { %4947 = vmatpush3.msra.mxu1 %v3993_v9 }
0x268e   :  { %4948 = vmatprep.subr.mxu1 %v3992_v41 }
0x268f   :  { %4949 = vmatpush3.msra.mxu1 %v3992_v41 }
0x2690   :  { %4950 = vmatprep.subr.mxu1 %v3991_v5 }
0x2691   :  { %4951 = vmatpush3.msra.mxu1 %v3991_v5 }
0x2692   :  { %4952 = vmatprep.subr.mxu1 %v3990_v20 }
0x2693   :  { %4953 = vmatpush3.msra.mxu1 %v3990_v20 }
0x2694   :  { %4957 = vmatprep.subr.msk.mxu1 %vm20_vm0, %v4101_v54 }
0x274c   :  { %v4926_v59 = vpop.f32.mrf.mxu1 }
0x274d   :  { %v3817_v35 = vadd.f32 %v4926_v59, %v4417_v25  ;;  %v4092_v59 = vld [vmem:[%s6150_s1 + $0x1f0] sm:$0xff] }
0x274e   :  { %v3811_v37 = vpop.f32.mrf.mxu1 }
0x274f   :  { %v3812_v39 = vadd.f32 %v4417_v25, %v3811_v37  ;;  %v3821_v43 = vmax.f32 %v3817_v35, 0.0  ;;  %v4093_v25 = vld [vmem:[%s6150_s1 + $0x1f8] sm:$0xff]  ;;  %v4091_v35 = vld [vmem:[%s6150_s1 + $0x1e8] sm:$0xff]  ;;  %v4090_v37 = vld [vmem:[%s6150_s1 + $0x1e0] sm:$0xff] }
0x2751   :  { %v3820_v40 = vmax.f32 %v3812_v39, 0.0  ;;  %v4089_v39 = vld [vmem:[%s6150_s1 + $0x1d8] sm:$0xff] }
0x2753   :  { %4943 = vmatprep.mubr.msk.f32.mxu0 %vm1330_vm6, %v3820_v40  ;;  %v4088_v40 = vld [vmem:[%s6150_s1 + $0x1d0] sm:$0xff] }
0x2754   :  { %4944 = vmatmul.mubr.msk.f32.vlgmr.msra.gmra.mxu0 %vm1330_vm6, %v3821_v43  ;;  %v4087_v43 = vld [vmem:[%s6150_s1 + $0x1c8] sm:$0xff] }
0x2814   :  { %v4945_v44 = vpop.f32.mrf.mxu0 }
0x2815   :  { %v3913_v45 = vadd.f32 %v4945_v44, %v4420_v22  ;;  %v4425_v44 = vld [vmem:[%s6151_s2 + $0x17] ss:$0 sm:$0xff] }
0x2816   :  { %v3907_v63 = vpop.f32.mrf.mxu0 }
0x2817   :  { %v3908_v46 = vadd.f32 %v4420_v22, %v3907_v63  ;;  %3920 = vrot.lane.b32.xlu1 %v3913_v45, %s5172_s27  ;;  %v4086_v22 = vld [vmem:[%s6150_s1 + $0x1c0] sm:$0xff] }
0x2819   :  { %3918 = vrot.lane.b32.xlu0 %v3908_v46, %s5172_s27 }
0x2889   :  { %v3921_v47 = vpop.permute.xlu1 %3920 }
0x288a   :  { %v3925_v26 = vadd.f32 %v3921_v47, %v3725_v7 }
0x288b   :  { %v3919_v36 = vpop.permute.xlu0 %3918 }
0x288c   :  { %v3924_v48 = vadd.f32 %v3919_v36, %v3724_v23  ;;  %3932 = vrot.lane.b32.xlu1 %v3925_v26, %s5158_s30  ;;  %v4100_v23 = vld [vmem:[%s6150_s1 + $0x230] sm:$0xff] }
0x288e   :  { %3930 = vrot.lane.b32.xlu0 %v3924_v48, %s5158_s30 }
0x28fe   :  { %v3933_v49 = vpop.permute.xlu1 %3932 }
0x28ff   :  { %v3939_v50 = vsel %vm20_vm0, %v3933_v49, 0.0 }
0x2900   :  { %3940 = vadd.xlane.f32.xlu1 %v3939_v50  ;;  %v3931_v51 = vpop.permute.xlu0 %3930 }
0x2901   :  { %v3936_v52 = vsel %vm20_vm0, %v3931_v51, 0.0 }
0x2902   :  { %3937 = vadd.xlane.f32.xlu0 %v3936_v52 }
0x2989   :  { %v3941_v53 = vpop.xlane.xlu1 %3940 }
0x298a   :  { %v3943_v55 = vmul.f32 0.03125, %v3941_v53  ;;  %v17_v53 = vld [vmem:[%s6149_s0 + $0x18] sm:$0xff] }
0x298b   :  { %v3938_v8 = vpop.xlane.xlu0 %3937 }
0x298c   :  { %v3945_v32 = vsub.f32 %v3925_v26, %v3943_v55  ;;  %v3942_v61 = vmul.f32 0.03125, %v3938_v8 }
0x298e   :  { %v3947_v57 = vmul.f32 %v3945_v32, %v3945_v32  ;;  %v3944_v58 = vsub.f32 %v3924_v48, %v3942_v61  ;;  %v4428_v48 = vld [vmem:[%s6151_s2 + $0x18] ss:$0 sm:$0xff] }
0x2990   :  { %v3946_v30 = vmul.f32 %v3944_v58, %v3944_v58  ;;  %3952 = vrot.lane.b32.xlu1 %v3947_v57, %s5158_s30 }
0x2992   :  { %3950 = vrot.lane.b32.xlu0 %v3946_v30, %s5158_s30 }
0x2a02   :  { %v3953_v60 = vpop.permute.xlu1 %3952 }
0x2a03   :  { %v3959_v62 = vsel %vm20_vm0, %v3953_v60, 0.0 }
0x2a04   :  { %3960 = vadd.xlane.f32.xlu1 %v3959_v62  ;;  %v3951_v2 = vpop.permute.xlu0 %3950 }
0x2a05   :  { %v3956_v3 = vsel %vm20_vm0, %v3951_v2, 0.0  ;;  %v15_v2 = vld [vmem:[%s6149_s0 + $0x8] sm:$0xff] }
0x2a06   :  { %3957 = vadd.xlane.f32.xlu0 %v3956_v3 }
0x2a15   :  { %3985 = vrot.lane.b32.xlu1 %v4424_v10, %s5172_s27 }
0x2a1c   :  { %3975 = vrot.lane.b32.xlu0 %v4423_v4, %s5172_s27 }
0x2a8d   :  { %v3961_v16 = vpop.xlane.xlu1 %3960 }
0x2a8e   :  { %v3963_v6 = vmul.f32 0.03125, %v3961_v16 }
0x2a8f   :  { %v3958_v11 = vpop.xlane.xlu0 %3957 }
0x2a90   :  { %v3965_v12 = vadd.f32 1e-05, %v3963_v6  ;;  %v3962_v13 = vmul.f32 0.03125, %v3958_v11 }
0x2a91   :  { %v3986_v18 = vpop.permute.xlu1 %3985 }
0x2a92   :  { %5140 = vrsqrt.f32 %v3965_v12  ;;  %v3964_v56 = vadd.f32 1e-05, %v3962_v13 }
0x2a93   :  { %v3976_v15 = vpop.permute.xlu0 %3975 }
0x2a94   :  { %5142 = vrsqrt.f32 %v3964_v56 }
0x2a9f   :  { %v5141_v14 = vpop.eup %5140 }
0x2aa0   :  { %v3969_v17 = vmul.f32 %v5141_v14, %v3945_v32 }
0x2aa1   :  { %v5143_v29 = vpop.eup %5142 }
0x2aa2   :  { %v3968_v27 = vmul.f32 %v5143_v29, %v3944_v58  ;;  %v3979_v19 = vmul.f32 %v3976_v15, %v3969_v17 }
0x2aa4   :  { %v3978_v0 = vmul.f32 %v3976_v15, %v3968_v27  ;;  %v3989_v1 = vadd.f32 %v3986_v18, %v3979_v19 }
0x2aa6   :  { %v3988_v21 = vadd.f32 %v3986_v18, %v3978_v0  ;;  %4003 = vrot.lane.b32.xlu1 %v3989_v1, %s5158_s30 }
0x2aa8   :  { %4001 = vrot.lane.b32.xlu0 %v3988_v21, %s5158_s30 }
0x2b18   :  { %v4004_v7 = vpop.permute.xlu1 %4003 }
0x2b1a   :  { %v4002_v28 = vpop.permute.xlu0 %4001 }
0x2b1b   :  { %4954 = vmatprep.mubr.msk.f32.mxu1 %vm20_vm0, %v4002_v28 }
0x2b1c   :  { %4955 = vmatmul.mubr.msk.f32.vlgmr.msra.gmra.mxu1 %vm20_vm0, %v4004_v7 }
0x2b1d   :  { %4958 = vmatpush3.xpose.msk.msra.mxu1 %vm20_vm0, %v4101_v54 }
0x2b1e   :  { %4959 = vmatprep.subr.msk.mxu1 %vm20_vm0, %v4100_v23 }
0x2b21   :  { %4960 = vmatpush3.xpose.msk.msra.mxu1 %vm20_vm0, %v4100_v23 }
0x2b22   :  { %4961 = vmatprep.subr.msk.mxu1 %vm20_vm0, %v4099_v31 }
0x2b25   :  { %4962 = vmatpush3.xpose.msk.msra.mxu1 %vm20_vm0, %v4099_v31 }
0x2b26   :  { %4963 = vmatprep.subr.msk.mxu1 %vm20_vm0, %v4098_v24 }
0x2b29   :  { %4964 = vmatpush3.xpose.msk.msra.mxu1 %vm20_vm0, %v4098_v24 }
0x2b2a   :  { %4965 = vmatprep.subr.msk.mxu1 %vm20_vm0, %v4097_v33 }
0x2b2d   :  { %4966 = vmatpush3.xpose.msk.msra.mxu1 %vm20_vm0, %v4097_v33 }
0x2b2e   :  { %4967 = vmatprep.subr.msk.mxu1 %vm20_vm0, %v4096_v42 }
0x2b31   :  { %4968 = vmatpush3.xpose.msk.msra.mxu1 %vm20_vm0, %v4096_v42 }
0x2b32   :  { %4969 = vmatprep.subr.msk.mxu1 %vm20_vm0, %v4095_v38 }
0x2b35   :  { %4970 = vmatpush3.xpose.msk.msra.mxu1 %vm20_vm0, %v4095_v38 }
0x2b36   :  { %4971 = vmatprep.subr.msk.mxu1 %vm20_vm0, %v4094_v34 }
0x2b39   :  { %4972 = vmatpush3.xpose.msk.msra.mxu1 %vm20_vm0, %v4094_v34 }
0x2b3a   :  { %4973 = vmatprep.subr.msk.mxu1 %vm20_vm0, %v4093_v25 }
0x2b3d   :  { %4974 = vmatpush3.xpose.msk.msra.mxu1 %vm20_vm0, %v4093_v25 }
0x2b3e   :  { %4975 = vmatprep.subr.msk.mxu1 %vm20_vm0, %v4092_v59 }
0x2b41   :  { %4976 = vmatpush3.xpose.msk.msra.mxu1 %vm20_vm0, %v4092_v59 }
0x2b42   :  { %4977 = vmatprep.subr.msk.mxu1 %vm20_vm0, %v4091_v35 }
0x2b45   :  { %4978 = vmatpush3.xpose.msk.msra.mxu1 %vm20_vm0, %v4091_v35 }
0x2b46   :  { %4979 = vmatprep.subr.msk.mxu1 %vm20_vm0, %v4090_v37 }
0x2b49   :  { %4980 = vmatpush3.xpose.msk.msra.mxu1 %vm20_vm0, %v4090_v37 }
0x2b4a   :  { %4981 = vmatprep.subr.msk.mxu1 %vm20_vm0, %v4089_v39 }
0x2b4d   :  { %4982 = vmatpush3.xpose.msk.msra.mxu1 %vm20_vm0, %v4089_v39  ;;  %v4295_v39 = vlaneseq }
0x2b4e   :  { %4983 = vmatprep.subr.msk.mxu1 %vm20_vm0, %v4088_v40 }
0x2b51   :  { %4984 = vmatpush3.xpose.msk.msra.mxu1 %vm20_vm0, %v4088_v40  ;;  %v4296_v40 = vand.u32 127, %v4295_v39 }
0x2b52   :  { %4985 = vmatprep.subr.msk.mxu1 %vm20_vm0, %v4087_v43 }
0x2b53   :  { %vm4298_vm8 = vcmp.eq.s32.totalorder %v4296_v40, 1  ;;  %vm4297_vm9 = vcmp.eq.s32.totalorder %v4296_v40, 0 }
0x2b55   :  { %4986 = vmatpush3.xpose.msk.msra.mxu1 %vm20_vm0, %v4087_v43 }
0x2b56   :  { %4987 = vmatprep.subr.msk.mxu1 %vm20_vm0, %v4086_v22 }
0x2b59   :  { %4988 = vmatpush3.xpose.msk.msra.mxu1 %vm20_vm0, %v4086_v22 }
0x2bdc   :  { %v4956_v45 = vpop.f32.mrf.mxu1 }
0x2bdd   :  { %v4081_v63 = vadd.f32 %v4956_v45, %v4425_v44 }
0x2bde   :  { %v4075_v46 = vpop.f32.mrf.mxu1 }
0x2bdf   :  { %v4076_v47 = vadd.f32 %v4425_v44, %v4075_v46 }
0x2be1   :  { %5144 = vtanh.f32 %v4076_v47 }
0x2be2   :  { %5146 = vtanh.f32 %v4081_v63 }
0x2bee   :  { %v5145_v26 = vpop.eup %5144 }
0x2bef   :  { %v5147_v36 = vpop.eup %5146  ;;  %4989 = vmatprep.mubr.msk.f32.mxu1 %vm20_vm0, %v5145_v26 }
0x2bf0   :  { %4990 = vmatmul.mubr.msk.f32.vlgmr.msra.gmra.mxu1 %vm20_vm0, %v5147_v36 }
0x2cb0   :  { %v4991_v49 = vpop.f32.mrf.mxu1 }
0x2cb1   :  { %v4233_v50 = vadd.f32 %v4991_v49, %v4428_v48 }
0x2cb2   :  { %v4227_v51 = vpop.f32.mrf.mxu1 }
0x2cb3   :  { %v4228_v52 = vadd.f32 %v4428_v48, %v4227_v51  ;;  %4238 = vmax.xlane.f32.xlu1 %v4233_v50  ;;  %v4261_v55 = vmul.f32 %v4233_v50, %v17_v53 }
0x2cb5   :  { %4236 = vmax.xlane.f32.xlu0 %v4228_v52  ;;  %v4260_v3 = vmul.f32 %v4228_v52, %v15_v2 }
0x2cb7   :  { %4258 = vadd.xlane.f32.xlu1 %v17_v53 }
0x2cbb   :  { %4264 = vadd.xlane.f32.xlu1 %v4261_v55 }
0x2d3c   :  { %v4239_v8 = vpop.xlane.xlu1 %4238 }
0x2d3d   :  { %v4241_v61 = vsub.f32 %v4233_v50, %v4239_v8 }
0x2d3e   :  { %v4237_v32 = vpop.xlane.xlu0 %4236 }
0x2d3f   :  { %v4240_v57 = vsub.f32 %v4228_v52, %v4237_v32  ;;  %v4244_v30 = vmul.f32 1.442695, %v4241_v61 }
0x2d40   :  { %v4259_v9 = vpop.xlane.xlu1 %4258 }
0x2d41   :  { %v4242_v58 = vmul.f32 1.442695, %v4240_v57  ;;  %v4284_v41 = vsel %vm4270_vm7, %v4259_v9, 0.0 }
0x2d43   :  { %5148 = vpow2.f32 %v4242_v58 }
0x2d44   :  { %5150 = vpow2.f32 %v4244_v30  ;;  %v4265_v18 = vpop.xlane.xlu1 %4264 }
0x2d50   :  { %v5149_v60 = vpop.eup %5148 }
0x2d51   :  { %4246 = vadd.xlane.f32.xlu0 %v5149_v60  ;;  %v5151_v62 = vpop.eup %5150 }
0x2d55   :  { %4248 = vadd.xlane.f32.xlu0 %v5151_v62 }
0x2d59   :  { %4256 = vadd.xlane.f32.xlu0 %v15_v2 }
0x2d5d   :  { %4262 = vadd.xlane.f32.xlu0 %v4260_v3 }
0x2dda   :  { %v4247_v10 = vpop.xlane.xlu0 %4246 }
0x2ddb   :  { %5152 = vlog2.f32 %v4247_v10 }
0x2dde   :  { %v4249_v4 = vpop.xlane.xlu0 %4248 }
0x2ddf   :  { %5154 = vlog2.f32 %v4249_v4 }
0x2de2   :  { %v4257_v5 = vpop.xlane.xlu0 %4256 }
0x2de3   :  { %v4283_v16 = vsel %vm4270_vm7, %v4257_v5, 0.0 }
0x2de4   :  { %v4285_v6 = vadd.f32 %v4284_v41, %v4283_v16 }
0x2de6   :  { %4286 = vadd.xlane.f32.xlu1 %v4285_v6  ;;  %v4263_v15 = vpop.xlane.xlu0 %4262 }
0x2de8   :  { %v5153_v11 = vpop.eup %5152 }
0x2de9   :  { %v4251_v12 = vmul.f32 0.6931472, %v5153_v11 }
0x2deb   :  { %v4254_v13 = vadd.f32 %v4251_v12, %v4237_v32 }
0x2dec   :  { %v5155_v56 = vpop.eup %5154 }
0x2ded   :  { %v4253_v20 = vmul.f32 0.6931472, %v5155_v56  ;;  %v4266_v54 = vmul.f32 %v4257_v5, %v4254_v13 }
0x2def   :  { %v4255_v14 = vadd.f32 %v4253_v20, %v4239_v8  ;;  %v4268_v29 = vsub.f32 %v4266_v54, %v4263_v15 }
0x2df1   :  { %v4267_v17 = vmul.f32 %v4259_v9, %v4255_v14  ;;  %v4271_v0 = vsel %vm4270_vm7, %v4268_v29, 0.0 }
0x2df3   :  { %v4269_v27 = vsub.f32 %v4267_v17, %v4265_v18 }
0x2df5   :  { %v4272_v19 = vsel %vm4270_vm7, %v4269_v27, 0.0 }
0x2df6   :  { %v4273_v1 = vadd.f32 %v4272_v19, %v4271_v0 }
0x2df8   :  { %4274 = vadd.xlane.f32.xlu0 %v4273_v1 }
0x2e6f   :  { %v4287_v21 = vpop.xlane.xlu1 %4286 }
0x2e70   :  { %v4288_v28 = vrot.slane %v4287_v21, 4 }
0x2e72   :  { %v4289_v7 = vadd.f32 %v4288_v28, %v4287_v21 }
0x2e74   :  { %v4290_v23 = vrot.slane %v4289_v7, 2 }
0x2e76   :  { %v4291_v42 = vadd.f32 %v4290_v23, %v4289_v7 }
0x2e78   :  { %v4292_v25 = vrot.slane %v4291_v42, 1 }
0x2e7a   :  { %v4293_v37 = vadd.f32 %v4292_v25, %v4291_v42 }
0x2e81   :  { %v4275_v31 = vpop.xlane.xlu0 %4274 }
0x2e82   :  { %v4276_v24 = vrot.slane %v4275_v31, 4 }
0x2e84   :  { %v4277_v33 = vadd.f32 %v4276_v24, %v4275_v31 }
0x2e86   :  { %v4278_v38 = vrot.slane %v4277_v33, 2 }
0x2e88   :  { %v4279_v34 = vadd.f32 %v4278_v38, %v4277_v33 }
0x2e8a   :  { %v4280_v59 = vrot.slane %v4279_v34, 1 }
0x2e8c   :  { %v4281_v35 = vadd.f32 %v4280_v59, %v4279_v34 }
0x2e8e   :  { %4992 = vpush %v4281_v35 }
0x2e8f   :  { %4994 = vpush %v4293_v37 }
0x2ebf   :  { %s4993_s0 = spop %4992 }
0x2ec0   :  { %v4301_v43 = vstv %s4993_s0  ;;  %s4995_s18 = spop %4994 }
0x2ec1   :  { %v4299_v22 = vstv %s4995_s18 }
0x2ec2   :  { %v4300_v44 = vsel %vm4298_vm8, %v4299_v22, 0.0 }
0x2ec3   :  { %v4302_v45 = vsel %vm4297_vm9, %v4301_v43, %v4300_v44 }
0x2ec4   :  { %4303 = vst [vmem:[%s6152_s3] sm:$0x1] %v4302_v45 }

</bundles_post_ra>
